<compile_context>
chip_gen: v6e
topology: v6e:2x2x1
jax: 0.10.0
libtpu: 0.0.40
codegen_flags: <defaults>
</compile_context>

<pallas_src>
import functools

import jax
import jax.numpy as jnp
from jax.experimental import pallas as pl
from jax.experimental.pallas import tpu as pltpu


# ----------------------------------------------------------------------------
# Host-side weight preprocessing: fold the horizontal taps into banded
# (W*Cin, W*Cout) block matrices so each conv tap is one lane-dense matmul.
# ----------------------------------------------------------------------------

def _conv_band_matrices(w, width):
    """w: (3, 3, Cin, Cout) SAME 3x3 conv -> (3, width*Cin, width*Cout)."""
    _, _, cin, cout = w.shape
    wi = jnp.arange(width)[:, None]
    wo = jnp.arange(width)[None, :]
    dx = wi - wo
    valid = jnp.abs(dx) <= 1
    dxc = jnp.clip(dx, -1, 1) + 1
    blocks = w[:, dxc] * valid[None, :, :, None, None]   # (3, W, W, Cin, Cout)
    blocks = blocks.transpose(0, 1, 3, 2, 4)              # (3, W, Cin, W, Cout)
    return blocks.reshape(3, width * cin, width * cout)


def _down_band_matrices(w, width):
    """w: (2, 2, Cin, Cout) 2x2 stride-2 conv -> (2, width*Cin, (width//2)*Cout)."""
    _, _, cin, cout = w.shape
    wo = width // 2
    wi = jnp.arange(width)[:, None]
    j = jnp.arange(wo)[None, :]
    dx = wi - 2 * j
    valid = (dx >= 0) & (dx <= 1)
    dxc = jnp.clip(dx, 0, 1)
    blocks = w[:, dxc] * valid[None, :, :, None, None]    # (2, W, Wo, Cin, Cout)
    blocks = blocks.transpose(0, 1, 3, 2, 4)
    return blocks.reshape(2, width * cin, wo * cout)


def _up_band_matrices(w, width_in):
    """w: (2, 2, Cin, Cout) 2x2 stride-2 deconv -> (2, Wi*Cin, 2*Wi*Cout)."""
    _, _, cin, cout = w.shape
    wo = 2 * width_in
    j = jnp.arange(width_in)[:, None]
    o = jnp.arange(wo)[None, :]
    dx = o - 2 * j
    valid = (dx >= 0) & (dx <= 1)
    dxc = jnp.clip(dx, 0, 1)
    blocks = w[:, dxc] * valid[None, :, :, None, None]    # (2, Wi, Wo, Cin, Cout)
    blocks = blocks.transpose(0, 1, 3, 2, 4)
    return blocks.reshape(2, width_in * cin, wo * cout)


def pack_weights(params, depth, width):
    """Stack all per-level weight matrices (every one is (..., lanes, lanes))."""
    wconv, wdown, wup = [], [], []
    p, w = params, width
    for _ in range(depth):
        for blk in p["down_blocks"]:
            wconv.append(_conv_band_matrices(blk["w1"], w))
            wconv.append(_conv_band_matrices(blk["w2"], w))
        for blk in p["up_blocks"]:
            wconv.append(_conv_band_matrices(blk["w1"], w))
            wconv.append(_conv_band_matrices(blk["w2"], w))
        wdown.append(_down_band_matrices(p["downsample_w"], w))
        wup.append(_up_band_matrices(p["upsample_w"], w // 2))
        p = p["main"]
        w //= 2
    return (jnp.stack(wconv).astype(jnp.bfloat16),
            jnp.stack(wdown).astype(jnp.bfloat16),
            jnp.stack(wup).astype(jnp.bfloat16))


# ----------------------------------------------------------------------------
# The fused Pallas kernel (whole SparseUNetCore forward per grid step)
# ----------------------------------------------------------------------------

def make_unet_kernel(depth, n_blk, bh, height, lanes):
    f32, bf16 = jnp.float32, jnp.bfloat16

    def kernel(x_ref, wconv_ref, wdown_ref, wup_ref, out_ref, *scratch):
        pads = scratch[:depth]        # pads[l]: (bh, H_l + 2, lanes) halo buffers
        deep_ref = scratch[depth]     # deepest (identity) level activation

        # Zero halo buffers: border rows supply the vertical zero padding.
        for r in scratch:
            r[...] = jnp.zeros(r.shape, f32)

        def conv(pad_ref, widx, hl):
            """Dense stand-in for the [1,3,3] submanifold conv: 3 banded matmuls."""
            acc = jnp.zeros((bh * hl, lanes), f32)
            for t in range(3):
                patch = pad_ref[:, t:t + hl, :].reshape(bh * hl, lanes)
                acc = acc + jnp.dot(patch.astype(bf16), wconv_ref[widx, t],
                                    preferred_element_type=f32)
            return acc

        def put(pad_ref, val, hl):
            pad_ref[:, 1:hl + 1, :] = val.reshape(bh, hl, lanes)

        def res_block(pad_ref, w1_idx, w2_idx, hl):
            # SparseResidualBlock (no BN, no bias):
            #   h = relu(conv1(x)); y = relu(conv2(h) + x)
            x2d = pad_ref[:, 1:hl + 1, :].reshape(bh * hl, lanes)
            h = jnp.maximum(conv(pad_ref, w1_idx, hl), 0.0)
            put(pad_ref, h, hl)
            y = jnp.maximum(conv(pad_ref, w2_idx, hl) + x2d, 0.0)
            put(pad_ref, y, hl)
            return y

        def run_level(l, hl):
            """Input already sits in pads[l] interior; returns the level output."""
            base = l * 4 * n_blk

            # ---- down blocks (SparseBlockSeries) ----
            y = None
            for b in range(n_blk):
                y = res_block(pads[l], base + 2 * b, base + 2 * b + 1, hl)
            hn = hl // 2

            # ---- downsample: scn.Convolution [1,2,2]/[1,2,2] + ReLU ----
            yb = y.astype(bf16)
            z0 = jnp.dot(yb, wdown_ref[l, 0],
                         preferred_element_type=f32).reshape(bh, hl, lanes)
            z1 = jnp.dot(yb, wdown_ref[l, 1],
                         preferred_element_type=f32).reshape(bh, hl, lanes)
            if l + 1 < depth:
                nxt, off = pads[l + 1], 1
            else:
                nxt, off = deep_ref, 0
            for i in range(hn):
                row = jnp.maximum(z0[:, 2 * i:2 * i + 1, :]
                                  + z1[:, 2 * i + 1:2 * i + 2, :], 0.0)
                nxt[:, off + i:off + i + 1, :] = row

            # ---- inner module (SparseDeepestBlock.forward early-returns x) ----
            if l + 1 < depth:
                x_in = run_level(l + 1, hn)
            else:
                x_in = deep_ref[...].reshape(bh * deep_ref.shape[1], lanes)

            # ---- upsample (deconv + ReLU) fused with SumConnection add ----
            xb = x_in.astype(bf16)
            rows = x_in.shape[0] // bh
            ye = jnp.dot(xb, wup_ref[l, 0],
                         preferred_element_type=f32).reshape(bh, rows, lanes)
            yo = jnp.dot(xb, wup_ref[l, 1],
                         preferred_element_type=f32).reshape(bh, rows, lanes)
            for i in range(hn):
                res_e = pads[l][:, 1 + 2 * i:2 + 2 * i, :]   # down-blocks output
                res_o = pads[l][:, 2 + 2 * i:3 + 2 * i, :]   # (still intact)
                ze = jnp.maximum(ye[:, i:i + 1, :], 0.0) + res_e
                zo = jnp.maximum(yo[:, i:i + 1, :], 0.0) + res_o
                pads[l][:, 1 + 2 * i:2 + 2 * i, :] = ze
                pads[l][:, 2 + 2 * i:3 + 2 * i, :] = zo

            # ---- up blocks ----
            out = None
            for b in range(n_blk):
                out = res_block(pads[l], base + 2 * n_blk + 2 * b,
                                base + 2 * n_blk + 2 * b + 1, hl)
            return out

        put(pads[0], x_ref[...].reshape(bh * height, lanes), height)
        y = run_level(0, height)
        out_ref[...] = y.reshape(bh, height, lanes)

    return kernel


# ----------------------------------------------------------------------------
# Wrapper: single pallas_call, lane-dense I/O, batch split across TensorCores
# ----------------------------------------------------------------------------

def unet_core_forward(params, x, depth):
    """x: (B, H, W, C) dense NHWC stand-in (plane axis folded into batch)."""
    if depth == 0:
        return x                      # SparseDeepestBlock.forward -> identity

    B, H, W, C = x.shape
    lanes = W * C
    n_blk = len(params["down_blocks"])
    assert n_blk >= 1
    assert lanes % 128 == 0, "lane-dense layout requires W*C to be a multiple of 128"
    p = params
    for l in range(depth):
        assert (H >> l) % 8 == 0, "H at every conv level must be a multiple of 8"
        assert (W >> l) >= 2
        dw = p["downsample_w"]
        assert dw.shape[3] == 2 * dw.shape[2], "kernel requires multiplicative growth"
        p = p["main"]

    groups = 2 if B % 2 == 0 else 1   # shard batch over the 2 TCs of a v7x chip
    bh = B // groups
    deep_rows = max(8, ((H >> depth) + 7) // 8 * 8)

    wconv, wdown, wup = pack_weights(params, depth, W)
    x_lane = x.reshape(B, H, lanes)   # free bitcast reshape, lane-dense DMA

    kernel = make_unet_kernel(depth, n_blk, bh, H, lanes)
    scratch_shapes = [pltpu.VMEM((bh, (H >> l) + 2, lanes), jnp.float32)
                      for l in range(depth)]
    scratch_shapes.append(pltpu.VMEM((bh, deep_rows, lanes), jnp.float32))

    # Advisory cost estimate for the XLA scheduler.
    flops = 0
    hl = H
    for l in range(depth):
        m = B * hl
        flops += 4 * n_blk * 3 * 2 * m * lanes * lanes        # residual-block convs
        flops += 2 * 2 * m * lanes * lanes                    # downsample
        m_up = B * (hl // 2) if l + 1 < depth else B * deep_rows
        flops += 2 * 2 * m_up * lanes * lanes                 # upsample
        hl //= 2
    bytes_accessed = x_lane.size * 4 * 2 + 2 * groups * (
        wconv.size + wdown.size + wup.size)

    out = pl.pallas_call(
        kernel,
        out_shape=jax.ShapeDtypeStruct((B, H, lanes), jnp.float32),
        grid_spec=pltpu.PrefetchScalarGridSpec(
            num_scalar_prefetch=0,
            grid=(groups,),
            in_specs=[
                pl.BlockSpec((bh, H, lanes), lambda g: (g, 0, 0)),
                pl.BlockSpec(wconv.shape, lambda g: (0, 0, 0, 0)),
                pl.BlockSpec(wdown.shape, lambda g: (0, 0, 0, 0)),
                pl.BlockSpec(wup.shape, lambda g: (0, 0, 0, 0)),
            ],
            out_specs=pl.BlockSpec((bh, H, lanes), lambda g: (g, 0, 0)),
            scratch_shapes=scratch_shapes,
        ),
        compiler_params=pltpu.CompilerParams(
            dimension_semantics=("parallel",)),
        cost_estimate=pl.CostEstimate(flops=int(flops), transcendentals=0,
                                      bytes_accessed=int(bytes_accessed)),
    )(x_lane, wconv, wdown, wup)
    return out.reshape(B, H, W, C)


unet_core_forward_jit = jax.jit(unet_core_forward, static_argnums=(2,))


# ----------------------------------------------------------------------------
# Pure-JAX reference (f32 NHWC) for correctness checking
# ----------------------------------------------------------------------------

def _conv3x3_ref(x, w):
    return jax.lax.conv_general_dilated(
        x, w, window_strides=(1, 1), padding="SAME",
        dimension_numbers=("NHWC", "HWIO", "NHWC"))


def _res_block_ref(p, x):
    h = jax.nn.relu(_conv3x3_ref(x, p["w1"]))
    return jax.nn.relu(_conv3x3_ref(h, p["w2"]) + x)


def _down_ref(w, x):
    y = jax.lax.conv_general_dilated(
        x, w, window_strides=(2, 2), padding="VALID",
        dimension_numbers=("NHWC", "HWIO", "NHWC"))
    return jax.nn.relu(y)


def _up_ref(w, x):
    B, h, ww, cin = x.shape
    cout = w.shape[-1]
    wf = w.transpose(2, 0, 1, 3).reshape(cin, 4 * cout)
    y = jax.nn.relu(x.reshape(B * h * ww, cin) @ wf)
    y = y.reshape(B, h, ww, 2, 2, cout).transpose(0, 1, 3, 2, 4, 5)
    return y.reshape(B, 2 * h, 2 * ww, cout)


def unet_core_ref(params, x, depth):
    if depth == 0:
        return x
    for p in params["down_blocks"]:
        x = _res_block_ref(p, x)
    res = x
    x = _down_ref(params["downsample_w"], x)
    x = unet_core_ref(params["main"], x, depth - 1)
    x = _up_ref(params["upsample_w"], x)
    x = x + res
    for p in params["up_blocks"]:
        x = _res_block_ref(p, x)
    return x


# ----------------------------------------------------------------------------
# Deterministic parameter construction
# ----------------------------------------------------------------------------

def _res_block_params(key, c):
    k1, k2 = jax.random.split(key)
    scale = 0.1 / (3.0 * (c ** 0.5))
    return {
        "w1": jax.random.normal(k1, (3, 3, c, c), jnp.float32) * scale,
        "w2": jax.random.normal(k2, (3, 3, c, c), jnp.float32) * scale,
    }


def build_params(key, depth, inplanes, cfg):
    if depth == 0:
        return {}
    if cfg["growth_rate"] == "multiplicative":
        n_next = 2 * inplanes
    else:
        n_next = inplanes + cfg["n_initial_filters"]
    n_blk = cfg["blocks_per_layer"]
    keys = jax.random.split(key, 2 * n_blk + 3)
    down_keys = keys[:n_blk]
    up_keys = keys[n_blk:2 * n_blk]
    k_down, k_up, k_main = keys[-3], keys[-2], keys[-1]
    return {
        "down_blocks": [_res_block_params(k, inplanes) for k in down_keys],
        "downsample_w": jax.random.normal(
            k_down, (2, 2, inplanes, n_next), jnp.float32) * 0.05,
        "main": build_params(k_main, depth - 1, n_next, cfg),
        "upsample_w": jax.random.normal(
            k_up, (2, 2, n_next, inplanes), jnp.float32) * 0.05,
        "up_blocks": [_res_block_params(k, inplanes) for k in up_keys],
    }


# ----------------------------------------------------------------------------
# Main
# ----------------------------------------------------------------------------

if __name__ == "__main__":
    cfg = dict(
        blocks_per_layer=1,
        residual=True,
        batch_norm=False,       # unused branch with this config
        bias=False,
        growth_rate="multiplicative",
        n_initial_filters=8,
        connections="sum",
    )
    depth = 2
    inplanes = 8
    batch, n_planes3d = 2, 3
    H = W = 16
    B = batch * n_planes3d      # plane axis folded into batch (filter=1 along it)

    key = jax.random.PRNGKey(0)
    k_param, k_x = jax.random.split(key)
    params = build_params(k_param, depth, inplanes, cfg)
    x = jax.random.normal(k_x, (B, H, W, inplanes), jnp.float32)

    out = unet_core_forward_jit(params, x, depth)
    out = jax.block_until_ready(out)

    ref = jax.block_until_ready(unet_core_ref(params, x, depth))

    assert out.shape == (B, H, W, inplanes), out.shape
    assert bool(jnp.all(jnp.isfinite(out)))
    max_err = float(jnp.max(jnp.abs(out - ref)))
    assert max_err < 1e-1, f"kernel vs reference max abs err = {max_err}"
    print("KERNEL_OK")
</pallas_src>

<mosaic_0001>
module attributes {stable_mosaic.version = 11 : i64} {
  func.func @kernel(%arg0: i32, %arg1: memref<3x16x128xf32, #tpu.memory_space<vmem>>, %arg2: memref<8x3x128x128xbf16, #tpu.memory_space<vmem>>, %arg3: memref<2x2x128x128xbf16, #tpu.memory_space<vmem>>, %arg4: memref<2x2x128x128xbf16, #tpu.memory_space<vmem>>, %arg5: memref<3x16x128xf32, #tpu.memory_space<vmem>>, %arg6: memref<3x18x128xf32, #tpu.memory_space<vmem>>, %arg7: memref<3x10x128xf32, #tpu.memory_space<vmem>>, %arg8: memref<3x8x128xf32, #tpu.memory_space<vmem>>) attributes {dimension_semantics = [#tpu.dimension_semantics<parallel>], iteration_bounds = array<i64: 2>, scalar_prefetch = 0 : i64, scratch_operands = 3 : i64, tpu.core_type = #tpu.core_type<tc>, window_params = [{transform_indices = @transform_0, window_bounds = array<i64: 3, 16, 128>}, {pipeline_mode = #tpu.pipeline_mode<synchronous>, transform_indices = @transform_1, window_bounds = array<i64: 8, 3, 128, 128>}, {pipeline_mode = #tpu.pipeline_mode<synchronous>, transform_indices = @transform_2, window_bounds = array<i64: 2, 2, 128, 128>}, {pipeline_mode = #tpu.pipeline_mode<synchronous>, transform_indices = @transform_3, window_bounds = array<i64: 2, 2, 128, 128>}, {transform_indices = @transform_4, window_bounds = array<i64: 3, 16, 128>}]} {
    %cst = arith.constant 0.000000e+00 : f32
    %0 = vector.broadcast %cst : f32 to vector<3x18x128xf32>
    %c0 = arith.constant 0 : index
    %c0_0 = arith.constant 0 : index
    %c0_1 = arith.constant 0 : index
    %1 = vector.load %arg6[%c0, %c0_0, %c0_1] : memref<3x18x128xf32, #tpu.memory_space<vmem>>, vector<3x18x128xf32>
    tpu.vector_store %arg6[%c0, %c0_0, %c0_1], %0 {strides = array<i32>} : memref<3x18x128xf32, #tpu.memory_space<vmem>>, vector<3x18x128xf32>,
    %cst_2 = arith.constant 0.000000e+00 : f32
    %2 = vector.broadcast %cst_2 : f32 to vector<3x10x128xf32>
    %c0_3 = arith.constant 0 : index
    %c0_4 = arith.constant 0 : index
    %c0_5 = arith.constant 0 : index
    %3 = vector.load %arg7[%c0_3, %c0_4, %c0_5] : memref<3x10x128xf32, #tpu.memory_space<vmem>>, vector<3x10x128xf32>
    tpu.vector_store %arg7[%c0_3, %c0_4, %c0_5], %2 {strides = array<i32>} : memref<3x10x128xf32, #tpu.memory_space<vmem>>, vector<3x10x128xf32>,
    %cst_6 = arith.constant 0.000000e+00 : f32
    %4 = vector.broadcast %cst_6 : f32 to vector<3x8x128xf32>
    %c0_7 = arith.constant 0 : index
    %c0_8 = arith.constant 0 : index
    %c0_9 = arith.constant 0 : index
    %5 = vector.load %arg8[%c0_7, %c0_8, %c0_9] : memref<3x8x128xf32, #tpu.memory_space<vmem>>, vector<3x8x128xf32>
    tpu.vector_store %arg8[%c0_7, %c0_8, %c0_9], %4 {strides = array<i32>} : memref<3x8x128xf32, #tpu.memory_space<vmem>>, vector<3x8x128xf32>,
    %c0_10 = arith.constant 0 : index
    %c0_11 = arith.constant 0 : index
    %c0_12 = arith.constant 0 : index
    %6 = vector.load %arg1[%c0_10, %c0_11, %c0_12] : memref<3x16x128xf32, #tpu.memory_space<vmem>>, vector<3x16x128xf32>
    %7 = vector.shape_cast %6 : vector<3x16x128xf32> to vector<48x128xf32>
    %8 = vector.shape_cast %7 : vector<48x128xf32> to vector<3x16x128xf32>
    %c0_13 = arith.constant 0 : index
    %c1 = arith.constant 1 : index
    %c0_14 = arith.constant 0 : index
    %9 = vector.load %arg6[%c0_13, %c1, %c0_14] : memref<3x18x128xf32, #tpu.memory_space<vmem>>, vector<3x16x128xf32>
    tpu.vector_store %arg6[%c0_13, %c1, %c0_14], %8 {strides = array<i32>} : memref<3x18x128xf32, #tpu.memory_space<vmem>>, vector<3x16x128xf32>,
    %c0_15 = arith.constant 0 : index
    %c1_16 = arith.constant 1 : index
    %c0_17 = arith.constant 0 : index
    %10 = vector.load %arg6[%c0_15, %c1_16, %c0_17] : memref<3x18x128xf32, #tpu.memory_space<vmem>>, vector<3x16x128xf32>
    %11 = vector.shape_cast %10 : vector<3x16x128xf32> to vector<48x128xf32>
    %cst_18 = arith.constant 0.000000e+00 : f32
    %12 = vector.broadcast %cst_18 : f32 to vector<48x128xf32>
    %c0_19 = arith.constant 0 : index
    %c0_20 = arith.constant 0 : index
    %c0_21 = arith.constant 0 : index
    %13 = vector.load %arg6[%c0_19, %c0_20, %c0_21] : memref<3x18x128xf32, #tpu.memory_space<vmem>>, vector<3x16x128xf32>
    %14 = vector.shape_cast %13 : vector<3x16x128xf32> to vector<48x128xf32>
    %15 = arith.truncf %14 : vector<48x128xf32> to vector<48x128xbf16>
    %c0_22 = arith.constant 0 : index
    %c0_23 = arith.constant 0 : index
    %c0_24 = arith.constant 0 : index
    %c0_25 = arith.constant 0 : index
    %16 = vector.load %arg2[%c0_22, %c0_23, %c0_24, %c0_25] : memref<8x3x128x128xbf16, #tpu.memory_space<vmem>>, vector<1x1x128x128xbf16>
    %17 = vector.shape_cast %16 : vector<1x1x128x128xbf16> to vector<128x128xbf16>
    %cst_26 = arith.constant dense<0.000000e+00> : vector<48x128xf32>
    %18 = tpu.matmul %15, %17, %cst_26 {dimension_numbers = #tpu.dot_dimension_numbers<[1], [0], [0], [1], [0, 0, 1, 1], [], []>} : vector<48x128xbf16>, vector<128x128xbf16>, vector<48x128xf32> -> vector<48x128xf32>
    %19 = arith.addf %12, %18 : vector<48x128xf32>
    %c0_27 = arith.constant 0 : index
    %c1_28 = arith.constant 1 : index
    %c0_29 = arith.constant 0 : index
    %20 = vector.load %arg6[%c0_27, %c1_28, %c0_29] : memref<3x18x128xf32, #tpu.memory_space<vmem>>, vector<3x16x128xf32>
    %21 = vector.shape_cast %20 : vector<3x16x128xf32> to vector<48x128xf32>
    %22 = arith.truncf %21 : vector<48x128xf32> to vector<48x128xbf16>
    %c0_30 = arith.constant 0 : index
    %c1_31 = arith.constant 1 : index
    %c0_32 = arith.constant 0 : index
    %c0_33 = arith.constant 0 : index
    %23 = vector.load %arg2[%c0_30, %c1_31, %c0_32, %c0_33] : memref<8x3x128x128xbf16, #tpu.memory_space<vmem>>, vector<1x1x128x128xbf16>
    %24 = vector.shape_cast %23 : vector<1x1x128x128xbf16> to vector<128x128xbf16>
    %cst_34 = arith.constant dense<0.000000e+00> : vector<48x128xf32>
    %25 = tpu.matmul %22, %24, %cst_34 {dimension_numbers = #tpu.dot_dimension_numbers<[1], [0], [0], [1], [0, 0, 1, 1], [], []>} : vector<48x128xbf16>, vector<128x128xbf16>, vector<48x128xf32> -> vector<48x128xf32>
    %26 = arith.addf %19, %25 : vector<48x128xf32>
    %c0_35 = arith.constant 0 : index
    %c2 = arith.constant 2 : index
    %c0_36 = arith.constant 0 : index
    %27 = vector.load %arg6[%c0_35, %c2, %c0_36] : memref<3x18x128xf32, #tpu.memory_space<vmem>>, vector<3x16x128xf32>
    %28 = vector.shape_cast %27 : vector<3x16x128xf32> to vector<48x128xf32>
    %29 = arith.truncf %28 : vector<48x128xf32> to vector<48x128xbf16>
    %c0_37 = arith.constant 0 : index
    %c2_38 = arith.constant 2 : index
    %c0_39 = arith.constant 0 : index
    %c0_40 = arith.constant 0 : index
    %30 = vector.load %arg2[%c0_37, %c2_38, %c0_39, %c0_40] : memref<8x3x128x128xbf16, #tpu.memory_space<vmem>>, vector<1x1x128x128xbf16>
    %31 = vector.shape_cast %30 : vector<1x1x128x128xbf16> to vector<128x128xbf16>
    %cst_41 = arith.constant dense<0.000000e+00> : vector<48x128xf32>
    %32 = tpu.matmul %29, %31, %cst_41 {dimension_numbers = #tpu.dot_dimension_numbers<[1], [0], [0], [1], [0, 0, 1, 1], [], []>} : vector<48x128xbf16>, vector<128x128xbf16>, vector<48x128xf32> -> vector<48x128xf32>
    %33 = arith.addf %26, %32 : vector<48x128xf32>
    %cst_42 = arith.constant 0.000000e+00 : f32
    %34 = vector.broadcast %cst_42 : f32 to vector<48x128xf32>
    %35 = arith.maximumf %33, %34 : vector<48x128xf32>
    %36 = vector.shape_cast %35 : vector<48x128xf32> to vector<3x16x128xf32>
    %c0_43 = arith.constant 0 : index
    %c1_44 = arith.constant 1 : index
    %c0_45 = arith.constant 0 : index
    %37 = vector.load %arg6[%c0_43, %c1_44, %c0_45] : memref<3x18x128xf32, #tpu.memory_space<vmem>>, vector<3x16x128xf32>
    tpu.vector_store %arg6[%c0_43, %c1_44, %c0_45], %36 {strides = array<i32>} : memref<3x18x128xf32, #tpu.memory_space<vmem>>, vector<3x16x128xf32>,
    %cst_46 = arith.constant 0.000000e+00 : f32
    %38 = vector.broadcast %cst_46 : f32 to vector<48x128xf32>
    %c0_47 = arith.constant 0 : index
    %c0_48 = arith.constant 0 : index
    %c0_49 = arith.constant 0 : index
    %39 = vector.load %arg6[%c0_47, %c0_48, %c0_49] : memref<3x18x128xf32, #tpu.memory_space<vmem>>, vector<3x16x128xf32>
    %40 = vector.shape_cast %39 : vector<3x16x128xf32> to vector<48x128xf32>
    %41 = arith.truncf %40 : vector<48x128xf32> to vector<48x128xbf16>
    %c1_50 = arith.constant 1 : index
    %c0_51 = arith.constant 0 : index
    %c0_52 = arith.constant 0 : index
    %c0_53 = arith.constant 0 : index
    %42 = vector.load %arg2[%c1_50, %c0_51, %c0_52, %c0_53] : memref<8x3x128x128xbf16, #tpu.memory_space<vmem>>, vector<1x1x128x128xbf16>
    %43 = vector.shape_cast %42 : vector<1x1x128x128xbf16> to vector<128x128xbf16>
    %cst_54 = arith.constant dense<0.000000e+00> : vector<48x128xf32>
    %44 = tpu.matmul %41, %43, %cst_54 {dimension_numbers = #tpu.dot_dimension_numbers<[1], [0], [0], [1], [0, 0, 1, 1], [], []>} : vector<48x128xbf16>, vector<128x128xbf16>, vector<48x128xf32> -> vector<48x128xf32>
    %45 = arith.addf %38, %44 : vector<48x128xf32>
    %c0_55 = arith.constant 0 : index
    %c1_56 = arith.constant 1 : index
    %c0_57 = arith.constant 0 : index
    %46 = vector.load %arg6[%c0_55, %c1_56, %c0_57] : memref<3x18x128xf32, #tpu.memory_space<vmem>>, vector<3x16x128xf32>
    %47 = vector.shape_cast %46 : vector<3x16x128xf32> to vector<48x128xf32>
    %48 = arith.truncf %47 : vector<48x128xf32> to vector<48x128xbf16>
    %c1_58 = arith.constant 1 : index
    %c1_59 = arith.constant 1 : index
    %c0_60 = arith.constant 0 : index
    %c0_61 = arith.constant 0 : index
    %49 = vector.load %arg2[%c1_58, %c1_59, %c0_60, %c0_61] : memref<8x3x128x128xbf16, #tpu.memory_space<vmem>>, vector<1x1x128x128xbf16>
    %50 = vector.shape_cast %49 : vector<1x1x128x128xbf16> to vector<128x128xbf16>
    %cst_62 = arith.constant dense<0.000000e+00> : vector<48x128xf32>
    %51 = tpu.matmul %48, %50, %cst_62 {dimension_numbers = #tpu.dot_dimension_numbers<[1], [0], [0], [1], [0, 0, 1, 1], [], []>} : vector<48x128xbf16>, vector<128x128xbf16>, vector<48x128xf32> -> vector<48x128xf32>
    %52 = arith.addf %45, %51 : vector<48x128xf32>
    %c0_63 = arith.constant 0 : index
    %c2_64 = arith.constant 2 : index
    %c0_65 = arith.constant 0 : index
    %53 = vector.load %arg6[%c0_63, %c2_64, %c0_65] : memref<3x18x128xf32, #tpu.memory_space<vmem>>, vector<3x16x128xf32>
    %54 = vector.shape_cast %53 : vector<3x16x128xf32> to vector<48x128xf32>
    %55 = arith.truncf %54 : vector<48x128xf32> to vector<48x128xbf16>
    %c1_66 = arith.constant 1 : index
    %c2_67 = arith.constant 2 : index
    %c0_68 = arith.constant 0 : index
    %c0_69 = arith.constant 0 : index
    %56 = vector.load %arg2[%c1_66, %c2_67, %c0_68, %c0_69] : memref<8x3x128x128xbf16, #tpu.memory_space<vmem>>, vector<1x1x128x128xbf16>
    %57 = vector.shape_cast %56 : vector<1x1x128x128xbf16> to vector<128x128xbf16>
    %cst_70 = arith.constant dense<0.000000e+00> : vector<48x128xf32>
    %58 = tpu.matmul %55, %57, %cst_70 {dimension_numbers = #tpu.dot_dimension_numbers<[1], [0], [0], [1], [0, 0, 1, 1], [], []>} : vector<48x128xbf16>, vector<128x128xbf16>, vector<48x128xf32> -> vector<48x128xf32>
    %59 = arith.addf %52, %58 : vector<48x128xf32>
    %60 = arith.addf %59, %11 : vector<48x128xf32>
    %cst_71 = arith.constant 0.000000e+00 : f32
    %61 = vector.broadcast %cst_71 : f32 to vector<48x128xf32>
    %62 = arith.maximumf %60, %61 : vector<48x128xf32>
    %63 = vector.shape_cast %62 : vector<48x128xf32> to vector<3x16x128xf32>
    %c0_72 = arith.constant 0 : index
    %c1_73 = arith.constant 1 : index
    %c0_74 = arith.constant 0 : index
    %64 = vector.load %arg6[%c0_72, %c1_73, %c0_74] : memref<3x18x128xf32, #tpu.memory_space<vmem>>, vector<3x16x128xf32>
    tpu.vector_store %arg6[%c0_72, %c1_73, %c0_74], %63 {strides = array<i32>} : memref<3x18x128xf32, #tpu.memory_space<vmem>>, vector<3x16x128xf32>,
    %65 = arith.truncf %62 : vector<48x128xf32> to vector<48x128xbf16>
    %c0_75 = arith.constant 0 : index
    %c0_76 = arith.constant 0 : index
    %c0_77 = arith.constant 0 : index
    %c0_78 = arith.constant 0 : index
    %66 = vector.load %arg3[%c0_75, %c0_76, %c0_77, %c0_78] : memref<2x2x128x128xbf16, #tpu.memory_space<vmem>>, vector<1x1x128x128xbf16>
    %67 = vector.shape_cast %66 : vector<1x1x128x128xbf16> to vector<128x128xbf16>
    %cst_79 = arith.constant dense<0.000000e+00> : vector<48x128xf32>
    %68 = tpu.matmul %65, %67, %cst_79 {dimension_numbers = #tpu.dot_dimension_numbers<[1], [0], [0], [1], [0, 0, 1, 1], [], []>} : vector<48x128xbf16>, vector<128x128xbf16>, vector<48x128xf32> -> vector<48x128xf32>
    %69 = vector.shape_cast %68 : vector<48x128xf32> to vector<3x16x128xf32>
    %c0_80 = arith.constant 0 : index
    %c1_81 = arith.constant 1 : index
    %c0_82 = arith.constant 0 : index
    %c0_83 = arith.constant 0 : index
    %70 = vector.load %arg3[%c0_80, %c1_81, %c0_82, %c0_83] : memref<2x2x128x128xbf16, #tpu.memory_space<vmem>>, vector<1x1x128x128xbf16>
    %71 = vector.shape_cast %70 : vector<1x1x128x128xbf16> to vector<128x128xbf16>
    %cst_84 = arith.constant dense<0.000000e+00> : vector<48x128xf32>
    %72 = tpu.matmul %65, %71, %cst_84 {dimension_numbers = #tpu.dot_dimension_numbers<[1], [0], [0], [1], [0, 0, 1, 1], [], []>} : vector<48x128xbf16>, vector<128x128xbf16>, vector<48x128xf32> -> vector<48x128xf32>
    %73 = vector.shape_cast %72 : vector<48x128xf32> to vector<3x16x128xf32>
    %74 = vector.extract_strided_slice %69 {offsets = [0, 0, 0], sizes = [3, 1, 128], strides = [1, 1, 1]} : vector<3x16x128xf32> to vector<3x1x128xf32>
    %75 = vector.extract_strided_slice %73 {offsets = [0, 1, 0], sizes = [3, 1, 128], strides = [1, 1, 1]} : vector<3x16x128xf32> to vector<3x1x128xf32>
    %76 = arith.addf %74, %75 : vector<3x1x128xf32>
    %cst_85 = arith.constant 0.000000e+00 : f32
    %77 = vector.broadcast %cst_85 : f32 to vector<3x1x128xf32>
    %78 = arith.maximumf %76, %77 : vector<3x1x128xf32>
    %c0_86 = arith.constant 0 : index
    %c1_87 = arith.constant 1 : index
    %c0_88 = arith.constant 0 : index
    %79 = vector.load %arg7[%c0_86, %c1_87, %c0_88] : memref<3x10x128xf32, #tpu.memory_space<vmem>>, vector<3x1x128xf32>
    tpu.vector_store %arg7[%c0_86, %c1_87, %c0_88], %78 {strides = array<i32>} : memref<3x10x128xf32, #tpu.memory_space<vmem>>, vector<3x1x128xf32>,
    %80 = vector.extract_strided_slice %69 {offsets = [0, 2, 0], sizes = [3, 1, 128], strides = [1, 1, 1]} : vector<3x16x128xf32> to vector<3x1x128xf32>
    %81 = vector.extract_strided_slice %73 {offsets = [0, 3, 0], sizes = [3, 1, 128], strides = [1, 1, 1]} : vector<3x16x128xf32> to vector<3x1x128xf32>
    %82 = arith.addf %80, %81 : vector<3x1x128xf32>
    %cst_89 = arith.constant 0.000000e+00 : f32
    %83 = vector.broadcast %cst_89 : f32 to vector<3x1x128xf32>
    %84 = arith.maximumf %82, %83 : vector<3x1x128xf32>
    %c0_90 = arith.constant 0 : index
    %c2_91 = arith.constant 2 : index
    %c0_92 = arith.constant 0 : index
    %85 = vector.load %arg7[%c0_90, %c2_91, %c0_92] : memref<3x10x128xf32, #tpu.memory_space<vmem>>, vector<3x1x128xf32>
    tpu.vector_store %arg7[%c0_90, %c2_91, %c0_92], %84 {strides = array<i32>} : memref<3x10x128xf32, #tpu.memory_space<vmem>>, vector<3x1x128xf32>,
    %86 = vector.extract_strided_slice %69 {offsets = [0, 4, 0], sizes = [3, 1, 128], strides = [1, 1, 1]} : vector<3x16x128xf32> to vector<3x1x128xf32>
    %87 = vector.extract_strided_slice %73 {offsets = [0, 5, 0], sizes = [3, 1, 128], strides = [1, 1, 1]} : vector<3x16x128xf32> to vector<3x1x128xf32>
    %88 = arith.addf %86, %87 : vector<3x1x128xf32>
    %cst_93 = arith.constant 0.000000e+00 : f32
    %89 = vector.broadcast %cst_93 : f32 to vector<3x1x128xf32>
    %90 = arith.maximumf %88, %89 : vector<3x1x128xf32>
    %c0_94 = arith.constant 0 : index
    %c3 = arith.constant 3 : index
    %c0_95 = arith.constant 0 : index
    %91 = vector.load %arg7[%c0_94, %c3, %c0_95] : memref<3x10x128xf32, #tpu.memory_space<vmem>>, vector<3x1x128xf32>
    tpu.vector_store %arg7[%c0_94, %c3, %c0_95], %90 {strides = array<i32>} : memref<3x10x128xf32, #tpu.memory_space<vmem>>, vector<3x1x128xf32>,
    %92 = vector.extract_strided_slice %69 {offsets = [0, 6, 0], sizes = [3, 1, 128], strides = [1, 1, 1]} : vector<3x16x128xf32> to vector<3x1x128xf32>
    %93 = vector.extract_strided_slice %73 {offsets = [0, 7, 0], sizes = [3, 1, 128], strides = [1, 1, 1]} : vector<3x16x128xf32> to vector<3x1x128xf32>
    %94 = arith.addf %92, %93 : vector<3x1x128xf32>
    %cst_96 = arith.constant 0.000000e+00 : f32
    %95 = vector.broadcast %cst_96 : f32 to vector<3x1x128xf32>
    %96 = arith.maximumf %94, %95 : vector<3x1x128xf32>
    %c0_97 = arith.constant 0 : index
    %c4 = arith.constant 4 : index
    %c0_98 = arith.constant 0 : index
    %97 = vector.load %arg7[%c0_97, %c4, %c0_98] : memref<3x10x128xf32, #tpu.memory_space<vmem>>, vector<3x1x128xf32>
    tpu.vector_store %arg7[%c0_97, %c4, %c0_98], %96 {strides = array<i32>} : memref<3x10x128xf32, #tpu.memory_space<vmem>>, vector<3x1x128xf32>,
    %98 = vector.extract_strided_slice %69 {offsets = [0, 8, 0], sizes = [3, 1, 128], strides = [1, 1, 1]} : vector<3x16x128xf32> to vector<3x1x128xf32>
    %99 = vector.extract_strided_slice %73 {offsets = [0, 9, 0], sizes = [3, 1, 128], strides = [1, 1, 1]} : vector<3x16x128xf32> to vector<3x1x128xf32>
    %100 = arith.addf %98, %99 : vector<3x1x128xf32>
    %cst_99 = arith.constant 0.000000e+00 : f32
    %101 = vector.broadcast %cst_99 : f32 to vector<3x1x128xf32>
    %102 = arith.maximumf %100, %101 : vector<3x1x128xf32>
    %c0_100 = arith.constant 0 : index
    %c5 = arith.constant 5 : index
    %c0_101 = arith.constant 0 : index
    %103 = vector.load %arg7[%c0_100, %c5, %c0_101] : memref<3x10x128xf32, #tpu.memory_space<vmem>>, vector<3x1x128xf32>
    tpu.vector_store %arg7[%c0_100, %c5, %c0_101], %102 {strides = array<i32>} : memref<3x10x128xf32, #tpu.memory_space<vmem>>, vector<3x1x128xf32>,
    %104 = vector.extract_strided_slice %69 {offsets = [0, 10, 0], sizes = [3, 1, 128], strides = [1, 1, 1]} : vector<3x16x128xf32> to vector<3x1x128xf32>
    %105 = vector.extract_strided_slice %73 {offsets = [0, 11, 0], sizes = [3, 1, 128], strides = [1, 1, 1]} : vector<3x16x128xf32> to vector<3x1x128xf32>
    %106 = arith.addf %104, %105 : vector<3x1x128xf32>
    %cst_102 = arith.constant 0.000000e+00 : f32
    %107 = vector.broadcast %cst_102 : f32 to vector<3x1x128xf32>
    %108 = arith.maximumf %106, %107 : vector<3x1x128xf32>
    %c0_103 = arith.constant 0 : index
    %c6 = arith.constant 6 : index
    %c0_104 = arith.constant 0 : index
    %109 = vector.load %arg7[%c0_103, %c6, %c0_104] : memref<3x10x128xf32, #tpu.memory_space<vmem>>, vector<3x1x128xf32>
    tpu.vector_store %arg7[%c0_103, %c6, %c0_104], %108 {strides = array<i32>} : memref<3x10x128xf32, #tpu.memory_space<vmem>>, vector<3x1x128xf32>,
    %110 = vector.extract_strided_slice %69 {offsets = [0, 12, 0], sizes = [3, 1, 128], strides = [1, 1, 1]} : vector<3x16x128xf32> to vector<3x1x128xf32>
    %111 = vector.extract_strided_slice %73 {offsets = [0, 13, 0], sizes = [3, 1, 128], strides = [1, 1, 1]} : vector<3x16x128xf32> to vector<3x1x128xf32>
    %112 = arith.addf %110, %111 : vector<3x1x128xf32>
    %cst_105 = arith.constant 0.000000e+00 : f32
    %113 = vector.broadcast %cst_105 : f32 to vector<3x1x128xf32>
    %114 = arith.maximumf %112, %113 : vector<3x1x128xf32>
    %c0_106 = arith.constant 0 : index
    %c7 = arith.constant 7 : index
    %c0_107 = arith.constant 0 : index
    %115 = vector.load %arg7[%c0_106, %c7, %c0_107] : memref<3x10x128xf32, #tpu.memory_space<vmem>>, vector<3x1x128xf32>
    tpu.vector_store %arg7[%c0_106, %c7, %c0_107], %114 {strides = array<i32>} : memref<3x10x128xf32, #tpu.memory_space<vmem>>, vector<3x1x128xf32>,
    %116 = vector.extract_strided_slice %69 {offsets = [0, 14, 0], sizes = [3, 1, 128], strides = [1, 1, 1]} : vector<3x16x128xf32> to vector<3x1x128xf32>
    %117 = vector.extract_strided_slice %73 {offsets = [0, 15, 0], sizes = [3, 1, 128], strides = [1, 1, 1]} : vector<3x16x128xf32> to vector<3x1x128xf32>
    %118 = arith.addf %116, %117 : vector<3x1x128xf32>
    %cst_108 = arith.constant 0.000000e+00 : f32
    %119 = vector.broadcast %cst_108 : f32 to vector<3x1x128xf32>
    %120 = arith.maximumf %118, %119 : vector<3x1x128xf32>
    %c0_109 = arith.constant 0 : index
    %c8 = arith.constant 8 : index
    %c0_110 = arith.constant 0 : index
    %121 = vector.load %arg7[%c0_109, %c8, %c0_110] : memref<3x10x128xf32, #tpu.memory_space<vmem>>, vector<3x1x128xf32>
    tpu.vector_store %arg7[%c0_109, %c8, %c0_110], %120 {strides = array<i32>} : memref<3x10x128xf32, #tpu.memory_space<vmem>>, vector<3x1x128xf32>,
    %c0_111 = arith.constant 0 : index
    %c1_112 = arith.constant 1 : index
    %c0_113 = arith.constant 0 : index
    %122 = vector.load %arg7[%c0_111, %c1_112, %c0_113] : memref<3x10x128xf32, #tpu.memory_space<vmem>>, vector<3x8x128xf32>
    %123 = vector.shape_cast %122 : vector<3x8x128xf32> to vector<24x128xf32>
    %cst_114 = arith.constant 0.000000e+00 : f32
    %124 = vector.broadcast %cst_114 : f32 to vector<24x128xf32>
    %c0_115 = arith.constant 0 : index
    %c0_116 = arith.constant 0 : index
    %c0_117 = arith.constant 0 : index
    %125 = vector.load %arg7[%c0_115, %c0_116, %c0_117] : memref<3x10x128xf32, #tpu.memory_space<vmem>>, vector<3x8x128xf32>
    %126 = vector.shape_cast %125 : vector<3x8x128xf32> to vector<24x128xf32>
    %127 = arith.truncf %126 : vector<24x128xf32> to vector<24x128xbf16>
    %c4_118 = arith.constant 4 : index
    %c0_119 = arith.constant 0 : index
    %c0_120 = arith.constant 0 : index
    %c0_121 = arith.constant 0 : index
    %128 = vector.load %arg2[%c4_118, %c0_119, %c0_120, %c0_121] : memref<8x3x128x128xbf16, #tpu.memory_space<vmem>>, vector<1x1x128x128xbf16>
    %129 = vector.shape_cast %128 : vector<1x1x128x128xbf16> to vector<128x128xbf16>
    %cst_122 = arith.constant dense<0.000000e+00> : vector<24x128xf32>
    %130 = tpu.matmul %127, %129, %cst_122 {dimension_numbers = #tpu.dot_dimension_numbers<[1], [0], [0], [1], [0, 0, 1, 1], [], []>} : vector<24x128xbf16>, vector<128x128xbf16>, vector<24x128xf32> -> vector<24x128xf32>
    %131 = arith.addf %124, %130 : vector<24x128xf32>
    %c0_123 = arith.constant 0 : index
    %c1_124 = arith.constant 1 : index
    %c0_125 = arith.constant 0 : index
    %132 = vector.load %arg7[%c0_123, %c1_124, %c0_125] : memref<3x10x128xf32, #tpu.memory_space<vmem>>, vector<3x8x128xf32>
    %133 = vector.shape_cast %132 : vector<3x8x128xf32> to vector<24x128xf32>
    %134 = arith.truncf %133 : vector<24x128xf32> to vector<24x128xbf16>
    %c4_126 = arith.constant 4 : index
    %c1_127 = arith.constant 1 : index
    %c0_128 = arith.constant 0 : index
    %c0_129 = arith.constant 0 : index
    %135 = vector.load %arg2[%c4_126, %c1_127, %c0_128, %c0_129] : memref<8x3x128x128xbf16, #tpu.memory_space<vmem>>, vector<1x1x128x128xbf16>
    %136 = vector.shape_cast %135 : vector<1x1x128x128xbf16> to vector<128x128xbf16>
    %cst_130 = arith.constant dense<0.000000e+00> : vector<24x128xf32>
    %137 = tpu.matmul %134, %136, %cst_130 {dimension_numbers = #tpu.dot_dimension_numbers<[1], [0], [0], [1], [0, 0, 1, 1], [], []>} : vector<24x128xbf16>, vector<128x128xbf16>, vector<24x128xf32> -> vector<24x128xf32>
    %138 = arith.addf %131, %137 : vector<24x128xf32>
    %c0_131 = arith.constant 0 : index
    %c2_132 = arith.constant 2 : index
    %c0_133 = arith.constant 0 : index
    %139 = vector.load %arg7[%c0_131, %c2_132, %c0_133] : memref<3x10x128xf32, #tpu.memory_space<vmem>>, vector<3x8x128xf32>
    %140 = vector.shape_cast %139 : vector<3x8x128xf32> to vector<24x128xf32>
    %141 = arith.truncf %140 : vector<24x128xf32> to vector<24x128xbf16>
    %c4_134 = arith.constant 4 : index
    %c2_135 = arith.constant 2 : index
    %c0_136 = arith.constant 0 : index
    %c0_137 = arith.constant 0 : index
    %142 = vector.load %arg2[%c4_134, %c2_135, %c0_136, %c0_137] : memref<8x3x128x128xbf16, #tpu.memory_space<vmem>>, vector<1x1x128x128xbf16>
    %143 = vector.shape_cast %142 : vector<1x1x128x128xbf16> to vector<128x128xbf16>
    %cst_138 = arith.constant dense<0.000000e+00> : vector<24x128xf32>
    %144 = tpu.matmul %141, %143, %cst_138 {dimension_numbers = #tpu.dot_dimension_numbers<[1], [0], [0], [1], [0, 0, 1, 1], [], []>} : vector<24x128xbf16>, vector<128x128xbf16>, vector<24x128xf32> -> vector<24x128xf32>
    %145 = arith.addf %138, %144 : vector<24x128xf32>
    %cst_139 = arith.constant 0.000000e+00 : f32
    %146 = vector.broadcast %cst_139 : f32 to vector<24x128xf32>
    %147 = arith.maximumf %145, %146 : vector<24x128xf32>
    %148 = vector.shape_cast %147 : vector<24x128xf32> to vector<3x8x128xf32>
    %c0_140 = arith.constant 0 : index
    %c1_141 = arith.constant 1 : index
    %c0_142 = arith.constant 0 : index
    %149 = vector.load %arg7[%c0_140, %c1_141, %c0_142] : memref<3x10x128xf32, #tpu.memory_space<vmem>>, vector<3x8x128xf32>
    tpu.vector_store %arg7[%c0_140, %c1_141, %c0_142], %148 {strides = array<i32>} : memref<3x10x128xf32, #tpu.memory_space<vmem>>, vector<3x8x128xf32>,
    %cst_143 = arith.constant 0.000000e+00 : f32
    %150 = vector.broadcast %cst_143 : f32 to vector<24x128xf32>
    %c0_144 = arith.constant 0 : index
    %c0_145 = arith.constant 0 : index
    %c0_146 = arith.constant 0 : index
    %151 = vector.load %arg7[%c0_144, %c0_145, %c0_146] : memref<3x10x128xf32, #tpu.memory_space<vmem>>, vector<3x8x128xf32>
    %152 = vector.shape_cast %151 : vector<3x8x128xf32> to vector<24x128xf32>
    %153 = arith.truncf %152 : vector<24x128xf32> to vector<24x128xbf16>
    %c5_147 = arith.constant 5 : index
    %c0_148 = arith.constant 0 : index
    %c0_149 = arith.constant 0 : index
    %c0_150 = arith.constant 0 : index
    %154 = vector.load %arg2[%c5_147, %c0_148, %c0_149, %c0_150] : memref<8x3x128x128xbf16, #tpu.memory_space<vmem>>, vector<1x1x128x128xbf16>
    %155 = vector.shape_cast %154 : vector<1x1x128x128xbf16> to vector<128x128xbf16>
    %cst_151 = arith.constant dense<0.000000e+00> : vector<24x128xf32>
    %156 = tpu.matmul %153, %155, %cst_151 {dimension_numbers = #tpu.dot_dimension_numbers<[1], [0], [0], [1], [0, 0, 1, 1], [], []>} : vector<24x128xbf16>, vector<128x128xbf16>, vector<24x128xf32> -> vector<24x128xf32>
    %157 = arith.addf %150, %156 : vector<24x128xf32>
    %c0_152 = arith.constant 0 : index
    %c1_153 = arith.constant 1 : index
    %c0_154 = arith.constant 0 : index
    %158 = vector.load %arg7[%c0_152, %c1_153, %c0_154] : memref<3x10x128xf32, #tpu.memory_space<vmem>>, vector<3x8x128xf32>
    %159 = vector.shape_cast %158 : vector<3x8x128xf32> to vector<24x128xf32>
    %160 = arith.truncf %159 : vector<24x128xf32> to vector<24x128xbf16>
    %c5_155 = arith.constant 5 : index
    %c1_156 = arith.constant 1 : index
    %c0_157 = arith.constant 0 : index
    %c0_158 = arith.constant 0 : index
    %161 = vector.load %arg2[%c5_155, %c1_156, %c0_157, %c0_158] : memref<8x3x128x128xbf16, #tpu.memory_space<vmem>>, vector<1x1x128x128xbf16>
    %162 = vector.shape_cast %161 : vector<1x1x128x128xbf16> to vector<128x128xbf16>
    %cst_159 = arith.constant dense<0.000000e+00> : vector<24x128xf32>
    %163 = tpu.matmul %160, %162, %cst_159 {dimension_numbers = #tpu.dot_dimension_numbers<[1], [0], [0], [1], [0, 0, 1, 1], [], []>} : vector<24x128xbf16>, vector<128x128xbf16>, vector<24x128xf32> -> vector<24x128xf32>
    %164 = arith.addf %157, %163 : vector<24x128xf32>
    %c0_160 = arith.constant 0 : index
    %c2_161 = arith.constant 2 : index
    %c0_162 = arith.constant 0 : index
    %165 = vector.load %arg7[%c0_160, %c2_161, %c0_162] : memref<3x10x128xf32, #tpu.memory_space<vmem>>, vector<3x8x128xf32>
    %166 = vector.shape_cast %165 : vector<3x8x128xf32> to vector<24x128xf32>
    %167 = arith.truncf %166 : vector<24x128xf32> to vector<24x128xbf16>
    %c5_163 = arith.constant 5 : index
    %c2_164 = arith.constant 2 : index
    %c0_165 = arith.constant 0 : index
    %c0_166 = arith.constant 0 : index
    %168 = vector.load %arg2[%c5_163, %c2_164, %c0_165, %c0_166] : memref<8x3x128x128xbf16, #tpu.memory_space<vmem>>, vector<1x1x128x128xbf16>
    %169 = vector.shape_cast %168 : vector<1x1x128x128xbf16> to vector<128x128xbf16>
    %cst_167 = arith.constant dense<0.000000e+00> : vector<24x128xf32>
    %170 = tpu.matmul %167, %169, %cst_167 {dimension_numbers = #tpu.dot_dimension_numbers<[1], [0], [0], [1], [0, 0, 1, 1], [], []>} : vector<24x128xbf16>, vector<128x128xbf16>, vector<24x128xf32> -> vector<24x128xf32>
    %171 = arith.addf %164, %170 : vector<24x128xf32>
    %172 = arith.addf %171, %123 : vector<24x128xf32>
    %cst_168 = arith.constant 0.000000e+00 : f32
    %173 = vector.broadcast %cst_168 : f32 to vector<24x128xf32>
    %174 = arith.maximumf %172, %173 : vector<24x128xf32>
    %175 = vector.shape_cast %174 : vector<24x128xf32> to vector<3x8x128xf32>
    %c0_169 = arith.constant 0 : index
    %c1_170 = arith.constant 1 : index
    %c0_171 = arith.constant 0 : index
    %176 = vector.load %arg7[%c0_169, %c1_170, %c0_171] : memref<3x10x128xf32, #tpu.memory_space<vmem>>, vector<3x8x128xf32>
    tpu.vector_store %arg7[%c0_169, %c1_170, %c0_171], %175 {strides = array<i32>} : memref<3x10x128xf32, #tpu.memory_space<vmem>>, vector<3x8x128xf32>,
    %177 = arith.truncf %174 : vector<24x128xf32> to vector<24x128xbf16>
    %c1_172 = arith.constant 1 : index
    %c0_173 = arith.constant 0 : index
    %c0_174 = arith.constant 0 : index
    %c0_175 = arith.constant 0 : index
    %178 = vector.load %arg3[%c1_172, %c0_173, %c0_174, %c0_175] : memref<2x2x128x128xbf16, #tpu.memory_space<vmem>>, vector<1x1x128x128xbf16>
    %179 = vector.shape_cast %178 : vector<1x1x128x128xbf16> to vector<128x128xbf16>
    %cst_176 = arith.constant dense<0.000000e+00> : vector<24x128xf32>
    %180 = tpu.matmul %177, %179, %cst_176 {dimension_numbers = #tpu.dot_dimension_numbers<[1], [0], [0], [1], [0, 0, 1, 1], [], []>} : vector<24x128xbf16>, vector<128x128xbf16>, vector<24x128xf32> -> vector<24x128xf32>
    %181 = vector.shape_cast %180 : vector<24x128xf32> to vector<3x8x128xf32>
    %c1_177 = arith.constant 1 : index
    %c1_178 = arith.constant 1 : index
    %c0_179 = arith.constant 0 : index
    %c0_180 = arith.constant 0 : index
    %182 = vector.load %arg3[%c1_177, %c1_178, %c0_179, %c0_180] : memref<2x2x128x128xbf16, #tpu.memory_space<vmem>>, vector<1x1x128x128xbf16>
    %183 = vector.shape_cast %182 : vector<1x1x128x128xbf16> to vector<128x128xbf16>
    %cst_181 = arith.constant dense<0.000000e+00> : vector<24x128xf32>
    %184 = tpu.matmul %177, %183, %cst_181 {dimension_numbers = #tpu.dot_dimension_numbers<[1], [0], [0], [1], [0, 0, 1, 1], [], []>} : vector<24x128xbf16>, vector<128x128xbf16>, vector<24x128xf32> -> vector<24x128xf32>
    %185 = vector.shape_cast %184 : vector<24x128xf32> to vector<3x8x128xf32>
    %186 = vector.extract_strided_slice %181 {offsets = [0, 0, 0], sizes = [3, 1, 128], strides = [1, 1, 1]} : vector<3x8x128xf32> to vector<3x1x128xf32>
    %187 = vector.extract_strided_slice %185 {offsets = [0, 1, 0], sizes = [3, 1, 128], strides = [1, 1, 1]} : vector<3x8x128xf32> to vector<3x1x128xf32>
    %188 = arith.addf %186, %187 : vector<3x1x128xf32>
    %cst_182 = arith.constant 0.000000e+00 : f32
    %189 = vector.broadcast %cst_182 : f32 to vector<3x1x128xf32>
    %190 = arith.maximumf %188, %189 : vector<3x1x128xf32>
    %c0_183 = arith.constant 0 : index
    %c0_184 = arith.constant 0 : index
    %c0_185 = arith.constant 0 : index
    %191 = vector.load %arg8[%c0_183, %c0_184, %c0_185] : memref<3x8x128xf32, #tpu.memory_space<vmem>>, vector<3x1x128xf32>
    tpu.vector_store %arg8[%c0_183, %c0_184, %c0_185], %190 {strides = array<i32>} : memref<3x8x128xf32, #tpu.memory_space<vmem>>, vector<3x1x128xf32>,
    %192 = vector.extract_strided_slice %181 {offsets = [0, 2, 0], sizes = [3, 1, 128], strides = [1, 1, 1]} : vector<3x8x128xf32> to vector<3x1x128xf32>
    %193 = vector.extract_strided_slice %185 {offsets = [0, 3, 0], sizes = [3, 1, 128], strides = [1, 1, 1]} : vector<3x8x128xf32> to vector<3x1x128xf32>
    %194 = arith.addf %192, %193 : vector<3x1x128xf32>
    %cst_186 = arith.constant 0.000000e+00 : f32
    %195 = vector.broadcast %cst_186 : f32 to vector<3x1x128xf32>
    %196 = arith.maximumf %194, %195 : vector<3x1x128xf32>
    %c0_187 = arith.constant 0 : index
    %c1_188 = arith.constant 1 : index
    %c0_189 = arith.constant 0 : index
    %197 = vector.load %arg8[%c0_187, %c1_188, %c0_189] : memref<3x8x128xf32, #tpu.memory_space<vmem>>, vector<3x1x128xf32>
    tpu.vector_store %arg8[%c0_187, %c1_188, %c0_189], %196 {strides = array<i32>} : memref<3x8x128xf32, #tpu.memory_space<vmem>>, vector<3x1x128xf32>,
    %198 = vector.extract_strided_slice %181 {offsets = [0, 4, 0], sizes = [3, 1, 128], strides = [1, 1, 1]} : vector<3x8x128xf32> to vector<3x1x128xf32>
    %199 = vector.extract_strided_slice %185 {offsets = [0, 5, 0], sizes = [3, 1, 128], strides = [1, 1, 1]} : vector<3x8x128xf32> to vector<3x1x128xf32>
    %200 = arith.addf %198, %199 : vector<3x1x128xf32>
    %cst_190 = arith.constant 0.000000e+00 : f32
    %201 = vector.broadcast %cst_190 : f32 to vector<3x1x128xf32>
    %202 = arith.maximumf %200, %201 : vector<3x1x128xf32>
    %c0_191 = arith.constant 0 : index
    %c2_192 = arith.constant 2 : index
    %c0_193 = arith.constant 0 : index
    %203 = vector.load %arg8[%c0_191, %c2_192, %c0_193] : memref<3x8x128xf32, #tpu.memory_space<vmem>>, vector<3x1x128xf32>
    tpu.vector_store %arg8[%c0_191, %c2_192, %c0_193], %202 {strides = array<i32>} : memref<3x8x128xf32, #tpu.memory_space<vmem>>, vector<3x1x128xf32>,
    %204 = vector.extract_strided_slice %181 {offsets = [0, 6, 0], sizes = [3, 1, 128], strides = [1, 1, 1]} : vector<3x8x128xf32> to vector<3x1x128xf32>
    %205 = vector.extract_strided_slice %185 {offsets = [0, 7, 0], sizes = [3, 1, 128], strides = [1, 1, 1]} : vector<3x8x128xf32> to vector<3x1x128xf32>
    %206 = arith.addf %204, %205 : vector<3x1x128xf32>
    %cst_194 = arith.constant 0.000000e+00 : f32
    %207 = vector.broadcast %cst_194 : f32 to vector<3x1x128xf32>
    %208 = arith.maximumf %206, %207 : vector<3x1x128xf32>
    %c0_195 = arith.constant 0 : index
    %c3_196 = arith.constant 3 : index
    %c0_197 = arith.constant 0 : index
    %209 = vector.load %arg8[%c0_195, %c3_196, %c0_197] : memref<3x8x128xf32, #tpu.memory_space<vmem>>, vector<3x1x128xf32>
    tpu.vector_store %arg8[%c0_195, %c3_196, %c0_197], %208 {strides = array<i32>} : memref<3x8x128xf32, #tpu.memory_space<vmem>>, vector<3x1x128xf32>,
    %c0_198 = arith.constant 0 : index
    %c0_199 = arith.constant 0 : index
    %c0_200 = arith.constant 0 : index
    %210 = vector.load %arg8[%c0_198, %c0_199, %c0_200] : memref<3x8x128xf32, #tpu.memory_space<vmem>>, vector<3x8x128xf32>
    %211 = vector.shape_cast %210 : vector<3x8x128xf32> to vector<24x128xf32>
    %212 = arith.truncf %211 : vector<24x128xf32> to vector<24x128xbf16>
    %c1_201 = arith.constant 1 : index
    %c0_202 = arith.constant 0 : index
    %c0_203 = arith.constant 0 : index
    %c0_204 = arith.constant 0 : index
    %213 = vector.load %arg4[%c1_201, %c0_202, %c0_203, %c0_204] : memref<2x2x128x128xbf16, #tpu.memory_space<vmem>>, vector<1x1x128x128xbf16>
    %214 = vector.shape_cast %213 : vector<1x1x128x128xbf16> to vector<128x128xbf16>
    %cst_205 = arith.constant dense<0.000000e+00> : vector<24x128xf32>
    %215 = tpu.matmul %212, %214, %cst_205 {dimension_numbers = #tpu.dot_dimension_numbers<[1], [0], [0], [1], [0, 0, 1, 1], [], []>} : vector<24x128xbf16>, vector<128x128xbf16>, vector<24x128xf32> -> vector<24x128xf32>
    %216 = vector.shape_cast %215 : vector<24x128xf32> to vector<3x8x128xf32>
    %c1_206 = arith.constant 1 : index
    %c1_207 = arith.constant 1 : index
    %c0_208 = arith.constant 0 : index
    %c0_209 = arith.constant 0 : index
    %217 = vector.load %arg4[%c1_206, %c1_207, %c0_208, %c0_209] : memref<2x2x128x128xbf16, #tpu.memory_space<vmem>>, vector<1x1x128x128xbf16>
    %218 = vector.shape_cast %217 : vector<1x1x128x128xbf16> to vector<128x128xbf16>
    %cst_210 = arith.constant dense<0.000000e+00> : vector<24x128xf32>
    %219 = tpu.matmul %212, %218, %cst_210 {dimension_numbers = #tpu.dot_dimension_numbers<[1], [0], [0], [1], [0, 0, 1, 1], [], []>} : vector<24x128xbf16>, vector<128x128xbf16>, vector<24x128xf32> -> vector<24x128xf32>
    %220 = vector.shape_cast %219 : vector<24x128xf32> to vector<3x8x128xf32>
    %c0_211 = arith.constant 0 : index
    %c1_212 = arith.constant 1 : index
    %c0_213 = arith.constant 0 : index
    %221 = vector.load %arg7[%c0_211, %c1_212, %c0_213] : memref<3x10x128xf32, #tpu.memory_space<vmem>>, vector<3x1x128xf32>
    %c0_214 = arith.constant 0 : index
    %c2_215 = arith.constant 2 : index
    %c0_216 = arith.constant 0 : index
    %222 = vector.load %arg7[%c0_214, %c2_215, %c0_216] : memref<3x10x128xf32, #tpu.memory_space<vmem>>, vector<3x1x128xf32>
    %223 = vector.extract_strided_slice %216 {offsets = [0, 0, 0], sizes = [3, 1, 128], strides = [1, 1, 1]} : vector<3x8x128xf32> to vector<3x1x128xf32>
    %cst_217 = arith.constant 0.000000e+00 : f32
    %224 = vector.broadcast %cst_217 : f32 to vector<3x1x128xf32>
    %225 = arith.maximumf %223, %224 : vector<3x1x128xf32>
    %226 = arith.addf %225, %221 : vector<3x1x128xf32>
    %227 = vector.extract_strided_slice %220 {offsets = [0, 0, 0], sizes = [3, 1, 128], strides = [1, 1, 1]} : vector<3x8x128xf32> to vector<3x1x128xf32>
    %cst_218 = arith.constant 0.000000e+00 : f32
    %228 = vector.broadcast %cst_218 : f32 to vector<3x1x128xf32>
    %229 = arith.maximumf %227, %228 : vector<3x1x128xf32>
    %230 = arith.addf %229, %222 : vector<3x1x128xf32>
    %c0_219 = arith.constant 0 : index
    %c1_220 = arith.constant 1 : index
    %c0_221 = arith.constant 0 : index
    %231 = vector.load %arg7[%c0_219, %c1_220, %c0_221] : memref<3x10x128xf32, #tpu.memory_space<vmem>>, vector<3x1x128xf32>
    tpu.vector_store %arg7[%c0_219, %c1_220, %c0_221], %226 {strides = array<i32>} : memref<3x10x128xf32, #tpu.memory_space<vmem>>, vector<3x1x128xf32>,
    %c0_222 = arith.constant 0 : index
    %c2_223 = arith.constant 2 : index
    %c0_224 = arith.constant 0 : index
    %232 = vector.load %arg7[%c0_222, %c2_223, %c0_224] : memref<3x10x128xf32, #tpu.memory_space<vmem>>, vector<3x1x128xf32>
    tpu.vector_store %arg7[%c0_222, %c2_223, %c0_224], %230 {strides = array<i32>} : memref<3x10x128xf32, #tpu.memory_space<vmem>>, vector<3x1x128xf32>,
    %c0_225 = arith.constant 0 : index
    %c3_226 = arith.constant 3 : index
    %c0_227 = arith.constant 0 : index
    %233 = vector.load %arg7[%c0_225, %c3_226, %c0_227] : memref<3x10x128xf32, #tpu.memory_space<vmem>>, vector<3x1x128xf32>
    %c0_228 = arith.constant 0 : index
    %c4_229 = arith.constant 4 : index
    %c0_230 = arith.constant 0 : index
    %234 = vector.load %arg7[%c0_228, %c4_229, %c0_230] : memref<3x10x128xf32, #tpu.memory_space<vmem>>, vector<3x1x128xf32>
    %235 = vector.extract_strided_slice %216 {offsets = [0, 1, 0], sizes = [3, 1, 128], strides = [1, 1, 1]} : vector<3x8x128xf32> to vector<3x1x128xf32>
    %cst_231 = arith.constant 0.000000e+00 : f32
    %236 = vector.broadcast %cst_231 : f32 to vector<3x1x128xf32>
    %237 = arith.maximumf %235, %236 : vector<3x1x128xf32>
    %238 = arith.addf %237, %233 : vector<3x1x128xf32>
    %239 = vector.extract_strided_slice %220 {offsets = [0, 1, 0], sizes = [3, 1, 128], strides = [1, 1, 1]} : vector<3x8x128xf32> to vector<3x1x128xf32>
    %cst_232 = arith.constant 0.000000e+00 : f32
    %240 = vector.broadcast %cst_232 : f32 to vector<3x1x128xf32>
    %241 = arith.maximumf %239, %240 : vector<3x1x128xf32>
    %242 = arith.addf %241, %234 : vector<3x1x128xf32>
    %c0_233 = arith.constant 0 : index
    %c3_234 = arith.constant 3 : index
    %c0_235 = arith.constant 0 : index
    %243 = vector.load %arg7[%c0_233, %c3_234, %c0_235] : memref<3x10x128xf32, #tpu.memory_space<vmem>>, vector<3x1x128xf32>
    tpu.vector_store %arg7[%c0_233, %c3_234, %c0_235], %238 {strides = array<i32>} : memref<3x10x128xf32, #tpu.memory_space<vmem>>, vector<3x1x128xf32>,
    %c0_236 = arith.constant 0 : index
    %c4_237 = arith.constant 4 : index
    %c0_238 = arith.constant 0 : index
    %244 = vector.load %arg7[%c0_236, %c4_237, %c0_238] : memref<3x10x128xf32, #tpu.memory_space<vmem>>, vector<3x1x128xf32>
    tpu.vector_store %arg7[%c0_236, %c4_237, %c0_238], %242 {strides = array<i32>} : memref<3x10x128xf32, #tpu.memory_space<vmem>>, vector<3x1x128xf32>,
    %c0_239 = arith.constant 0 : index
    %c5_240 = arith.constant 5 : index
    %c0_241 = arith.constant 0 : index
    %245 = vector.load %arg7[%c0_239, %c5_240, %c0_241] : memref<3x10x128xf32, #tpu.memory_space<vmem>>, vector<3x1x128xf32>
    %c0_242 = arith.constant 0 : index
    %c6_243 = arith.constant 6 : index
    %c0_244 = arith.constant 0 : index
    %246 = vector.load %arg7[%c0_242, %c6_243, %c0_244] : memref<3x10x128xf32, #tpu.memory_space<vmem>>, vector<3x1x128xf32>
    %247 = vector.extract_strided_slice %216 {offsets = [0, 2, 0], sizes = [3, 1, 128], strides = [1, 1, 1]} : vector<3x8x128xf32> to vector<3x1x128xf32>
    %cst_245 = arith.constant 0.000000e+00 : f32
    %248 = vector.broadcast %cst_245 : f32 to vector<3x1x128xf32>
    %249 = arith.maximumf %247, %248 : vector<3x1x128xf32>
    %250 = arith.addf %249, %245 : vector<3x1x128xf32>
    %251 = vector.extract_strided_slice %220 {offsets = [0, 2, 0], sizes = [3, 1, 128], strides = [1, 1, 1]} : vector<3x8x128xf32> to vector<3x1x128xf32>
    %cst_246 = arith.constant 0.000000e+00 : f32
    %252 = vector.broadcast %cst_246 : f32 to vector<3x1x128xf32>
    %253 = arith.maximumf %251, %252 : vector<3x1x128xf32>
    %254 = arith.addf %253, %246 : vector<3x1x128xf32>
    %c0_247 = arith.constant 0 : index
    %c5_248 = arith.constant 5 : index
    %c0_249 = arith.constant 0 : index
    %255 = vector.load %arg7[%c0_247, %c5_248, %c0_249] : memref<3x10x128xf32, #tpu.memory_space<vmem>>, vector<3x1x128xf32>
    tpu.vector_store %arg7[%c0_247, %c5_248, %c0_249], %250 {strides = array<i32>} : memref<3x10x128xf32, #tpu.memory_space<vmem>>, vector<3x1x128xf32>,
    %c0_250 = arith.constant 0 : index
    %c6_251 = arith.constant 6 : index
    %c0_252 = arith.constant 0 : index
    %256 = vector.load %arg7[%c0_250, %c6_251, %c0_252] : memref<3x10x128xf32, #tpu.memory_space<vmem>>, vector<3x1x128xf32>
    tpu.vector_store %arg7[%c0_250, %c6_251, %c0_252], %254 {strides = array<i32>} : memref<3x10x128xf32, #tpu.memory_space<vmem>>, vector<3x1x128xf32>,
    %c0_253 = arith.constant 0 : index
    %c7_254 = arith.constant 7 : index
    %c0_255 = arith.constant 0 : index
    %257 = vector.load %arg7[%c0_253, %c7_254, %c0_255] : memref<3x10x128xf32, #tpu.memory_space<vmem>>, vector<3x1x128xf32>
    %c0_256 = arith.constant 0 : index
    %c8_257 = arith.constant 8 : index
    %c0_258 = arith.constant 0 : index
    %258 = vector.load %arg7[%c0_256, %c8_257, %c0_258] : memref<3x10x128xf32, #tpu.memory_space<vmem>>, vector<3x1x128xf32>
    %259 = vector.extract_strided_slice %216 {offsets = [0, 3, 0], sizes = [3, 1, 128], strides = [1, 1, 1]} : vector<3x8x128xf32> to vector<3x1x128xf32>
    %cst_259 = arith.constant 0.000000e+00 : f32
    %260 = vector.broadcast %cst_259 : f32 to vector<3x1x128xf32>
    %261 = arith.maximumf %259, %260 : vector<3x1x128xf32>
    %262 = arith.addf %261, %257 : vector<3x1x128xf32>
    %263 = vector.extract_strided_slice %220 {offsets = [0, 3, 0], sizes = [3, 1, 128], strides = [1, 1, 1]} : vector<3x8x128xf32> to vector<3x1x128xf32>
    %cst_260 = arith.constant 0.000000e+00 : f32
    %264 = vector.broadcast %cst_260 : f32 to vector<3x1x128xf32>
    %265 = arith.maximumf %263, %264 : vector<3x1x128xf32>
    %266 = arith.addf %265, %258 : vector<3x1x128xf32>
    %c0_261 = arith.constant 0 : index
    %c7_262 = arith.constant 7 : index
    %c0_263 = arith.constant 0 : index
    %267 = vector.load %arg7[%c0_261, %c7_262, %c0_263] : memref<3x10x128xf32, #tpu.memory_space<vmem>>, vector<3x1x128xf32>
    tpu.vector_store %arg7[%c0_261, %c7_262, %c0_263], %262 {strides = array<i32>} : memref<3x10x128xf32, #tpu.memory_space<vmem>>, vector<3x1x128xf32>,
    %c0_264 = arith.constant 0 : index
    %c8_265 = arith.constant 8 : index
    %c0_266 = arith.constant 0 : index
    %268 = vector.load %arg7[%c0_264, %c8_265, %c0_266] : memref<3x10x128xf32, #tpu.memory_space<vmem>>, vector<3x1x128xf32>
    tpu.vector_store %arg7[%c0_264, %c8_265, %c0_266], %266 {strides = array<i32>} : memref<3x10x128xf32, #tpu.memory_space<vmem>>, vector<3x1x128xf32>,
    %c0_267 = arith.constant 0 : index
    %c1_268 = arith.constant 1 : index
    %c0_269 = arith.constant 0 : index
    %269 = vector.load %arg7[%c0_267, %c1_268, %c0_269] : memref<3x10x128xf32, #tpu.memory_space<vmem>>, vector<3x8x128xf32>
    %270 = vector.shape_cast %269 : vector<3x8x128xf32> to vector<24x128xf32>
    %cst_270 = arith.constant 0.000000e+00 : f32
    %271 = vector.broadcast %cst_270 : f32 to vector<24x128xf32>
    %c0_271 = arith.constant 0 : index
    %c0_272 = arith.constant 0 : index
    %c0_273 = arith.constant 0 : index
    %272 = vector.load %arg7[%c0_271, %c0_272, %c0_273] : memref<3x10x128xf32, #tpu.memory_space<vmem>>, vector<3x8x128xf32>
    %273 = vector.shape_cast %272 : vector<3x8x128xf32> to vector<24x128xf32>
    %274 = arith.truncf %273 : vector<24x128xf32> to vector<24x128xbf16>
    %c6_274 = arith.constant 6 : index
    %c0_275 = arith.constant 0 : index
    %c0_276 = arith.constant 0 : index
    %c0_277 = arith.constant 0 : index
    %275 = vector.load %arg2[%c6_274, %c0_275, %c0_276, %c0_277] : memref<8x3x128x128xbf16, #tpu.memory_space<vmem>>, vector<1x1x128x128xbf16>
    %276 = vector.shape_cast %275 : vector<1x1x128x128xbf16> to vector<128x128xbf16>
    %cst_278 = arith.constant dense<0.000000e+00> : vector<24x128xf32>
    %277 = tpu.matmul %274, %276, %cst_278 {dimension_numbers = #tpu.dot_dimension_numbers<[1], [0], [0], [1], [0, 0, 1, 1], [], []>} : vector<24x128xbf16>, vector<128x128xbf16>, vector<24x128xf32> -> vector<24x128xf32>
    %278 = arith.addf %271, %277 : vector<24x128xf32>
    %c0_279 = arith.constant 0 : index
    %c1_280 = arith.constant 1 : index
    %c0_281 = arith.constant 0 : index
    %279 = vector.load %arg7[%c0_279, %c1_280, %c0_281] : memref<3x10x128xf32, #tpu.memory_space<vmem>>, vector<3x8x128xf32>
    %280 = vector.shape_cast %279 : vector<3x8x128xf32> to vector<24x128xf32>
    %281 = arith.truncf %280 : vector<24x128xf32> to vector<24x128xbf16>
    %c6_282 = arith.constant 6 : index
    %c1_283 = arith.constant 1 : index
    %c0_284 = arith.constant 0 : index
    %c0_285 = arith.constant 0 : index
    %282 = vector.load %arg2[%c6_282, %c1_283, %c0_284, %c0_285] : memref<8x3x128x128xbf16, #tpu.memory_space<vmem>>, vector<1x1x128x128xbf16>
    %283 = vector.shape_cast %282 : vector<1x1x128x128xbf16> to vector<128x128xbf16>
    %cst_286 = arith.constant dense<0.000000e+00> : vector<24x128xf32>
    %284 = tpu.matmul %281, %283, %cst_286 {dimension_numbers = #tpu.dot_dimension_numbers<[1], [0], [0], [1], [0, 0, 1, 1], [], []>} : vector<24x128xbf16>, vector<128x128xbf16>, vector<24x128xf32> -> vector<24x128xf32>
    %285 = arith.addf %278, %284 : vector<24x128xf32>
    %c0_287 = arith.constant 0 : index
    %c2_288 = arith.constant 2 : index
    %c0_289 = arith.constant 0 : index
    %286 = vector.load %arg7[%c0_287, %c2_288, %c0_289] : memref<3x10x128xf32, #tpu.memory_space<vmem>>, vector<3x8x128xf32>
    %287 = vector.shape_cast %286 : vector<3x8x128xf32> to vector<24x128xf32>
    %288 = arith.truncf %287 : vector<24x128xf32> to vector<24x128xbf16>
    %c6_290 = arith.constant 6 : index
    %c2_291 = arith.constant 2 : index
    %c0_292 = arith.constant 0 : index
    %c0_293 = arith.constant 0 : index
    %289 = vector.load %arg2[%c6_290, %c2_291, %c0_292, %c0_293] : memref<8x3x128x128xbf16, #tpu.memory_space<vmem>>, vector<1x1x128x128xbf16>
    %290 = vector.shape_cast %289 : vector<1x1x128x128xbf16> to vector<128x128xbf16>
    %cst_294 = arith.constant dense<0.000000e+00> : vector<24x128xf32>
    %291 = tpu.matmul %288, %290, %cst_294 {dimension_numbers = #tpu.dot_dimension_numbers<[1], [0], [0], [1], [0, 0, 1, 1], [], []>} : vector<24x128xbf16>, vector<128x128xbf16>, vector<24x128xf32> -> vector<24x128xf32>
    %292 = arith.addf %285, %291 : vector<24x128xf32>
    %cst_295 = arith.constant 0.000000e+00 : f32
    %293 = vector.broadcast %cst_295 : f32 to vector<24x128xf32>
    %294 = arith.maximumf %292, %293 : vector<24x128xf32>
    %295 = vector.shape_cast %294 : vector<24x128xf32> to vector<3x8x128xf32>
    %c0_296 = arith.constant 0 : index
    %c1_297 = arith.constant 1 : index
    %c0_298 = arith.constant 0 : index
    %296 = vector.load %arg7[%c0_296, %c1_297, %c0_298] : memref<3x10x128xf32, #tpu.memory_space<vmem>>, vector<3x8x128xf32>
    tpu.vector_store %arg7[%c0_296, %c1_297, %c0_298], %295 {strides = array<i32>} : memref<3x10x128xf32, #tpu.memory_space<vmem>>, vector<3x8x128xf32>,
    %cst_299 = arith.constant 0.000000e+00 : f32
    %297 = vector.broadcast %cst_299 : f32 to vector<24x128xf32>
    %c0_300 = arith.constant 0 : index
    %c0_301 = arith.constant 0 : index
    %c0_302 = arith.constant 0 : index
    %298 = vector.load %arg7[%c0_300, %c0_301, %c0_302] : memref<3x10x128xf32, #tpu.memory_space<vmem>>, vector<3x8x128xf32>
    %299 = vector.shape_cast %298 : vector<3x8x128xf32> to vector<24x128xf32>
    %300 = arith.truncf %299 : vector<24x128xf32> to vector<24x128xbf16>
    %c7_303 = arith.constant 7 : index
    %c0_304 = arith.constant 0 : index
    %c0_305 = arith.constant 0 : index
    %c0_306 = arith.constant 0 : index
    %301 = vector.load %arg2[%c7_303, %c0_304, %c0_305, %c0_306] : memref<8x3x128x128xbf16, #tpu.memory_space<vmem>>, vector<1x1x128x128xbf16>
    %302 = vector.shape_cast %301 : vector<1x1x128x128xbf16> to vector<128x128xbf16>
    %cst_307 = arith.constant dense<0.000000e+00> : vector<24x128xf32>
    %303 = tpu.matmul %300, %302, %cst_307 {dimension_numbers = #tpu.dot_dimension_numbers<[1], [0], [0], [1], [0, 0, 1, 1], [], []>} : vector<24x128xbf16>, vector<128x128xbf16>, vector<24x128xf32> -> vector<24x128xf32>
    %304 = arith.addf %297, %303 : vector<24x128xf32>
    %c0_308 = arith.constant 0 : index
    %c1_309 = arith.constant 1 : index
    %c0_310 = arith.constant 0 : index
    %305 = vector.load %arg7[%c0_308, %c1_309, %c0_310] : memref<3x10x128xf32, #tpu.memory_space<vmem>>, vector<3x8x128xf32>
    %306 = vector.shape_cast %305 : vector<3x8x128xf32> to vector<24x128xf32>
    %307 = arith.truncf %306 : vector<24x128xf32> to vector<24x128xbf16>
    %c7_311 = arith.constant 7 : index
    %c1_312 = arith.constant 1 : index
    %c0_313 = arith.constant 0 : index
    %c0_314 = arith.constant 0 : index
    %308 = vector.load %arg2[%c7_311, %c1_312, %c0_313, %c0_314] : memref<8x3x128x128xbf16, #tpu.memory_space<vmem>>, vector<1x1x128x128xbf16>
    %309 = vector.shape_cast %308 : vector<1x1x128x128xbf16> to vector<128x128xbf16>
    %cst_315 = arith.constant dense<0.000000e+00> : vector<24x128xf32>
    %310 = tpu.matmul %307, %309, %cst_315 {dimension_numbers = #tpu.dot_dimension_numbers<[1], [0], [0], [1], [0, 0, 1, 1], [], []>} : vector<24x128xbf16>, vector<128x128xbf16>, vector<24x128xf32> -> vector<24x128xf32>
    %311 = arith.addf %304, %310 : vector<24x128xf32>
    %c0_316 = arith.constant 0 : index
    %c2_317 = arith.constant 2 : index
    %c0_318 = arith.constant 0 : index
    %312 = vector.load %arg7[%c0_316, %c2_317, %c0_318] : memref<3x10x128xf32, #tpu.memory_space<vmem>>, vector<3x8x128xf32>
    %313 = vector.shape_cast %312 : vector<3x8x128xf32> to vector<24x128xf32>
    %314 = arith.truncf %313 : vector<24x128xf32> to vector<24x128xbf16>
    %c7_319 = arith.constant 7 : index
    %c2_320 = arith.constant 2 : index
    %c0_321 = arith.constant 0 : index
    %c0_322 = arith.constant 0 : index
    %315 = vector.load %arg2[%c7_319, %c2_320, %c0_321, %c0_322] : memref<8x3x128x128xbf16, #tpu.memory_space<vmem>>, vector<1x1x128x128xbf16>
    %316 = vector.shape_cast %315 : vector<1x1x128x128xbf16> to vector<128x128xbf16>
    %cst_323 = arith.constant dense<0.000000e+00> : vector<24x128xf32>
    %317 = tpu.matmul %314, %316, %cst_323 {dimension_numbers = #tpu.dot_dimension_numbers<[1], [0], [0], [1], [0, 0, 1, 1], [], []>} : vector<24x128xbf16>, vector<128x128xbf16>, vector<24x128xf32> -> vector<24x128xf32>
    %318 = arith.addf %311, %317 : vector<24x128xf32>
    %319 = arith.addf %318, %270 : vector<24x128xf32>
    %cst_324 = arith.constant 0.000000e+00 : f32
    %320 = vector.broadcast %cst_324 : f32 to vector<24x128xf32>
    %321 = arith.maximumf %319, %320 : vector<24x128xf32>
    %322 = vector.shape_cast %321 : vector<24x128xf32> to vector<3x8x128xf32>
    %c0_325 = arith.constant 0 : index
    %c1_326 = arith.constant 1 : index
    %c0_327 = arith.constant 0 : index
    %323 = vector.load %arg7[%c0_325, %c1_326, %c0_327] : memref<3x10x128xf32, #tpu.memory_space<vmem>>, vector<3x8x128xf32>
    tpu.vector_store %arg7[%c0_325, %c1_326, %c0_327], %322 {strides = array<i32>} : memref<3x10x128xf32, #tpu.memory_space<vmem>>, vector<3x8x128xf32>,
    %324 = arith.truncf %321 : vector<24x128xf32> to vector<24x128xbf16>
    %c0_328 = arith.constant 0 : index
    %c0_329 = arith.constant 0 : index
    %c0_330 = arith.constant 0 : index
    %c0_331 = arith.constant 0 : index
    %325 = vector.load %arg4[%c0_328, %c0_329, %c0_330, %c0_331] : memref<2x2x128x128xbf16, #tpu.memory_space<vmem>>, vector<1x1x128x128xbf16>
    %326 = vector.shape_cast %325 : vector<1x1x128x128xbf16> to vector<128x128xbf16>
    %cst_332 = arith.constant dense<0.000000e+00> : vector<24x128xf32>
    %327 = tpu.matmul %324, %326, %cst_332 {dimension_numbers = #tpu.dot_dimension_numbers<[1], [0], [0], [1], [0, 0, 1, 1], [], []>} : vector<24x128xbf16>, vector<128x128xbf16>, vector<24x128xf32> -> vector<24x128xf32>
    %328 = vector.shape_cast %327 : vector<24x128xf32> to vector<3x8x128xf32>
    %c0_333 = arith.constant 0 : index
    %c1_334 = arith.constant 1 : index
    %c0_335 = arith.constant 0 : index
    %c0_336 = arith.constant 0 : index
    %329 = vector.load %arg4[%c0_333, %c1_334, %c0_335, %c0_336] : memref<2x2x128x128xbf16, #tpu.memory_space<vmem>>, vector<1x1x128x128xbf16>
    %330 = vector.shape_cast %329 : vector<1x1x128x128xbf16> to vector<128x128xbf16>
    %cst_337 = arith.constant dense<0.000000e+00> : vector<24x128xf32>
    %331 = tpu.matmul %324, %330, %cst_337 {dimension_numbers = #tpu.dot_dimension_numbers<[1], [0], [0], [1], [0, 0, 1, 1], [], []>} : vector<24x128xbf16>, vector<128x128xbf16>, vector<24x128xf32> -> vector<24x128xf32>
    %332 = vector.shape_cast %331 : vector<24x128xf32> to vector<3x8x128xf32>
    %c0_338 = arith.constant 0 : index
    %c1_339 = arith.constant 1 : index
    %c0_340 = arith.constant 0 : index
    %333 = vector.load %arg6[%c0_338, %c1_339, %c0_340] : memref<3x18x128xf32, #tpu.memory_space<vmem>>, vector<3x1x128xf32>
    %c0_341 = arith.constant 0 : index
    %c2_342 = arith.constant 2 : index
    %c0_343 = arith.constant 0 : index
    %334 = vector.load %arg6[%c0_341, %c2_342, %c0_343] : memref<3x18x128xf32, #tpu.memory_space<vmem>>, vector<3x1x128xf32>
    %335 = vector.extract_strided_slice %328 {offsets = [0, 0, 0], sizes = [3, 1, 128], strides = [1, 1, 1]} : vector<3x8x128xf32> to vector<3x1x128xf32>
    %cst_344 = arith.constant 0.000000e+00 : f32
    %336 = vector.broadcast %cst_344 : f32 to vector<3x1x128xf32>
    %337 = arith.maximumf %335, %336 : vector<3x1x128xf32>
    %338 = arith.addf %337, %333 : vector<3x1x128xf32>
    %339 = vector.extract_strided_slice %332 {offsets = [0, 0, 0], sizes = [3, 1, 128], strides = [1, 1, 1]} : vector<3x8x128xf32> to vector<3x1x128xf32>
    %cst_345 = arith.constant 0.000000e+00 : f32
    %340 = vector.broadcast %cst_345 : f32 to vector<3x1x128xf32>
    %341 = arith.maximumf %339, %340 : vector<3x1x128xf32>
    %342 = arith.addf %341, %334 : vector<3x1x128xf32>
    %c0_346 = arith.constant 0 : index
    %c1_347 = arith.constant 1 : index
    %c0_348 = arith.constant 0 : index
    %343 = vector.load %arg6[%c0_346, %c1_347, %c0_348] : memref<3x18x128xf32, #tpu.memory_space<vmem>>, vector<3x1x128xf32>
    tpu.vector_store %arg6[%c0_346, %c1_347, %c0_348], %338 {strides = array<i32>} : memref<3x18x128xf32, #tpu.memory_space<vmem>>, vector<3x1x128xf32>,
    %c0_349 = arith.constant 0 : index
    %c2_350 = arith.constant 2 : index
    %c0_351 = arith.constant 0 : index
    %344 = vector.load %arg6[%c0_349, %c2_350, %c0_351] : memref<3x18x128xf32, #tpu.memory_space<vmem>>, vector<3x1x128xf32>
    tpu.vector_store %arg6[%c0_349, %c2_350, %c0_351], %342 {strides = array<i32>} : memref<3x18x128xf32, #tpu.memory_space<vmem>>, vector<3x1x128xf32>,
    %c0_352 = arith.constant 0 : index
    %c3_353 = arith.constant 3 : index
    %c0_354 = arith.constant 0 : index
    %345 = vector.load %arg6[%c0_352, %c3_353, %c0_354] : memref<3x18x128xf32, #tpu.memory_space<vmem>>, vector<3x1x128xf32>
    %c0_355 = arith.constant 0 : index
    %c4_356 = arith.constant 4 : index
    %c0_357 = arith.constant 0 : index
    %346 = vector.load %arg6[%c0_355, %c4_356, %c0_357] : memref<3x18x128xf32, #tpu.memory_space<vmem>>, vector<3x1x128xf32>
    %347 = vector.extract_strided_slice %328 {offsets = [0, 1, 0], sizes = [3, 1, 128], strides = [1, 1, 1]} : vector<3x8x128xf32> to vector<3x1x128xf32>
    %cst_358 = arith.constant 0.000000e+00 : f32
    %348 = vector.broadcast %cst_358 : f32 to vector<3x1x128xf32>
    %349 = arith.maximumf %347, %348 : vector<3x1x128xf32>
    %350 = arith.addf %349, %345 : vector<3x1x128xf32>
    %351 = vector.extract_strided_slice %332 {offsets = [0, 1, 0], sizes = [3, 1, 128], strides = [1, 1, 1]} : vector<3x8x128xf32> to vector<3x1x128xf32>
    %cst_359 = arith.constant 0.000000e+00 : f32
    %352 = vector.broadcast %cst_359 : f32 to vector<3x1x128xf32>
    %353 = arith.maximumf %351, %352 : vector<3x1x128xf32>
    %354 = arith.addf %353, %346 : vector<3x1x128xf32>
    %c0_360 = arith.constant 0 : index
    %c3_361 = arith.constant 3 : index
    %c0_362 = arith.constant 0 : index
    %355 = vector.load %arg6[%c0_360, %c3_361, %c0_362] : memref<3x18x128xf32, #tpu.memory_space<vmem>>, vector<3x1x128xf32>
    tpu.vector_store %arg6[%c0_360, %c3_361, %c0_362], %350 {strides = array<i32>} : memref<3x18x128xf32, #tpu.memory_space<vmem>>, vector<3x1x128xf32>,
    %c0_363 = arith.constant 0 : index
    %c4_364 = arith.constant 4 : index
    %c0_365 = arith.constant 0 : index
    %356 = vector.load %arg6[%c0_363, %c4_364, %c0_365] : memref<3x18x128xf32, #tpu.memory_space<vmem>>, vector<3x1x128xf32>
    tpu.vector_store %arg6[%c0_363, %c4_364, %c0_365], %354 {strides = array<i32>} : memref<3x18x128xf32, #tpu.memory_space<vmem>>, vector<3x1x128xf32>,
    %c0_366 = arith.constant 0 : index
    %c5_367 = arith.constant 5 : index
    %c0_368 = arith.constant 0 : index
    %357 = vector.load %arg6[%c0_366, %c5_367, %c0_368] : memref<3x18x128xf32, #tpu.memory_space<vmem>>, vector<3x1x128xf32>
    %c0_369 = arith.constant 0 : index
    %c6_370 = arith.constant 6 : index
    %c0_371 = arith.constant 0 : index
    %358 = vector.load %arg6[%c0_369, %c6_370, %c0_371] : memref<3x18x128xf32, #tpu.memory_space<vmem>>, vector<3x1x128xf32>
    %359 = vector.extract_strided_slice %328 {offsets = [0, 2, 0], sizes = [3, 1, 128], strides = [1, 1, 1]} : vector<3x8x128xf32> to vector<3x1x128xf32>
    %cst_372 = arith.constant 0.000000e+00 : f32
    %360 = vector.broadcast %cst_372 : f32 to vector<3x1x128xf32>
    %361 = arith.maximumf %359, %360 : vector<3x1x128xf32>
    %362 = arith.addf %361, %357 : vector<3x1x128xf32>
    %363 = vector.extract_strided_slice %332 {offsets = [0, 2, 0], sizes = [3, 1, 128], strides = [1, 1, 1]} : vector<3x8x128xf32> to vector<3x1x128xf32>
    %cst_373 = arith.constant 0.000000e+00 : f32
    %364 = vector.broadcast %cst_373 : f32 to vector<3x1x128xf32>
    %365 = arith.maximumf %363, %364 : vector<3x1x128xf32>
    %366 = arith.addf %365, %358 : vector<3x1x128xf32>
    %c0_374 = arith.constant 0 : index
    %c5_375 = arith.constant 5 : index
    %c0_376 = arith.constant 0 : index
    %367 = vector.load %arg6[%c0_374, %c5_375, %c0_376] : memref<3x18x128xf32, #tpu.memory_space<vmem>>, vector<3x1x128xf32>
    tpu.vector_store %arg6[%c0_374, %c5_375, %c0_376], %362 {strides = array<i32>} : memref<3x18x128xf32, #tpu.memory_space<vmem>>, vector<3x1x128xf32>,
    %c0_377 = arith.constant 0 : index
    %c6_378 = arith.constant 6 : index
    %c0_379 = arith.constant 0 : index
    %368 = vector.load %arg6[%c0_377, %c6_378, %c0_379] : memref<3x18x128xf32, #tpu.memory_space<vmem>>, vector<3x1x128xf32>
    tpu.vector_store %arg6[%c0_377, %c6_378, %c0_379], %366 {strides = array<i32>} : memref<3x18x128xf32, #tpu.memory_space<vmem>>, vector<3x1x128xf32>,
    %c0_380 = arith.constant 0 : index
    %c7_381 = arith.constant 7 : index
    %c0_382 = arith.constant 0 : index
    %369 = vector.load %arg6[%c0_380, %c7_381, %c0_382] : memref<3x18x128xf32, #tpu.memory_space<vmem>>, vector<3x1x128xf32>
    %c0_383 = arith.constant 0 : index
    %c8_384 = arith.constant 8 : index
    %c0_385 = arith.constant 0 : index
    %370 = vector.load %arg6[%c0_383, %c8_384, %c0_385] : memref<3x18x128xf32, #tpu.memory_space<vmem>>, vector<3x1x128xf32>
    %371 = vector.extract_strided_slice %328 {offsets = [0, 3, 0], sizes = [3, 1, 128], strides = [1, 1, 1]} : vector<3x8x128xf32> to vector<3x1x128xf32>
    %cst_386 = arith.constant 0.000000e+00 : f32
    %372 = vector.broadcast %cst_386 : f32 to vector<3x1x128xf32>
    %373 = arith.maximumf %371, %372 : vector<3x1x128xf32>
    %374 = arith.addf %373, %369 : vector<3x1x128xf32>
    %375 = vector.extract_strided_slice %332 {offsets = [0, 3, 0], sizes = [3, 1, 128], strides = [1, 1, 1]} : vector<3x8x128xf32> to vector<3x1x128xf32>
    %cst_387 = arith.constant 0.000000e+00 : f32
    %376 = vector.broadcast %cst_387 : f32 to vector<3x1x128xf32>
    %377 = arith.maximumf %375, %376 : vector<3x1x128xf32>
    %378 = arith.addf %377, %370 : vector<3x1x128xf32>
    %c0_388 = arith.constant 0 : index
    %c7_389 = arith.constant 7 : index
    %c0_390 = arith.constant 0 : index
    %379 = vector.load %arg6[%c0_388, %c7_389, %c0_390] : memref<3x18x128xf32, #tpu.memory_space<vmem>>, vector<3x1x128xf32>
    tpu.vector_store %arg6[%c0_388, %c7_389, %c0_390], %374 {strides = array<i32>} : memref<3x18x128xf32, #tpu.memory_space<vmem>>, vector<3x1x128xf32>,
    %c0_391 = arith.constant 0 : index
    %c8_392 = arith.constant 8 : index
    %c0_393 = arith.constant 0 : index
    %380 = vector.load %arg6[%c0_391, %c8_392, %c0_393] : memref<3x18x128xf32, #tpu.memory_space<vmem>>, vector<3x1x128xf32>
    tpu.vector_store %arg6[%c0_391, %c8_392, %c0_393], %378 {strides = array<i32>} : memref<3x18x128xf32, #tpu.memory_space<vmem>>, vector<3x1x128xf32>,
    %c0_394 = arith.constant 0 : index
    %c9 = arith.constant 9 : index
    %c0_395 = arith.constant 0 : index
    %381 = vector.load %arg6[%c0_394, %c9, %c0_395] : memref<3x18x128xf32, #tpu.memory_space<vmem>>, vector<3x1x128xf32>
    %c0_396 = arith.constant 0 : index
    %c10 = arith.constant 10 : index
    %c0_397 = arith.constant 0 : index
    %382 = vector.load %arg6[%c0_396, %c10, %c0_397] : memref<3x18x128xf32, #tpu.memory_space<vmem>>, vector<3x1x128xf32>
    %383 = vector.extract_strided_slice %328 {offsets = [0, 4, 0], sizes = [3, 1, 128], strides = [1, 1, 1]} : vector<3x8x128xf32> to vector<3x1x128xf32>
    %cst_398 = arith.constant 0.000000e+00 : f32
    %384 = vector.broadcast %cst_398 : f32 to vector<3x1x128xf32>
    %385 = arith.maximumf %383, %384 : vector<3x1x128xf32>
    %386 = arith.addf %385, %381 : vector<3x1x128xf32>
    %387 = vector.extract_strided_slice %332 {offsets = [0, 4, 0], sizes = [3, 1, 128], strides = [1, 1, 1]} : vector<3x8x128xf32> to vector<3x1x128xf32>
    %cst_399 = arith.constant 0.000000e+00 : f32
    %388 = vector.broadcast %cst_399 : f32 to vector<3x1x128xf32>
    %389 = arith.maximumf %387, %388 : vector<3x1x128xf32>
    %390 = arith.addf %389, %382 : vector<3x1x128xf32>
    %c0_400 = arith.constant 0 : index
    %c9_401 = arith.constant 9 : index
    %c0_402 = arith.constant 0 : index
    %391 = vector.load %arg6[%c0_400, %c9_401, %c0_402] : memref<3x18x128xf32, #tpu.memory_space<vmem>>, vector<3x1x128xf32>
    tpu.vector_store %arg6[%c0_400, %c9_401, %c0_402], %386 {strides = array<i32>} : memref<3x18x128xf32, #tpu.memory_space<vmem>>, vector<3x1x128xf32>,
    %c0_403 = arith.constant 0 : index
    %c10_404 = arith.constant 10 : index
    %c0_405 = arith.constant 0 : index
    %392 = vector.load %arg6[%c0_403, %c10_404, %c0_405] : memref<3x18x128xf32, #tpu.memory_space<vmem>>, vector<3x1x128xf32>
    tpu.vector_store %arg6[%c0_403, %c10_404, %c0_405], %390 {strides = array<i32>} : memref<3x18x128xf32, #tpu.memory_space<vmem>>, vector<3x1x128xf32>,
    %c0_406 = arith.constant 0 : index
    %c11 = arith.constant 11 : index
    %c0_407 = arith.constant 0 : index
    %393 = vector.load %arg6[%c0_406, %c11, %c0_407] : memref<3x18x128xf32, #tpu.memory_space<vmem>>, vector<3x1x128xf32>
    %c0_408 = arith.constant 0 : index
    %c12 = arith.constant 12 : index
    %c0_409 = arith.constant 0 : index
    %394 = vector.load %arg6[%c0_408, %c12, %c0_409] : memref<3x18x128xf32, #tpu.memory_space<vmem>>, vector<3x1x128xf32>
    %395 = vector.extract_strided_slice %328 {offsets = [0, 5, 0], sizes = [3, 1, 128], strides = [1, 1, 1]} : vector<3x8x128xf32> to vector<3x1x128xf32>
    %cst_410 = arith.constant 0.000000e+00 : f32
    %396 = vector.broadcast %cst_410 : f32 to vector<3x1x128xf32>
    %397 = arith.maximumf %395, %396 : vector<3x1x128xf32>
    %398 = arith.addf %397, %393 : vector<3x1x128xf32>
    %399 = vector.extract_strided_slice %332 {offsets = [0, 5, 0], sizes = [3, 1, 128], strides = [1, 1, 1]} : vector<3x8x128xf32> to vector<3x1x128xf32>
    %cst_411 = arith.constant 0.000000e+00 : f32
    %400 = vector.broadcast %cst_411 : f32 to vector<3x1x128xf32>
    %401 = arith.maximumf %399, %400 : vector<3x1x128xf32>
    %402 = arith.addf %401, %394 : vector<3x1x128xf32>
    %c0_412 = arith.constant 0 : index
    %c11_413 = arith.constant 11 : index
    %c0_414 = arith.constant 0 : index
    %403 = vector.load %arg6[%c0_412, %c11_413, %c0_414] : memref<3x18x128xf32, #tpu.memory_space<vmem>>, vector<3x1x128xf32>
    tpu.vector_store %arg6[%c0_412, %c11_413, %c0_414], %398 {strides = array<i32>} : memref<3x18x128xf32, #tpu.memory_space<vmem>>, vector<3x1x128xf32>,
    %c0_415 = arith.constant 0 : index
    %c12_416 = arith.constant 12 : index
    %c0_417 = arith.constant 0 : index
    %404 = vector.load %arg6[%c0_415, %c12_416, %c0_417] : memref<3x18x128xf32, #tpu.memory_space<vmem>>, vector<3x1x128xf32>
    tpu.vector_store %arg6[%c0_415, %c12_416, %c0_417], %402 {strides = array<i32>} : memref<3x18x128xf32, #tpu.memory_space<vmem>>, vector<3x1x128xf32>,
    %c0_418 = arith.constant 0 : index
    %c13 = arith.constant 13 : index
    %c0_419 = arith.constant 0 : index
    %405 = vector.load %arg6[%c0_418, %c13, %c0_419] : memref<3x18x128xf32, #tpu.memory_space<vmem>>, vector<3x1x128xf32>
    %c0_420 = arith.constant 0 : index
    %c14 = arith.constant 14 : index
    %c0_421 = arith.constant 0 : index
    %406 = vector.load %arg6[%c0_420, %c14, %c0_421] : memref<3x18x128xf32, #tpu.memory_space<vmem>>, vector<3x1x128xf32>
    %407 = vector.extract_strided_slice %328 {offsets = [0, 6, 0], sizes = [3, 1, 128], strides = [1, 1, 1]} : vector<3x8x128xf32> to vector<3x1x128xf32>
    %cst_422 = arith.constant 0.000000e+00 : f32
    %408 = vector.broadcast %cst_422 : f32 to vector<3x1x128xf32>
    %409 = arith.maximumf %407, %408 : vector<3x1x128xf32>
    %410 = arith.addf %409, %405 : vector<3x1x128xf32>
    %411 = vector.extract_strided_slice %332 {offsets = [0, 6, 0], sizes = [3, 1, 128], strides = [1, 1, 1]} : vector<3x8x128xf32> to vector<3x1x128xf32>
    %cst_423 = arith.constant 0.000000e+00 : f32
    %412 = vector.broadcast %cst_423 : f32 to vector<3x1x128xf32>
    %413 = arith.maximumf %411, %412 : vector<3x1x128xf32>
    %414 = arith.addf %413, %406 : vector<3x1x128xf32>
    %c0_424 = arith.constant 0 : index
    %c13_425 = arith.constant 13 : index
    %c0_426 = arith.constant 0 : index
    %415 = vector.load %arg6[%c0_424, %c13_425, %c0_426] : memref<3x18x128xf32, #tpu.memory_space<vmem>>, vector<3x1x128xf32>
    tpu.vector_store %arg6[%c0_424, %c13_425, %c0_426], %410 {strides = array<i32>} : memref<3x18x128xf32, #tpu.memory_space<vmem>>, vector<3x1x128xf32>,
    %c0_427 = arith.constant 0 : index
    %c14_428 = arith.constant 14 : index
    %c0_429 = arith.constant 0 : index
    %416 = vector.load %arg6[%c0_427, %c14_428, %c0_429] : memref<3x18x128xf32, #tpu.memory_space<vmem>>, vector<3x1x128xf32>
    tpu.vector_store %arg6[%c0_427, %c14_428, %c0_429], %414 {strides = array<i32>} : memref<3x18x128xf32, #tpu.memory_space<vmem>>, vector<3x1x128xf32>,
    %c0_430 = arith.constant 0 : index
    %c15 = arith.constant 15 : index
    %c0_431 = arith.constant 0 : index
    %417 = vector.load %arg6[%c0_430, %c15, %c0_431] : memref<3x18x128xf32, #tpu.memory_space<vmem>>, vector<3x1x128xf32>
    %c0_432 = arith.constant 0 : index
    %c16 = arith.constant 16 : index
    %c0_433 = arith.constant 0 : index
    %418 = vector.load %arg6[%c0_432, %c16, %c0_433] : memref<3x18x128xf32, #tpu.memory_space<vmem>>, vector<3x1x128xf32>
    %419 = vector.extract_strided_slice %328 {offsets = [0, 7, 0], sizes = [3, 1, 128], strides = [1, 1, 1]} : vector<3x8x128xf32> to vector<3x1x128xf32>
    %cst_434 = arith.constant 0.000000e+00 : f32
    %420 = vector.broadcast %cst_434 : f32 to vector<3x1x128xf32>
    %421 = arith.maximumf %419, %420 : vector<3x1x128xf32>
    %422 = arith.addf %421, %417 : vector<3x1x128xf32>
    %423 = vector.extract_strided_slice %332 {offsets = [0, 7, 0], sizes = [3, 1, 128], strides = [1, 1, 1]} : vector<3x8x128xf32> to vector<3x1x128xf32>
    %cst_435 = arith.constant 0.000000e+00 : f32
    %424 = vector.broadcast %cst_435 : f32 to vector<3x1x128xf32>
    %425 = arith.maximumf %423, %424 : vector<3x1x128xf32>
    %426 = arith.addf %425, %418 : vector<3x1x128xf32>
    %c0_436 = arith.constant 0 : index
    %c15_437 = arith.constant 15 : index
    %c0_438 = arith.constant 0 : index
    %427 = vector.load %arg6[%c0_436, %c15_437, %c0_438] : memref<3x18x128xf32, #tpu.memory_space<vmem>>, vector<3x1x128xf32>
    tpu.vector_store %arg6[%c0_436, %c15_437, %c0_438], %422 {strides = array<i32>} : memref<3x18x128xf32, #tpu.memory_space<vmem>>, vector<3x1x128xf32>,
    %c0_439 = arith.constant 0 : index
    %c16_440 = arith.constant 16 : index
    %c0_441 = arith.constant 0 : index
    %428 = vector.load %arg6[%c0_439, %c16_440, %c0_441] : memref<3x18x128xf32, #tpu.memory_space<vmem>>, vector<3x1x128xf32>
    tpu.vector_store %arg6[%c0_439, %c16_440, %c0_441], %426 {strides = array<i32>} : memref<3x18x128xf32, #tpu.memory_space<vmem>>, vector<3x1x128xf32>,
    %c0_442 = arith.constant 0 : index
    %c1_443 = arith.constant 1 : index
    %c0_444 = arith.constant 0 : index
    %429 = vector.load %arg6[%c0_442, %c1_443, %c0_444] : memref<3x18x128xf32, #tpu.memory_space<vmem>>, vector<3x16x128xf32>
    %430 = vector.shape_cast %429 : vector<3x16x128xf32> to vector<48x128xf32>
    %cst_445 = arith.constant 0.000000e+00 : f32
    %431 = vector.broadcast %cst_445 : f32 to vector<48x128xf32>
    %c0_446 = arith.constant 0 : index
    %c0_447 = arith.constant 0 : index
    %c0_448 = arith.constant 0 : index
    %432 = vector.load %arg6[%c0_446, %c0_447, %c0_448] : memref<3x18x128xf32, #tpu.memory_space<vmem>>, vector<3x16x128xf32>
    %433 = vector.shape_cast %432 : vector<3x16x128xf32> to vector<48x128xf32>
    %434 = arith.truncf %433 : vector<48x128xf32> to vector<48x128xbf16>
    %c2_449 = arith.constant 2 : index
    %c0_450 = arith.constant 0 : index
    %c0_451 = arith.constant 0 : index
    %c0_452 = arith.constant 0 : index
    %435 = vector.load %arg2[%c2_449, %c0_450, %c0_451, %c0_452] : memref<8x3x128x128xbf16, #tpu.memory_space<vmem>>, vector<1x1x128x128xbf16>
    %436 = vector.shape_cast %435 : vector<1x1x128x128xbf16> to vector<128x128xbf16>
    %cst_453 = arith.constant dense<0.000000e+00> : vector<48x128xf32>
    %437 = tpu.matmul %434, %436, %cst_453 {dimension_numbers = #tpu.dot_dimension_numbers<[1], [0], [0], [1], [0, 0, 1, 1], [], []>} : vector<48x128xbf16>, vector<128x128xbf16>, vector<48x128xf32> -> vector<48x128xf32>
    %438 = arith.addf %431, %437 : vector<48x128xf32>
    %c0_454 = arith.constant 0 : index
    %c1_455 = arith.constant 1 : index
    %c0_456 = arith.constant 0 : index
    %439 = vector.load %arg6[%c0_454, %c1_455, %c0_456] : memref<3x18x128xf32, #tpu.memory_space<vmem>>, vector<3x16x128xf32>
    %440 = vector.shape_cast %439 : vector<3x16x128xf32> to vector<48x128xf32>
    %441 = arith.truncf %440 : vector<48x128xf32> to vector<48x128xbf16>
    %c2_457 = arith.constant 2 : index
    %c1_458 = arith.constant 1 : index
    %c0_459 = arith.constant 0 : index
    %c0_460 = arith.constant 0 : index
    %442 = vector.load %arg2[%c2_457, %c1_458, %c0_459, %c0_460] : memref<8x3x128x128xbf16, #tpu.memory_space<vmem>>, vector<1x1x128x128xbf16>
    %443 = vector.shape_cast %442 : vector<1x1x128x128xbf16> to vector<128x128xbf16>
    %cst_461 = arith.constant dense<0.000000e+00> : vector<48x128xf32>
    %444 = tpu.matmul %441, %443, %cst_461 {dimension_numbers = #tpu.dot_dimension_numbers<[1], [0], [0], [1], [0, 0, 1, 1], [], []>} : vector<48x128xbf16>, vector<128x128xbf16>, vector<48x128xf32> -> vector<48x128xf32>
    %445 = arith.addf %438, %444 : vector<48x128xf32>
    %c0_462 = arith.constant 0 : index
    %c2_463 = arith.constant 2 : index
    %c0_464 = arith.constant 0 : index
    %446 = vector.load %arg6[%c0_462, %c2_463, %c0_464] : memref<3x18x128xf32, #tpu.memory_space<vmem>>, vector<3x16x128xf32>
    %447 = vector.shape_cast %446 : vector<3x16x128xf32> to vector<48x128xf32>
    %448 = arith.truncf %447 : vector<48x128xf32> to vector<48x128xbf16>
    %c2_465 = arith.constant 2 : index
    %c2_466 = arith.constant 2 : index
    %c0_467 = arith.constant 0 : index
    %c0_468 = arith.constant 0 : index
    %449 = vector.load %arg2[%c2_465, %c2_466, %c0_467, %c0_468] : memref<8x3x128x128xbf16, #tpu.memory_space<vmem>>, vector<1x1x128x128xbf16>
    %450 = vector.shape_cast %449 : vector<1x1x128x128xbf16> to vector<128x128xbf16>
    %cst_469 = arith.constant dense<0.000000e+00> : vector<48x128xf32>
    %451 = tpu.matmul %448, %450, %cst_469 {dimension_numbers = #tpu.dot_dimension_numbers<[1], [0], [0], [1], [0, 0, 1, 1], [], []>} : vector<48x128xbf16>, vector<128x128xbf16>, vector<48x128xf32> -> vector<48x128xf32>
    %452 = arith.addf %445, %451 : vector<48x128xf32>
    %cst_470 = arith.constant 0.000000e+00 : f32
    %453 = vector.broadcast %cst_470 : f32 to vector<48x128xf32>
    %454 = arith.maximumf %452, %453 : vector<48x128xf32>
    %455 = vector.shape_cast %454 : vector<48x128xf32> to vector<3x16x128xf32>
    %c0_471 = arith.constant 0 : index
    %c1_472 = arith.constant 1 : index
    %c0_473 = arith.constant 0 : index
    %456 = vector.load %arg6[%c0_471, %c1_472, %c0_473] : memref<3x18x128xf32, #tpu.memory_space<vmem>>, vector<3x16x128xf32>
    tpu.vector_store %arg6[%c0_471, %c1_472, %c0_473], %455 {strides = array<i32>} : memref<3x18x128xf32, #tpu.memory_space<vmem>>, vector<3x16x128xf32>,
    %cst_474 = arith.constant 0.000000e+00 : f32
    %457 = vector.broadcast %cst_474 : f32 to vector<48x128xf32>
    %c0_475 = arith.constant 0 : index
    %c0_476 = arith.constant 0 : index
    %c0_477 = arith.constant 0 : index
    %458 = vector.load %arg6[%c0_475, %c0_476, %c0_477] : memref<3x18x128xf32, #tpu.memory_space<vmem>>, vector<3x16x128xf32>
    %459 = vector.shape_cast %458 : vector<3x16x128xf32> to vector<48x128xf32>
    %460 = arith.truncf %459 : vector<48x128xf32> to vector<48x128xbf16>
    %c3_478 = arith.constant 3 : index
    %c0_479 = arith.constant 0 : index
    %c0_480 = arith.constant 0 : index
    %c0_481 = arith.constant 0 : index
    %461 = vector.load %arg2[%c3_478, %c0_479, %c0_480, %c0_481] : memref<8x3x128x128xbf16, #tpu.memory_space<vmem>>, vector<1x1x128x128xbf16>
    %462 = vector.shape_cast %461 : vector<1x1x128x128xbf16> to vector<128x128xbf16>
    %cst_482 = arith.constant dense<0.000000e+00> : vector<48x128xf32>
    %463 = tpu.matmul %460, %462, %cst_482 {dimension_numbers = #tpu.dot_dimension_numbers<[1], [0], [0], [1], [0, 0, 1, 1], [], []>} : vector<48x128xbf16>, vector<128x128xbf16>, vector<48x128xf32> -> vector<48x128xf32>
    %464 = arith.addf %457, %463 : vector<48x128xf32>
    %c0_483 = arith.constant 0 : index
    %c1_484 = arith.constant 1 : index
    %c0_485 = arith.constant 0 : index
    %465 = vector.load %arg6[%c0_483, %c1_484, %c0_485] : memref<3x18x128xf32, #tpu.memory_space<vmem>>, vector<3x16x128xf32>
    %466 = vector.shape_cast %465 : vector<3x16x128xf32> to vector<48x128xf32>
    %467 = arith.truncf %466 : vector<48x128xf32> to vector<48x128xbf16>
    %c3_486 = arith.constant 3 : index
    %c1_487 = arith.constant 1 : index
    %c0_488 = arith.constant 0 : index
    %c0_489 = arith.constant 0 : index
    %468 = vector.load %arg2[%c3_486, %c1_487, %c0_488, %c0_489] : memref<8x3x128x128xbf16, #tpu.memory_space<vmem>>, vector<1x1x128x128xbf16>
    %469 = vector.shape_cast %468 : vector<1x1x128x128xbf16> to vector<128x128xbf16>
    %cst_490 = arith.constant dense<0.000000e+00> : vector<48x128xf32>
    %470 = tpu.matmul %467, %469, %cst_490 {dimension_numbers = #tpu.dot_dimension_numbers<[1], [0], [0], [1], [0, 0, 1, 1], [], []>} : vector<48x128xbf16>, vector<128x128xbf16>, vector<48x128xf32> -> vector<48x128xf32>
    %471 = arith.addf %464, %470 : vector<48x128xf32>
    %c0_491 = arith.constant 0 : index
    %c2_492 = arith.constant 2 : index
    %c0_493 = arith.constant 0 : index
    %472 = vector.load %arg6[%c0_491, %c2_492, %c0_493] : memref<3x18x128xf32, #tpu.memory_space<vmem>>, vector<3x16x128xf32>
    %473 = vector.shape_cast %472 : vector<3x16x128xf32> to vector<48x128xf32>
    %474 = arith.truncf %473 : vector<48x128xf32> to vector<48x128xbf16>
    %c3_494 = arith.constant 3 : index
    %c2_495 = arith.constant 2 : index
    %c0_496 = arith.constant 0 : index
    %c0_497 = arith.constant 0 : index
    %475 = vector.load %arg2[%c3_494, %c2_495, %c0_496, %c0_497] : memref<8x3x128x128xbf16, #tpu.memory_space<vmem>>, vector<1x1x128x128xbf16>
    %476 = vector.shape_cast %475 : vector<1x1x128x128xbf16> to vector<128x128xbf16>
    %cst_498 = arith.constant dense<0.000000e+00> : vector<48x128xf32>
    %477 = tpu.matmul %474, %476, %cst_498 {dimension_numbers = #tpu.dot_dimension_numbers<[1], [0], [0], [1], [0, 0, 1, 1], [], []>} : vector<48x128xbf16>, vector<128x128xbf16>, vector<48x128xf32> -> vector<48x128xf32>
    %478 = arith.addf %471, %477 : vector<48x128xf32>
    %479 = arith.addf %478, %430 : vector<48x128xf32>
    %cst_499 = arith.constant 0.000000e+00 : f32
    %480 = vector.broadcast %cst_499 : f32 to vector<48x128xf32>
    %481 = arith.maximumf %479, %480 : vector<48x128xf32>
    %482 = vector.shape_cast %481 : vector<48x128xf32> to vector<3x16x128xf32>
    %c0_500 = arith.constant 0 : index
    %c1_501 = arith.constant 1 : index
    %c0_502 = arith.constant 0 : index
    %483 = vector.load %arg6[%c0_500, %c1_501, %c0_502] : memref<3x18x128xf32, #tpu.memory_space<vmem>>, vector<3x16x128xf32>
    tpu.vector_store %arg6[%c0_500, %c1_501, %c0_502], %482 {strides = array<i32>} : memref<3x18x128xf32, #tpu.memory_space<vmem>>, vector<3x16x128xf32>,
    %484 = vector.shape_cast %481 : vector<48x128xf32> to vector<3x16x128xf32>
    %c0_503 = arith.constant 0 : index
    %c0_504 = arith.constant 0 : index
    %c0_505 = arith.constant 0 : index
    %485 = vector.load %arg5[%c0_503, %c0_504, %c0_505] : memref<3x16x128xf32, #tpu.memory_space<vmem>>, vector<3x16x128xf32>
    tpu.vector_store %arg5[%c0_503, %c0_504, %c0_505], %484 {strides = array<i32>} : memref<3x16x128xf32, #tpu.memory_space<vmem>>, vector<3x16x128xf32>,
    return
  }
  func.func @transform_0(%arg0: i32) -> (i32, i32, i32) {
    %c0_i32 = arith.constant 0 : i32
    %c0_i32_0 = arith.constant 0 : i32
    %c0_i32_1 = arith.constant 0 : i32
    return %arg0, %c0_i32, %c0_i32_0 : i32, i32, i32
  }
  func.func @transform_1(%arg0: i32) -> (i32, i32, i32, i32) {
    %c0_i32 = arith.constant 0 : i32
    %c0_i32_0 = arith.constant 0 : i32
    %c0_i32_1 = arith.constant 0 : i32
    %c0_i32_2 = arith.constant 0 : i32
    %c0_i32_3 = arith.constant 0 : i32
    return %c0_i32, %c0_i32_0, %c0_i32_1, %c0_i32_2 : i32, i32, i32, i32
  }
  func.func @transform_2(%arg0: i32) -> (i32, i32, i32, i32) {
    %c0_i32 = arith.constant 0 : i32
    %c0_i32_0 = arith.constant 0 : i32
    %c0_i32_1 = arith.constant 0 : i32
    %c0_i32_2 = arith.constant 0 : i32
    %c0_i32_3 = arith.constant 0 : i32
    return %c0_i32, %c0_i32_0, %c0_i32_1, %c0_i32_2 : i32, i32, i32, i32
  }
  func.func @transform_3(%arg0: i32) -> (i32, i32, i32, i32) {
    %c0_i32 = arith.constant 0 : i32
    %c0_i32_0 = arith.constant 0 : i32
    %c0_i32_1 = arith.constant 0 : i32
    %c0_i32_2 = arith.constant 0 : i32
    %c0_i32_3 = arith.constant 0 : i32
    return %c0_i32, %c0_i32_0, %c0_i32_1, %c0_i32_2 : i32, i32, i32, i32
  }
  func.func @transform_4(%arg0: i32) -> (i32, i32, i32) {
    %c0_i32 = arith.constant 0 : i32
    %c0_i32_0 = arith.constant 0 : i32
    %c0_i32_1 = arith.constant 0 : i32
    return %arg0, %c0_i32, %c0_i32_0 : i32, i32, i32
  }
}

</mosaic_0001>

<bundles_post_ra>
// kernel: unet_core_forward.1
= control target key start
LH: loop header
LB: loop body
LE: loop exit
PB: predicated region body
PF: predicated region fallthrough
CT: control target
= control target key end

     0   :  { %s6956_s15 = smov 0   ;;  %s8198_s0 = inlined_call_operand.vmem [shape: f32[6,16,128], index: 0, kind: input, shape index: {}]   ;;  %s8199_s1 = inlined_call_operand.vmem [shape: bf16[8,3,128,128], index: 1, kind: input, shape index: {}]   ;;  %s8200_s2 = inlined_call_operand.vmem [shape: bf16[2,2,128,128], index: 2, kind: input, shape index: {}]   ;;  %s8201_s3 = inlined_call_operand.vmem [shape: bf16[2,2,128,128], index: 3, kind: input, shape index: {}]   ;;  %s8202_s4 = inlined_call_operand.vmem [shape: f32[6,16,128], index: 4, kind: output, shape index: {}]  }
   0x1 LB: > { %s4835_s16 = sadd.s32 4294967295, %s6927_s15   ;;  %p4839_p0 = scmp.ge.s32.totalorder %s6927_s15, 1  ;;  %s6927_s15 = sphi %s6956_s15, %s14_s15  }
   0x2   : > { %p164_p1 = scmp.lt.s32.totalorder %s6927_s15, 3 }
   0x4   : > { %p165_p2 = pnand %p4839_p0, %p164_p1 }
   0x5   : > { %s192_s23 = smul.u32 (!%p165_p2), 3, %s4835_s16 }
   0x6   : > { %168 = sbr.rel (%p165_p2) target bundleno = 2848 (0xb20), region = 36 }
   0x7   : > { %p193_p3 = scmp.lt.s32.totalorder (!%p165_p2), %s192_s23, 5 }
   0xb   : > { %v6664_v0 = vld [vmem:[%s8199_s1 + $0x78] sm:$0xff]   ;;  %v6929_v1 = vmov 0.0   ;;  %v6666_v3 = vld [vmem:[%s8199_s1 + $0x70] sm:$0xff]   ;;  %vm6930_vm0 = vmmov 0   ;;  %v6668_v5 = vld [vmem:[%s8199_s1 + $0x68] sm:$0xff]   ;;  %s8225_s23 = smov (!%p193_p3, %s192_s23), 5 }
   0xc   : > { %5902 = vmatprep.subr.bf16.mxu0 %v6929_v1  ;;  %207 = vst [vmem:[#allocation2] sm:$0xff] %v6929_v1  ;;  %208 = vst [vmem:[#allocation2 + $0x8] sm:$0xff] %v6929_v1  ;;  %5930 = vmatprep.subr.bf16.mxu1 %v6929_v1  ;;  %v6665_v2 = vld [vmem:[%s8199_s1 + $0x38] sm:$0xff]   ;;  %v6667_v4 = vld [vmem:[%s8199_s1 + $0x30] sm:$0xff]   ;;  %s5566_s6 = sshll.u32 %s8225_s23, 4 }
   0xd   : > { %209 = vst [vmem:[#allocation2 + $0x10] sm:$0x3] %v6929_v1  ;;  %210 = vst [vmem:[#allocation2 + $0x18] sm:$0xff] %v6929_v1  ;;  %5903 = vmatpush3.bf16.msra.mxu0 %v6664_v0  ;;  %5918 = vmatprep.mubr.msk.bf16.mxu0 %vm6930_vm0, %v6929_v1  ;;  %v6669_v6 = vld [vmem:[%s8199_s1 + $0x28] sm:$0xff]   ;;  %v6670_v7 = vld [vmem:[%s8199_s1 + $0x60] sm:$0xff]   ;;  %s197_s11 = scalar_lea.vmem %s8198_s0, %s5566_s6  ;;  %s8182_s29 = scalar_lea.vmem %s8202_s4, %s5566_s6 }
   0xe   : > { %211 = vst [vmem:[#allocation2 + $0x20] sm:$0xff] %v6929_v1  ;;  %212 = vst [vmem:[#allocation2 + $0x28] sm:$0x3] %v6929_v1  ;;  %5931 = vmatpush3.bf16.msra.mxu1 %v6665_v2  ;;  %5904 = vmatprep.subr.bf16.mxu0 %v6929_v1  ;;  %v6671_v8 = vld [vmem:[%s8199_s1 + $0x20] sm:$0xff]   ;;  %v6672_v9 = vld [vmem:[%s8199_s1 + $0x58] sm:$0xff]  }
   0xf   : > { %213 = vst [vmem:[#allocation2 + $0x30] sm:$0xff] %v6929_v1  ;;  %214 = vst [vmem:[#allocation2 + $0x38] sm:$0xff] %v6929_v1  ;;  %5932 = vmatprep.subr.bf16.mxu1 %v6929_v1  ;;  %5946 = vmatprep.mubr.msk.bf16.mxu1 %vm6930_vm0, %v6929_v1  ;;  %v6673_v10 = vld [vmem:[%s8199_s1 + $0x18] sm:$0xff]   ;;  %v7036_v11 = vld [vmem:[%s197_s11] sm:$0xff] }
  0x10   : > { %215 = vst [vmem:[#allocation2 + $0x40] sm:$0x3] %v6929_v1  ;;  %216 = vst [vmem:[#allocation3] sm:$0xff] %v6929_v1  ;;  %v7038_v12 = vld [vmem:[%s197_s11 + $0x8] sm:$0xff]  ;;  %v6674_v13 = vld [vmem:[%s8199_s1 + $0x50] sm:$0xff]  }
  0x11   : > { %217 = vst [vmem:[#allocation3 + $0x8] sm:$0x3] %v6929_v1  ;;  %218 = vst [vmem:[#allocation3 + $0x10] sm:$0xff] %v6929_v1  ;;  %5905 = vmatpush3.bf16.msra.mxu0 %v6666_v3  ;;  %v6675_v14 = vld [vmem:[%s8199_s1 + $0x10] sm:$0xff]   ;;  %v7052_v16 = vld [vmem:[%s197_s11 + $0x18] sm:$0xff]  ;;  %v268_v25 = vpack.c.bf16 %v7038_v12, %v7036_v11 }
  0x12   : > { %219 = vst [vmem:[#allocation3 + $0x18] sm:$0x3] %v6929_v1  ;;  %220 = vst [vmem:[#allocation3 + $0x20] sm:$0xff] %v6929_v1  ;;  %5933 = vmatpush3.bf16.msra.mxu1 %v6667_v4  ;;  %5906 = vmatprep.subr.bf16.mxu0 %v6929_v1  ;;  %v7049_v15 = vld [vmem:[%s197_s11 + $0x10] sm:$0xff]  ;;  %v6676_v17 = vld [vmem:[%s8199_s1 + $0x48] sm:$0xff]  }
  0x13   : > { %221 = vst [vmem:[#allocation3 + $0x28] sm:$0x3] %v6929_v1  ;;  %222 = vst [vmem:[#allocation4] sm:$0xff] %v6929_v1  ;;  %5934 = vmatprep.subr.bf16.mxu1 %v6929_v1  ;;  %v7059_v18 = vld [vmem:[%s197_s11 + $0x20] sm:$0xff]  ;;  %v7061_v19 = vld [vmem:[%s197_s11 + $0x28] sm:$0xff]  ;;  %v269_v32 = vpack.c.bf16 %v7052_v16, %v7049_v15 }
  0x14   : > { %223 = vst [vmem:[#allocation4 + $0x8] sm:$0xff] %v6929_v1  ;;  %224 = vst [vmem:[#allocation4 + $0x10] sm:$0xff] %v6929_v1  ;;  %v6677_v20 = vld [vmem:[%s8199_s1 + $0x8] sm:$0xff]   ;;  %v6678_v21 = vld [vmem:[%s8199_s1 + $0x40] sm:$0xff]   ;;  %v270_v38 = vpack.c.bf16 %v7061_v19, %v7059_v18 }
  0x15   : > { %5907 = vmatpush3.bf16.msra.mxu0 %v6668_v5  ;;  %231 = vst [vmem:[#allocation2 + $0x1] sm:$0xff] %v7036_v11  ;;  %232 = vst [vmem:[#allocation2 + $0x9] sm:$0xff] %v7038_v12  ;;  %v6679_v22 = vld [vmem:[%s8199_s1] sm:$0xff]   ;;  %v6680_v27 = vld [vmem:[%s8199_s1 + $0xb8] sm:$0xff]  }
  0x16   : > { %5935 = vmatpush3.bf16.msra.mxu1 %v6669_v6  ;;  %5908 = vmatprep.subr.bf16.mxu0 %v6929_v1  ;;  %233 = vst [vmem:[#allocation2 + $0x19] sm:$0xff] %v7049_v15  ;;  %234 = vst [vmem:[#allocation2 + $0x21] sm:$0xff] %v7052_v16  ;;  %v6681_v28 = vld [vmem:[%s8199_s1 + $0xb0] sm:$0xff]   ;;  %v6682_v31 = vld [vmem:[%s8199_s1 + $0xa8] sm:$0xff]  }
  0x17   : > { %5936 = vmatprep.subr.bf16.mxu1 %v6929_v1  ;;  %235 = vst [vmem:[#allocation2 + $0x31] sm:$0xff] %v7059_v18  ;;  %236 = vst [vmem:[#allocation2 + $0x39] sm:$0xff] %v7061_v19  ;;  %v6683_v34 = vld [vmem:[%s8199_s1 + $0xa0] sm:$0xff]   ;;  %v6684_v37 = vld [vmem:[%s8199_s1 + $0x98] sm:$0xff]  }
  0x18   : > { %v6685_v40 = vld [vmem:[%s8199_s1 + $0x90] sm:$0xff]   ;;  %v6686_v41 = vld [vmem:[%s8199_s1 + $0x88] sm:$0xff]   ;;  %v6687_v43 = vld [vmem:[%s8199_s1 + $0x80] sm:$0xff]  }
  0x19   : > { %5909 = vmatpush3.bf16.msra.mxu0 %v6670_v7  ;;  %v6688_v52 = vld [vmem:[%s8199_s1 + $0x138] sm:$0xff]   ;;  %v6690_v53 = vld [vmem:[%s8199_s1 + $0x130] sm:$0xff]   ;;  %v6692_v55 = vld [vmem:[%s8199_s1 + $0x128] sm:$0xff]  }
  0x1a   : > { %5937 = vmatpush3.bf16.msra.mxu1 %v6671_v8  ;;  %5910 = vmatprep.subr.bf16.mxu0 %v6929_v1  ;;  %v6689_v54 = vld [vmem:[%s8199_s1 + $0xf8] sm:$0xff]   ;;  %v6691_v56 = vld [vmem:[%s8199_s1 + $0xf0] sm:$0xff]   ;;  %v6693_v57 = vld [vmem:[%s8199_s1 + $0xe8] sm:$0xff]  }
  0x1b   : > { %5938 = vmatprep.subr.bf16.mxu1 %v6929_v1  ;;  %v6694_v58 = vld [vmem:[%s8199_s1 + $0x120] sm:$0xff]   ;;  %v6696_v59 = vld [vmem:[%s8199_s1 + $0x118] sm:$0xff]   ;;  %v6698_v60 = vld [vmem:[%s8199_s1 + $0x110] sm:$0xff]  }
  0x1c   : > { %v244_v23 = vld [vmem:[#allocation2 + $0x8] sm:$0xff]  ;;  %v243_v24 = vld [vmem:[#allocation2] sm:$0xff]  ;;  %v6697_v63 = vld [vmem:[%s8199_s1 + $0xd8] sm:$0xff]  }
  0x1d   : > { %5911 = vmatpush3.bf16.msra.mxu0 %v6672_v9  ;;  %v249_v26 = vpack.c.bf16 %v244_v23, %v243_v24  ;;  %v246_v29 = vld [vmem:[#allocation2 + $0x20] sm:$0xff]  ;;  %v245_v30 = vld [vmem:[#allocation2 + $0x18] sm:$0xff]  ;;  %v499_v44 = vld [vmem:[#allocation2 + $0xa] sm:$0xff] }
  0x1e   : > { %5939 = vmatpush3.bf16.msra.mxu1 %v6673_v10  ;;  %5912 = vmatprep.subr.bf16.mxu0 %v6929_v1  ;;  %v250_v33 = vpack.c.bf16 %v246_v29, %v245_v30  ;;  %v248_v35 = vld [vmem:[#allocation2 + $0x38] sm:$0xff]  ;;  %v247_v36 = vld [vmem:[#allocation2 + $0x30] sm:$0xff]  ;;  %v498_v42 = vld [vmem:[#allocation2 + $0x2] sm:$0xff] }
  0x1f   : > { %5940 = vmatprep.subr.bf16.mxu1 %v6929_v1  ;;  %v251_v39 = vpack.c.bf16 %v248_v35, %v247_v36  ;;  %v504_v45 = vpack.c.bf16 %v499_v44, %v498_v42  ;;  %v500_v46 = vld [vmem:[#allocation2 + $0x1a] sm:$0xff]  ;;  %v501_v47 = vld [vmem:[#allocation2 + $0x22] sm:$0xff]  ;;  %v502_v49 = vld [vmem:[#allocation2 + $0x32] sm:$0xff] }
  0x20   : > { %v505_v48 = vpack.c.bf16 %v501_v47, %v500_v46  ;;  %v503_v50 = vld [vmem:[#allocation2 + $0x3a] sm:$0xff]  ;;  %v6700_v62 = vld [vmem:[%s8199_s1 + $0x108] sm:$0xff]   ;;  %v6699_v2 = vld [vmem:[%s8199_s1 + $0xd0] sm:$0xff]  }
  0x21   : > { %5913 = vmatpush3.bf16.msra.mxu0 %v6674_v13  ;;  %v506_v51 = vpack.c.bf16 %v503_v50, %v502_v49  ;;  %v6695_v61 = vld [vmem:[%s8199_s1 + $0xe0] sm:$0xff]   ;;  %v7182_v0 = vld [vmem:[#allocation3] sm:$0xff]  ;;  %v6704_v47 = vld [vmem:[%s8199_s1 + $0x178] sm:$0xff]  }
  0x22   : > { %5941 = vmatpush3.bf16.msra.mxu1 %v6675_v14  ;;  %5914 = vmatprep.subr.bf16.mxu0 %v6929_v1  ;;  %v6701_v3 = vld [vmem:[%s8199_s1 + $0xc8] sm:$0xff]   ;;  %v6703_v4 = vld [vmem:[%s8199_s1 + $0xc0] sm:$0xff]  }
  0x23   : > { %5942 = vmatprep.subr.bf16.mxu1 %v6929_v1 }
  0x25   : > { %5915 = vmatpush3.bf16.msra.mxu0 %v6676_v17 }
  0x26   : > { %5943 = vmatpush3.bf16.msra.mxu1 %v6677_v20  ;;  %5916 = vmatprep.subr.bf16.mxu0 %v6929_v1 }
  0x27   : > { %5944 = vmatprep.subr.bf16.mxu1 %v6929_v1 }
  0x29   : > { %5917 = vmatpush3.bf16.msra.mxu0 %v6678_v21 }
  0x2a   : > { %5945 = vmatpush3.bf16.msra.mxu1 %v6679_v22  ;;  %5958 = vmatprep.subr.bf16.mxu0 %v6929_v1 }
  0x2b   : > { %5986 = vmatprep.subr.bf16.mxu1 %v6929_v1 }
  0x2c   : > { %5919 = vmatmul.mubr.bf16.vlgmr.msra.gmra.mxu0 %v268_v25 }
  0x2d   : > { %5947 = vmatmul.mubr.bf16.vlgmr.msra.gmra.mxu1 %v249_v26  ;;  %5959 = vmatpush3.bf16.msra.mxu0 %v6680_v27 }
  0x2e   : > { %5960 = vmatprep.subr.bf16.mxu0 %v6929_v1  ;;  %5922 = vmatprep.mubr.msk.bf16.mxu0 %vm6930_vm0, %v6929_v1 }
  0x2f   : > { %5950 = vmatprep.mubr.msk.bf16.mxu1 %vm6930_vm0, %v6929_v1  ;;  %5987 = vmatpush3.bf16.msra.mxu1 %v6688_v52 }
  0x30   : > { %5988 = vmatprep.subr.bf16.mxu1 %v6929_v1 }
  0x31   : > { %5961 = vmatpush3.bf16.msra.mxu0 %v6681_v28 }
  0x32   : > { %5962 = vmatprep.subr.bf16.mxu0 %v6929_v1 }
  0x33   : > { %5989 = vmatpush3.bf16.msra.mxu1 %v6690_v53 }
  0x34   : > { %5923 = vmatmul.mubr.bf16.gmra.mxu0 %v269_v32  ;;  %5990 = vmatprep.subr.bf16.mxu1 %v6929_v1 }
  0x35   : > { %5963 = vmatpush3.bf16.msra.mxu0 %v6682_v31  ;;  %5951 = vmatmul.mubr.bf16.gmra.mxu1 %v250_v33 }
  0x36   : > { %5964 = vmatprep.subr.bf16.mxu0 %v6929_v1  ;;  %5926 = vmatprep.mubr.msk.bf16.mxu0 %vm6930_vm0, %v6929_v1 }
  0x37   : > { %5954 = vmatprep.mubr.msk.bf16.mxu1 %vm6930_vm0, %v6929_v1  ;;  %5991 = vmatpush3.bf16.msra.mxu1 %v6692_v55 }
  0x38   : > { %5992 = vmatprep.subr.bf16.mxu1 %v6929_v1 }
  0x39   : > { %5965 = vmatpush3.bf16.msra.mxu0 %v6683_v34 }
  0x3a   : > { %5966 = vmatprep.subr.bf16.mxu0 %v6929_v1 }
  0x3b   : > { %5993 = vmatpush3.bf16.msra.mxu1 %v6694_v58 }
  0x3c   : > { %5927 = vmatmul.mubr.bf16.gmra.mxu0 %v270_v38  ;;  %5994 = vmatprep.subr.bf16.mxu1 %v6929_v1 }
  0x3d   : > { %5967 = vmatpush3.bf16.msra.mxu0 %v6684_v37  ;;  %5955 = vmatmul.mubr.bf16.gmra.mxu1 %v251_v39 }
  0x3e   : > { %5968 = vmatprep.subr.bf16.mxu0 %v6929_v1  ;;  %5974 = vmatprep.mubr.msk.bf16.mxu0 %vm6930_vm0, %v6929_v1 }
  0x3f   : > { %6002 = vmatprep.mubr.msk.bf16.mxu1 %vm6930_vm0, %v6929_v1  ;;  %5995 = vmatpush3.bf16.msra.mxu1 %v6696_v59 }
  0x40   : > { %5996 = vmatprep.subr.bf16.mxu1 %v6929_v1 }
  0x41   : > { %5969 = vmatpush3.bf16.msra.mxu0 %v6685_v40 }
  0x42   : > { %5970 = vmatprep.subr.bf16.mxu0 %v6929_v1 }
  0x43   : > { %5997 = vmatpush3.bf16.msra.mxu1 %v6698_v60 }
  0x44   : > { %5998 = vmatprep.subr.bf16.mxu1 %v6929_v1 }
  0x45   : > { %5971 = vmatpush3.bf16.msra.mxu0 %v6686_v41 }
  0x46   : > { %5972 = vmatprep.subr.bf16.mxu0 %v6929_v1 }
  0x47   : > { %5999 = vmatpush3.bf16.msra.mxu1 %v6700_v62  ;;  %v6706_v62 = vld [vmem:[%s8199_s1 + $0x168] sm:$0xff]  }
  0x48   : > { %6000 = vmatprep.subr.bf16.mxu1 %v7182_v0 }
  0x49   : > { %5973 = vmatpush3.bf16.msra.mxu0 %v6687_v43 }
  0x4a   : > { %6014 = vmatprep.subr.bf16.mxu0 %v6929_v1 }
  0x4c   : > { %5975 = vmatmul.mubr.bf16.vlgmr.msra.gmra.mxu0 %v504_v45 }
  0x4d   : > { %5978 = vmatprep.mubr.msk.bf16.mxu0 %vm6930_vm0, %v6929_v1  ;;  %6015 = vmatpush3.bf16.msra.mxu0 %v6689_v54  ;;  %v6705_v54 = vld [vmem:[%s8199_s1 + $0x170] sm:$0xff]  }
  0x4e   : > { %6016 = vmatprep.subr.bf16.mxu0 %v6929_v1 }
  0x51   : > { %6017 = vmatpush3.bf16.msra.mxu0 %v6691_v56 }
  0x52   : > { %6018 = vmatprep.subr.bf16.mxu0 %v6929_v1 }
  0x54   : > { %5979 = vmatmul.mubr.bf16.gmra.mxu0 %v505_v48 }
  0x55   : > { %5982 = vmatprep.mubr.msk.bf16.mxu0 %vm6930_vm0, %v6929_v1  ;;  %6019 = vmatpush3.bf16.msra.mxu0 %v6693_v57 }
  0x56   : > { %6020 = vmatprep.subr.bf16.mxu0 %v6929_v1 }
  0x59   : > { %6021 = vmatpush3.bf16.msra.mxu0 %v6695_v61 }
  0x5a   : > { %6022 = vmatprep.subr.bf16.mxu0 %v6929_v1 }
  0x5c   : > { %5983 = vmatmul.mubr.bf16.gmra.mxu0 %v506_v51 }
  0x5d   : > { %6030 = vmatprep.mubr.msk.bf16.mxu0 %vm6930_vm0, %v6929_v1  ;;  %6023 = vmatpush3.bf16.msra.mxu0 %v6697_v63  ;;  %v6702_v1 = vld [vmem:[%s8199_s1 + $0x100] sm:$0xff]  }
  0x5e   : > { %6024 = vmatprep.subr.bf16.mxu0 %v7182_v0  ;;  %6001 = vmatpush3.bf16.msra.mxu1 %v6702_v1 }
  0x5f   : > { %6042 = vmatprep.subr.bf16.mxu1 %v7182_v0 }
  0x61   : > { %6025 = vmatpush3.bf16.msra.mxu0 %v6699_v2 }
  0x62   : > { %6026 = vmatprep.subr.bf16.mxu0 %v7182_v0 }
  0x65   : > { %6027 = vmatpush3.bf16.msra.mxu0 %v6701_v3 }
  0x66   : > { %6028 = vmatprep.subr.bf16.mxu0 %v7182_v0 }
  0x69   : > { %6029 = vmatpush3.bf16.msra.mxu0 %v6703_v4 }
  0x6a   : > { %6070 = vmatprep.subr.bf16.mxu0 %v7182_v0 }
  0xec   : > { %v370_v5 = vpop.f32.mrf.mxu0 }
  0xed   : > { %v475_v6 = vpop.f32.mrf.mxu1 }
  0xee   : > { %v5920_v7 = vpop.f32.mrf.mxu0  ;;  %v476_v35 = vadd.f32 %v475_v6, %v370_v5 }
  0xef   : > { %v5948_v8 = vpop.f32.mrf.mxu1  ;;  %v6707_v7 = vld [vmem:[%s8199_s1 + $0x160] sm:$0xff]  }
  0xf0   : > { %v373_v9 = vpop.f32.mrf.mxu0 }
  0xf1   : > { %v478_v10 = vpop.f32.mrf.mxu1 }
  0xf2   : > { %v5921_v13 = vpop.f32.mrf.mxu0  ;;  %v479_v39 = vadd.f32 %v478_v10, %v373_v9 }
  0xf3   : > { %v5949_v14 = vpop.f32.mrf.mxu1 }
  0xf4   : > { %v378_v17 = vpop.f32.mrf.mxu0 }
  0xf5   : > { %v483_v20 = vpop.f32.mrf.mxu1 }
  0xf6   : > { %v5924_v21 = vpop.f32.mrf.mxu0  ;;  %v484_v44 = vadd.f32 %v483_v20, %v378_v17  ;;  %v6708_v17 = vld [vmem:[%s8199_s1 + $0x158] sm:$0xff]  }
  0xf7   : > { %v5952_v22 = vpop.f32.mrf.mxu1 }
  0xf8   : > { %v381_v23 = vpop.f32.mrf.mxu0  ;;  %v6709_v22 = vld [vmem:[%s8199_s1 + $0x150] sm:$0xff]  }
  0xf9   : > { %v486_v24 = vpop.f32.mrf.mxu1 }
  0xfa   : > { %v5925_v25 = vpop.f32.mrf.mxu0  ;;  %v487_v51 = vadd.f32 %v486_v24, %v381_v23 }
  0xfb   : > { %v5953_v26 = vpop.f32.mrf.mxu1  ;;  %v6710_v25 = vld [vmem:[%s8199_s1 + $0x148] sm:$0xff]  }
  0xfc   : > { %v386_v27 = vpop.f32.mrf.mxu0 }
  0xfd   : > { %v491_v28 = vpop.f32.mrf.mxu1 }
  0xfe   : > { %v5928_v29 = vpop.f32.mrf.mxu0  ;;  %v492_v57 = vadd.f32 %v491_v28, %v386_v27  ;;  %v6711_v27 = vld [vmem:[%s8199_s1 + $0x140] sm:$0xff]  }
  0xff   : > { %v5956_v30 = vpop.f32.mrf.mxu1 }
 0x100   : > { %v389_v31 = vpop.f32.mrf.mxu0 }
 0x101   : > { %v494_v32 = vpop.f32.mrf.mxu1 }
 0x102   : > { %v5929_v33 = vpop.f32.mrf.mxu0  ;;  %v495_v4 = vadd.f32 %v494_v32, %v389_v31 }
 0x103   : > { %v5957_v34 = vpop.f32.mrf.mxu1 }
 0x10c   : > { %v606_v36 = vpop.f32.mrf.mxu0 }
 0x10d   : > { %v629_v37 = vadd.f32 %v606_v36, %v476_v35 }
 0x10e   : > { %v5976_v38 = vpop.f32.mrf.mxu0 }
 0x10f   : > { %v635_v40 = vmax.f32 %v629_v37, 0.0  ;;  %v6712_v37 = vld [vmem:[%s8200_s2 + $0x38] sm:$0xff]  }
 0x110   : > { %v609_v41 = vpop.f32.mrf.mxu0  ;;  %v6713_v38 = vld [vmem:[%s8200_s2 + $0x78] sm:$0xff]  }
 0x111   : > { %641 = vst [vmem:[#allocation2 + $0x1] sm:$0xff] %v635_v40  ;;  %v630_v42 = vadd.f32 %v609_v41, %v479_v39  ;;  %v6714_v39 = vld [vmem:[%s8200_s2 + $0x30] sm:$0xff]   ;;  %v6716_v41 = vld [vmem:[%s8200_s2 + $0x28] sm:$0xff]  }
 0x112   : > { %v5977_v43 = vpop.f32.mrf.mxu0 }
 0x113   : > { %v636_v45 = vmax.f32 %v630_v42, 0.0  ;;  %v6717_v42 = vld [vmem:[%s8200_s2 + $0x68] sm:$0xff]   ;;  %v6718_v43 = vld [vmem:[%s8200_s2 + $0x20] sm:$0xff]  }
 0x114   : > { %v614_v46 = vpop.f32.mrf.mxu0 }
 0x115   : > { %642 = vst [vmem:[#allocation2 + $0x9] sm:$0xff] %v636_v45  ;;  %v631_v48 = vadd.f32 %v614_v46, %v484_v44  ;;  %v679_v49 = vpack.c.bf16 %v636_v45, %v635_v40  ;;  %v6715_v40 = vld [vmem:[%s8200_s2 + $0x70] sm:$0xff]   ;;  %v6719_v44 = vld [vmem:[%s8200_s2 + $0x60] sm:$0xff]   ;;  %v6720_v45 = vld [vmem:[%s8200_s2 + $0x18] sm:$0xff]  }
 0x116   : > { %v5980_v50 = vpop.f32.mrf.mxu0  ;;  %v6721_v46 = vld [vmem:[%s8200_s2 + $0x58] sm:$0xff]  }
 0x117   : > { %v637_v52 = vmax.f32 %v631_v48, 0.0  ;;  %6003 = vmatmul.mubr.bf16.vlgmr.msra.gmra.mxu1 %v679_v49  ;;  %v6723_v48 = vld [vmem:[%s8200_s2 + $0x50] sm:$0xff]   ;;  %v6724_v49 = vld [vmem:[%s8200_s2 + $0x8] sm:$0xff]  }
 0x118   : > { %v617_v53 = vpop.f32.mrf.mxu0  ;;  %6043 = vmatpush3.bf16.msra.mxu1 %v6704_v47  ;;  %6006 = vmatprep.mubr.msk.bf16.mxu1 %vm6930_vm0, %v7182_v0  ;;  %v647_v61 = vld [vmem:[#allocation2] sm:$0xff]  ;;  %v6722_v47 = vld [vmem:[%s8200_s2 + $0x10] sm:$0xff]   ;;  %v6725_v50 = vld [vmem:[%s8200_s2 + $0x48] sm:$0xff]  }
 0x119   : > { %643 = vst [vmem:[#allocation2 + $0x19] sm:$0xff] %v637_v52  ;;  %v632_v55 = vadd.f32 %v617_v53, %v487_v51  ;;  %6044 = vmatprep.subr.bf16.mxu1 %v7182_v0  ;;  %v6726_v51 = vld [vmem:[%s8200_s2] sm:$0xff]  }
 0x11a   : > { %v5981_v56 = vpop.f32.mrf.mxu0 }
 0x11b   : > { %v638_v58 = vmax.f32 %v632_v55, 0.0 }
 0x11c   : > { %v648_v59 = vld [vmem:[#allocation2 + $0x8] sm:$0xff]  ;;  %v622_v60 = vpop.f32.mrf.mxu0  ;;  %6045 = vmatpush3.bf16.msra.mxu1 %v6705_v54 }
 0x11d   : > { %644 = vst [vmem:[#allocation2 + $0x21] sm:$0xff] %v638_v58  ;;  %v633_v63 = vadd.f32 %v622_v60, %v492_v57  ;;  %v653_v1 = vpack.c.bf16 %v648_v59, %v647_v61  ;;  %6046 = vmatprep.subr.bf16.mxu1 %v7182_v0  ;;  %v680_v2 = vpack.c.bf16 %v638_v58, %v637_v52  ;;  %v909_v28 = vld [vmem:[#allocation2 + $0x2] sm:$0xff]  ;;  %v910_v29 = vld [vmem:[#allocation2 + $0xa] sm:$0xff] }
 0x11e   : > { %v5984_v3 = vpop.f32.mrf.mxu0  ;;  %v915_v30 = vpack.c.bf16 %v910_v29, %v909_v28  ;;  %v6727_v52 = vld [vmem:[%s8200_s2 + $0x40] sm:$0xff]  }
 0x11f   : > { %v639_v5 = vmax.f32 %v633_v63, 0.0  ;;  %6031 = vmatmul.mubr.bf16.vlgmr.msra.gmra.mxu0 %v653_v1  ;;  %6007 = vmatmul.mubr.bf16.gmra.mxu1 %v680_v2 }
 0x120   : > { %v625_v6 = vpop.f32.mrf.mxu0  ;;  %6034 = vmatprep.mubr.msk.bf16.mxu0 %vm6930_vm0, %v7182_v0  ;;  %6047 = vmatpush3.bf16.msra.mxu1 %v6706_v62  ;;  %v649_v14 = vld [vmem:[#allocation2 + $0x18] sm:$0xff] }
 0x121   : > { %645 = vst [vmem:[#allocation2 + $0x31] sm:$0xff] %v639_v5  ;;  %v634_v8 = vadd.f32 %v625_v6, %v495_v4  ;;  %6048 = vmatprep.subr.bf16.mxu1 %v7182_v0  ;;  %6010 = vmatprep.mubr.msk.bf16.mxu1 %vm6930_vm0, %v7182_v0 }
 0x122   : > { %v5985_v9 = vpop.f32.mrf.mxu0  ;;  %6071 = vmatpush3.bf16.msra.mxu0 %v6712_v37 }
 0x123   : > { %v640_v10 = vmax.f32 %v634_v8, 0.0  ;;  %6072 = vmatprep.subr.bf16.mxu0 %v7182_v0 }
 0x124   : > { %v650_v13 = vld [vmem:[#allocation2 + $0x20] sm:$0xff]  ;;  %6049 = vmatpush3.bf16.msra.mxu1 %v6707_v7 }
 0x125   : > { %646 = vst [vmem:[#allocation2 + $0x39] sm:$0xff] %v640_v10  ;;  %v654_v20 = vpack.c.bf16 %v650_v13, %v649_v14  ;;  %6050 = vmatprep.subr.bf16.mxu1 %v7182_v0  ;;  %v681_v21 = vpack.c.bf16 %v640_v10, %v639_v5  ;;  %v911_v31 = vld [vmem:[#allocation2 + $0x1a] sm:$0xff]  ;;  %v912_v32 = vld [vmem:[#allocation2 + $0x22] sm:$0xff] }
 0x126   : > { %v916_v33 = vpack.c.bf16 %v912_v32, %v911_v31  ;;  %6073 = vmatpush3.bf16.msra.mxu0 %v6714_v39 }
 0x127   : > { %6035 = vmatmul.mubr.bf16.gmra.mxu0 %v654_v20  ;;  %6011 = vmatmul.mubr.bf16.gmra.mxu1 %v681_v21 }
 0x128   : > { %6038 = vmatprep.mubr.msk.bf16.mxu0 %vm6930_vm0, %v7182_v0  ;;  %6051 = vmatpush3.bf16.msra.mxu1 %v6708_v17  ;;  %v651_v24 = vld [vmem:[#allocation2 + $0x30] sm:$0xff] }
 0x129   : > { %6052 = vmatprep.subr.bf16.mxu1 %v7182_v0  ;;  %6058 = vmatprep.mubr.msk.bf16.mxu1 %vm6930_vm0, %v7182_v0 }
 0x12a   : > { %6074 = vmatprep.subr.bf16.mxu0 %v7182_v0 }
 0x12b   : > { %6075 = vmatpush3.bf16.msra.mxu0 %v6716_v41 }
 0x12c   : > { %v652_v23 = vld [vmem:[#allocation2 + $0x38] sm:$0xff]  ;;  %6053 = vmatpush3.bf16.msra.mxu1 %v6709_v22  ;;  %6076 = vmatprep.subr.bf16.mxu0 %v7182_v0 }
 0x12d   : > { %v655_v26 = vpack.c.bf16 %v652_v23, %v651_v24  ;;  %6054 = vmatprep.subr.bf16.mxu1 %v7182_v0  ;;  %v913_v34 = vld [vmem:[#allocation2 + $0x32] sm:$0xff]  ;;  %v914_v35 = vld [vmem:[#allocation2 + $0x3a] sm:$0xff] }
 0x12e   : > { %v917_v36 = vpack.c.bf16 %v914_v35, %v913_v34 }
 0x12f   : > { %6039 = vmatmul.mubr.bf16.gmra.mxu0 %v655_v26 }
 0x130   : > { %6055 = vmatpush3.bf16.msra.mxu1 %v6710_v25  ;;  %6086 = vmatprep.mubr.msk.bf16.mxu0 %vm6930_vm0, %v7182_v0 }
 0x131   : > { %6056 = vmatprep.subr.bf16.mxu1 %v7182_v0  ;;  %6077 = vmatpush3.bf16.msra.mxu0 %v6718_v43 }
 0x132   : > { %6078 = vmatprep.subr.bf16.mxu0 %v7182_v0 }
 0x134   : > { %6057 = vmatpush3.bf16.msra.mxu1 %v6711_v27 }
 0x135   : > { %6098 = vmatprep.subr.bf16.mxu1 %v7182_v0  ;;  %6079 = vmatpush3.bf16.msra.mxu0 %v6720_v45 }
 0x136   : > { %6080 = vmatprep.subr.bf16.mxu0 %v7182_v0 }
 0x137   : > { %6059 = vmatmul.mubr.bf16.vlgmr.msra.gmra.mxu1 %v915_v30 }
 0x138   : > { %6062 = vmatprep.mubr.msk.bf16.mxu1 %vm6930_vm0, %v7182_v0  ;;  %6099 = vmatpush3.bf16.msra.mxu1 %v6713_v38 }
 0x139   : > { %6100 = vmatprep.subr.bf16.mxu1 %v7182_v0  ;;  %6081 = vmatpush3.bf16.msra.mxu0 %v6722_v47 }
 0x13a   : > { %6082 = vmatprep.subr.bf16.mxu0 %v7182_v0 }
 0x13c   : > { %6101 = vmatpush3.bf16.msra.mxu1 %v6715_v40 }
 0x13d   : > { %6102 = vmatprep.subr.bf16.mxu1 %v7182_v0  ;;  %6083 = vmatpush3.bf16.msra.mxu0 %v6724_v49 }
 0x13e   : > { %6084 = vmatprep.subr.bf16.mxu0 %v7182_v0 }
 0x13f   : > { %6063 = vmatmul.mubr.bf16.gmra.mxu1 %v916_v33 }
 0x140   : > { %6066 = vmatprep.mubr.msk.bf16.mxu1 %vm6930_vm0, %v7182_v0  ;;  %6103 = vmatpush3.bf16.msra.mxu1 %v6717_v42 }
 0x141   : > { %6104 = vmatprep.subr.bf16.mxu1 %v7182_v0  ;;  %6085 = vmatpush3.bf16.msra.mxu0 %v6726_v51 }
 0x144   : > { %6105 = vmatpush3.bf16.msra.mxu1 %v6719_v44 }
 0x145   : > { %6106 = vmatprep.subr.bf16.mxu1 %v7182_v0 }
 0x147   : > { %6067 = vmatmul.mubr.bf16.gmra.mxu1 %v917_v36 }
 0x148   : > { %6114 = vmatprep.mubr.msk.bf16.mxu1 %vm6930_vm0, %v7182_v0  ;;  %6107 = vmatpush3.bf16.msra.mxu1 %v6721_v46 }
 0x149   : > { %6108 = vmatprep.subr.bf16.mxu1 %v7182_v0 }
 0x14c   : > { %6109 = vmatpush3.bf16.msra.mxu1 %v6723_v48 }
 0x14d   : > { %6110 = vmatprep.subr.bf16.mxu1 %v7182_v0 }
 0x150   : > { %6111 = vmatpush3.bf16.msra.mxu1 %v6725_v50 }
 0x151   : > { %6112 = vmatprep.subr.bf16.mxu1 %v7182_v0 }
 0x154   : > { %6113 = vmatpush3.bf16.msra.mxu1 %v6727_v52 }
 0x1d7   : > { %v781_v53 = vpop.f32.mrf.mxu1 }
 0x1d9   : > { %v6004_v54 = vpop.f32.mrf.mxu1 }
 0x1db   : > { %v784_v55 = vpop.f32.mrf.mxu1 }
 0x1dd   : > { %v6005_v56 = vpop.f32.mrf.mxu1 }
 0x1de   : > { %v6731_v56 = vld [vmem:[%s8199_s1 + $0x330] sm:$0xff]  }
 0x1df   : > { %v886_v57 = vpop.f32.mrf.mxu0  ;;  %v789_v58 = vpop.f32.mrf.mxu1 }
 0x1e0   : > { %v887_v20 = vadd.f32 %v886_v57, %v781_v53  ;;  %v6732_v57 = vld [vmem:[%s8199_s1 + $0x368] sm:$0xff]  }
 0x1e1   : > { %v6032_v59 = vpop.f32.mrf.mxu0  ;;  %v6008_v60 = vpop.f32.mrf.mxu1 }
 0x1e2   : > { %v6734_v59 = vld [vmem:[%s8199_s1 + $0x360] sm:$0xff]  }
 0x1e3   : > { %v889_v61 = vpop.f32.mrf.mxu0  ;;  %v792_v62 = vpop.f32.mrf.mxu1  ;;  %v6735_v60 = vld [vmem:[%s8199_s1 + $0x320] sm:$0xff]  }
 0x1e4   : > { %v890_v24 = vadd.f32 %v889_v61, %v784_v55  ;;  %v6729_v55 = vld [vmem:[%s8199_s1 + $0x338] sm:$0xff]  }
 0x1e5   : > { %v6033_v63 = vpop.f32.mrf.mxu0  ;;  %v6009_v1 = vpop.f32.mrf.mxu1  ;;  %6146 = vmatprep.subr.bf16.mxu1 %v6729_v55  ;;  %v6736_v61 = vld [vmem:[%s8199_s1 + $0x358] sm:$0xff]  }
 0x1e6   : > { %v6738_v63 = vld [vmem:[%s8199_s1 + $0x350] sm:$0xff]  }
 0x1e7   : > { %v894_v2 = vpop.f32.mrf.mxu0  ;;  %v797_v3 = vpop.f32.mrf.mxu1  ;;  %v6739_v1 = vld [vmem:[%s8199_s1 + $0x310] sm:$0xff]  }
 0x1e8   : > { %v895_v30 = vadd.f32 %v894_v2, %v789_v58  ;;  %v6733_v58 = vld [vmem:[%s8199_s1 + $0x328] sm:$0xff]  }
 0x1e9   : > { %v6036_v4 = vpop.f32.mrf.mxu0  ;;  %v6012_v5 = vpop.f32.mrf.mxu1  ;;  %v6740_v2 = vld [vmem:[%s8199_s1 + $0x348] sm:$0xff]  }
 0x1ea   : > { %v6742_v4 = vld [vmem:[%s8199_s1 + $0x340] sm:$0xff]  }
 0x1eb   : > { %v897_v6 = vpop.f32.mrf.mxu0  ;;  %v800_v7 = vpop.f32.mrf.mxu1  ;;  %v6743_v5 = vld [vmem:[%s8199_s1 + $0x300] sm:$0xff]  }
 0x1ec   : > { %v898_v36 = vadd.f32 %v897_v6, %v792_v62  ;;  %v6737_v62 = vld [vmem:[%s8199_s1 + $0x318] sm:$0xff]  }
 0x1ed   : > { %v6037_v8 = vpop.f32.mrf.mxu0  ;;  %v6013_v9 = vpop.f32.mrf.mxu1  ;;  %v7379_v6 = vld [vmem:[%s8199_s1 + $0x3b8] sm:$0xff]  }
 0x1ef   : > { %v902_v10 = vpop.f32.mrf.mxu0 }
 0x1f1   : > { %v6040_v13 = vpop.f32.mrf.mxu0 }
 0x1f3   : > { %v905_v14 = vpop.f32.mrf.mxu0 }
 0x1f4   : > { %v906_v46 = vadd.f32 %v905_v14, %v800_v7 }
 0x1f5   : > { %v6041_v17 = vpop.f32.mrf.mxu0 }
 0x1f7   : > { %v1017_v21 = vpop.f32.mrf.mxu1 }
 0x1f8   : > { %v1040_v22 = vadd.f32 %v1017_v21, %v887_v20 }
 0x1f9   : > { %v6060_v23 = vpop.f32.mrf.mxu1 }
 0x1fa   : > { %v1046_v25 = vadd.f32 %v1040_v22, %v7036_v11 }
 0x1fb   : > { %v1020_v26 = vpop.f32.mrf.mxu1 }
 0x1fc   : > { %v1052_v27 = vmax.f32 %v1046_v25, 0.0  ;;  %v1041_v28 = vadd.f32 %v1020_v26, %v890_v24 }
 0x1fd   : > { %v6061_v29 = vpop.f32.mrf.mxu1 }
 0x1fe   : > { %1058 = vst [vmem:[#allocation2 + $0x1] sm:$0xff] %v1052_v27  ;;  %v1047_v31 = vadd.f32 %v1041_v28, %v7038_v12  ;;  %v903_v12 = vadd.f32 %v902_v10, %v797_v3  ;;  %v6741_v3 = vld [vmem:[%s8199_s1 + $0x308] sm:$0xff]  }
 0x1ff   : > { %v1025_v32 = vpop.f32.mrf.mxu1 }
 0x200   : > { %v1053_v33 = vmax.f32 %v1047_v31, 0.0  ;;  %v1042_v34 = vadd.f32 %v1025_v32, %v895_v30 }
 0x201   : > { %v6064_v35 = vpop.f32.mrf.mxu1 }
 0x202   : > { %1059 = vst [vmem:[#allocation2 + $0x9] sm:$0xff] %v1053_v33  ;;  %v1064_v37 = vpack.c.bf16 %v1053_v33, %v1052_v27  ;;  %v1048_v38 = vadd.f32 %v1042_v34, %v7049_v15 }
 0x203   : > { %v1028_v39 = vpop.f32.mrf.mxu1 }
 0x204   : > { %v1054_v40 = vmax.f32 %v1048_v38, 0.0  ;;  %v1043_v11 = vadd.f32 %v1028_v39, %v898_v36  ;;  %6087 = vmatmul.mubr.bf16.vlgmr.msra.gmra.mxu0 %v1064_v37  ;;  %6115 = vmatmul.mubr.bf16.vlgmr.msra.gmra.mxu1 %v1064_v37 }
 0x205   : > { %v6065_v41 = vpop.f32.mrf.mxu1  ;;  %6090 = vmatprep.mubr.msk.bf16.mxu0 %vm6930_vm0, %v7182_v0  ;;  %6118 = vmatprep.mubr.msk.bf16.mxu1 %vm6930_vm0, %v7182_v0 }
 0x206   : > { %1060 = vst [vmem:[#allocation2 + $0x19] sm:$0xff] %v1054_v40  ;;  %v1049_v42 = vadd.f32 %v1043_v11, %v7052_v16  ;;  %6147 = vmatpush3.bf16.msra.mxu1 %v6729_v55 }
 0x207   : > { %v1033_v43 = vpop.f32.mrf.mxu1  ;;  %6148 = vmatprep.subr.bf16.mxu1 %v6731_v56 }
 0x208   : > { %v1055_v44 = vmax.f32 %v1049_v42, 0.0  ;;  %v1044_v45 = vadd.f32 %v1033_v43, %v903_v12 }
 0x209   : > { %v6068_v15 = vpop.f32.mrf.mxu1 }
 0x20a   : > { %1061 = vst [vmem:[#allocation2 + $0x21] sm:$0xff] %v1055_v44  ;;  %v1050_v47 = vadd.f32 %v1044_v45, %v7059_v18  ;;  %v1065_v48 = vpack.c.bf16 %v1055_v44, %v1054_v40  ;;  %v6728_v18 = vld [vmem:[%s8199_s1 + $0x378] sm:$0xff]   ;;  %6149 = vmatpush3.bf16.msra.mxu1 %v6731_v56 }
 0x20b   : > { %v1036_v49 = vpop.f32.mrf.mxu1  ;;  %6126 = vmatprep.subr.bf16.mxu0 %v6728_v18  ;;  %6150 = vmatprep.subr.bf16.mxu1 %v6733_v58 }
 0x20c   : > { %v1056_v50 = vmax.f32 %v1050_v47, 0.0  ;;  %v1045_v51 = vadd.f32 %v1036_v49, %v906_v46  ;;  %6091 = vmatmul.mubr.bf16.gmra.mxu0 %v1065_v48  ;;  %6119 = vmatmul.mubr.bf16.gmra.mxu1 %v1065_v48 }
 0x20d   : > { %v6069_v52 = vpop.f32.mrf.mxu1  ;;  %6094 = vmatprep.mubr.msk.bf16.mxu0 %vm6930_vm0, %v7182_v0  ;;  %6122 = vmatprep.mubr.msk.bf16.mxu1 %vm6930_vm0, %v7182_v0 }
 0x20e   : > { %1062 = vst [vmem:[#allocation2 + $0x31] sm:$0xff] %v1056_v50  ;;  %v1051_v16 = vadd.f32 %v1045_v51, %v7061_v19  ;;  %6127 = vmatpush3.bf16.msra.mxu0 %v6728_v18  ;;  %v6730_v19 = vld [vmem:[%s8199_s1 + $0x370] sm:$0xff]   ;;  %6151 = vmatpush3.bf16.msra.mxu1 %v6733_v58 }
 0x20f   : > { %6128 = vmatprep.subr.bf16.mxu0 %v6730_v19  ;;  %6152 = vmatprep.subr.bf16.mxu1 %v6735_v60 }
 0x210   : > { %v1057_v53 = vmax.f32 %v1051_v16, 0.0 }
 0x212   : > { %1063 = vst [vmem:[#allocation2 + $0x39] sm:$0xff] %v1057_v53  ;;  %v1066_v54 = vpack.c.bf16 %v1057_v53, %v1056_v50  ;;  %6129 = vmatpush3.bf16.msra.mxu0 %v6730_v19  ;;  %6153 = vmatpush3.bf16.msra.mxu1 %v6735_v60 }
 0x213   : > { %6130 = vmatprep.subr.bf16.mxu0 %v6732_v57  ;;  %6154 = vmatprep.subr.bf16.mxu1 %v6737_v62 }
 0x214   : > { %6095 = vmatmul.mubr.bf16.gmra.mxu0 %v1066_v54  ;;  %6123 = vmatmul.mubr.bf16.gmra.mxu1 %v1066_v54 }
 0x216   : > { %6131 = vmatpush3.bf16.msra.mxu0 %v6732_v57  ;;  %6155 = vmatpush3.bf16.msra.mxu1 %v6737_v62 }
 0x217   : > { %6132 = vmatprep.subr.bf16.mxu0 %v6734_v59  ;;  %6156 = vmatprep.subr.bf16.mxu1 %v6739_v1 }
 0x21a   : > { %6133 = vmatpush3.bf16.msra.mxu0 %v6734_v59  ;;  %6157 = vmatpush3.bf16.msra.mxu1 %v6739_v1  ;;  %v6747_v1 = vld [vmem:[%s8199_s1 + $0x3a0] sm:$0xff]  }
 0x21b   : > { %6134 = vmatprep.subr.bf16.mxu0 %v6736_v61  ;;  %6158 = vmatprep.subr.bf16.mxu1 %v6741_v3 }
 0x21e   : > { %6135 = vmatpush3.bf16.msra.mxu0 %v6736_v61  ;;  %6159 = vmatpush3.bf16.msra.mxu1 %v6741_v3  ;;  %v6745_v61 = vld [vmem:[%s8199_s1 + $0x3b0] sm:$0xff]  }
 0x21f   : > { %6136 = vmatprep.subr.bf16.mxu0 %v6738_v63  ;;  %6160 = vmatprep.subr.bf16.mxu1 %v6743_v5  ;;  %v6749_v3 = vld [vmem:[%s8199_s1 + $0x390] sm:$0xff]  }
 0x222   : > { %6137 = vmatpush3.bf16.msra.mxu0 %v6738_v63  ;;  %6161 = vmatpush3.bf16.msra.mxu1 %v6743_v5  ;;  %v6746_v63 = vld [vmem:[%s8199_s1 + $0x3a8] sm:$0xff]   ;;  %v6751_v5 = vld [vmem:[%s8199_s1 + $0x380] sm:$0xff]  }
 0x223   : > { %6138 = vmatprep.subr.bf16.mxu0 %v6740_v2 }
 0x226   : > { %6139 = vmatpush3.bf16.msra.mxu0 %v6740_v2  ;;  %v6748_v2 = vld [vmem:[%s8199_s1 + $0x398] sm:$0xff]  }
 0x227   : > { %6140 = vmatprep.subr.bf16.mxu0 %v6742_v4 }
 0x22a   : > { %6141 = vmatpush3.bf16.msra.mxu0 %v6742_v4  ;;  %v6750_v4 = vld [vmem:[%s8199_s1 + $0x388] sm:$0xff]  }
 0x22b   : > { %6166 = vmatprep.subr.bf16.mxu0 %v7379_v6 }
 0x2c4   : > { %v1165_v7 = vpop.f32.mrf.mxu0  ;;  %v1287_v8 = vpop.f32.mrf.mxu1 }
 0x2c5   : > { %v1313_v9 = vrot.slane %v1287_v8, 1  ;;  %v6752_v8 = vld [vmem:[%s8199_s1 + $0x438] sm:$0xff]  }
 0x2c6   : > { %v6088_v10 = vpop.f32.mrf.mxu0  ;;  %v6116_v13 = vpop.f32.mrf.mxu1  ;;  %6186 = vmatprep.subr.bf16.mxu1 %v6752_v8 }
 0x2c7   : > { %v1319_v14 = vadd.f32 %v1313_v9, %v1165_v7  ;;  %v6753_v9 = vld [vmem:[%s8199_s1 + $0x3f8] sm:$0xff]   ;;  %v6754_v10 = vld [vmem:[%s8199_s1 + $0x430] sm:$0xff]  }
 0x2c8   : > { %v1168_v17 = vpop.f32.mrf.mxu0  ;;  %v1290_v20 = vpop.f32.mrf.mxu1  ;;  %v6755_v13 = vld [vmem:[%s8199_s1 + $0x3f0] sm:$0xff]  }
 0x2c9   : > { %v1322_v21 = vmax.f32 %v1319_v14, 0.0  ;;  %v1340_v22 = vrot.slane %v1290_v20, 1  ;;  %v6756_v14 = vld [vmem:[%s8199_s1 + $0x428] sm:$0xff]   ;;  %v6758_v20 = vld [vmem:[%s8199_s1 + $0x420] sm:$0xff]  }
 0x2ca   : > { %v6089_v23 = vpop.f32.mrf.mxu0  ;;  %v6117_v24 = vpop.f32.mrf.mxu1 }
 0x2cb   : > { %1325 = vst [vmem:[#allocation3 + $0x1] sm:$0x1] %v1322_v21  ;;  %1328 = vst [vmem:[#allocation3] sm:$0x4] %v1322_v21  ;;  %v1346_v25 = vadd.f32 %v1340_v22, %v1168_v17  ;;  %v6757_v17 = vld [vmem:[%s8199_s1 + $0x3e8] sm:$0xff]   ;;  %v6762_v22 = vld [vmem:[%s8199_s1 + $0x410] sm:$0xff]  }
 0x2cc   : > { %1331 = vst [vmem:[#allocation3 - $0x1] sm:$0x10] %v1322_v21  ;;  %1334 = vst [vmem:[#allocation3 - $0x2] sm:$0x40] %v1322_v21  ;;  %v1173_v26 = vpop.f32.mrf.mxu0  ;;  %v1295_v27 = vpop.f32.mrf.mxu1  ;;  %v6760_v21 = vld [vmem:[%s8199_s1 + $0x418] sm:$0xff]   ;;  %v6759_v23 = vld [vmem:[%s8199_s1 + $0x3e0] sm:$0xff]  }
 0x2cd   : > { %v1349_v28 = vmax.f32 %v1346_v25, 0.0  ;;  %v1314_v29 = vrot.slane %v1295_v27, 1  ;;  %v6764_v24 = vld [vmem:[%s8199_s1 + $0x408] sm:$0xff]   ;;  %v6761_v25 = vld [vmem:[%s8199_s1 + $0x3d8] sm:$0xff]   ;;  %v6763_v27 = vld [vmem:[%s8199_s1 + $0x3d0] sm:$0xff]  }
 0x2ce   : > { %v6092_v30 = vpop.f32.mrf.mxu0  ;;  %v6120_v31 = vpop.f32.mrf.mxu1 }
 0x2cf   : > { %1352 = vst [vmem:[#allocation3 + $0x5] sm:$0x1] %v1349_v28  ;;  %1355 = vst [vmem:[#allocation3 + $0x4] sm:$0x4] %v1349_v28  ;;  %v1320_v32 = vadd.f32 %v1314_v29, %v1173_v26  ;;  %v6766_v26 = vld [vmem:[%s8199_s1 + $0x400] sm:$0xff]   ;;  %v6768_v29 = vld [vmem:[%s8199_s1 + $0x478] sm:$0xff]  }
 0x2d0   : > { %1358 = vst [vmem:[#allocation3 + $0x3] sm:$0x10] %v1349_v28  ;;  %1361 = vst [vmem:[#allocation3 + $0x2] sm:$0x40] %v1349_v28  ;;  %v1176_v33 = vpop.f32.mrf.mxu0  ;;  %v1298_v34 = vpop.f32.mrf.mxu1  ;;  %v6765_v28 = vld [vmem:[%s8199_s1 + $0x3c8] sm:$0xff]   ;;  %v6767_v30 = vld [vmem:[%s8199_s1 + $0x3c0] sm:$0xff]  }
 0x2d1   : > { %v1323_v35 = vmax.f32 %v1320_v32, 0.0  ;;  %v1341_v36 = vrot.slane %v1298_v34, 1 }
 0x2d2   : > { %v6093_v37 = vpop.f32.mrf.mxu0  ;;  %v6121_v38 = vpop.f32.mrf.mxu1 }
 0x2d3   : > { %1326 = vst [vmem:[#allocation3 + $0x11] sm:$0x1] %v1323_v35  ;;  %1329 = vst [vmem:[#allocation3 + $0x10] sm:$0x4] %v1323_v35  ;;  %v1347_v39 = vadd.f32 %v1341_v36, %v1176_v33 }
 0x2d4   : > { %1332 = vst [vmem:[#allocation3 + $0xf] sm:$0x10] %v1323_v35  ;;  %1335 = vst [vmem:[#allocation3 + $0xe] sm:$0x40] %v1323_v35  ;;  %v1181_v40 = vpop.f32.mrf.mxu0  ;;  %v1303_v11 = vpop.f32.mrf.mxu1 }
 0x2d5   : > { %v1350_v41 = vmax.f32 %v1347_v39, 0.0  ;;  %v1315_v12 = vrot.slane %v1303_v11, 1 }
 0x2d6   : > { %v6096_v42 = vpop.f32.mrf.mxu0  ;;  %v6124_v43 = vpop.f32.mrf.mxu1 }
 0x2d7   : > { %1353 = vst [vmem:[#allocation3 + $0x15] sm:$0x1] %v1350_v41  ;;  %1356 = vst [vmem:[#allocation3 + $0x14] sm:$0x4] %v1350_v41  ;;  %v1321_v44 = vadd.f32 %v1315_v12, %v1181_v40  ;;  %v7382_v52 = vld [vmem:[#allocation3 + $0x1] sm:$0xff] }
 0x2d8   : > { %1359 = vst [vmem:[#allocation3 + $0x13] sm:$0x10] %v1350_v41  ;;  %1362 = vst [vmem:[#allocation3 + $0x12] sm:$0x40] %v1350_v41  ;;  %v1184_v45 = vpop.f32.mrf.mxu0  ;;  %v1306_v15 = vpop.f32.mrf.mxu1  ;;  %v1367_v53 = vld [vmem:[#allocation3] sm:$0xff] }
 0x2d9   : > { %v1324_v46 = vmax.f32 %v1321_v44, 0.0  ;;  %v1342_v47 = vrot.slane %v1306_v15, 1  ;;  %v1600_v60 = vld [vmem:[#allocation3 + $0x2] sm:$0xff] }
 0x2da   : > { %v6097_v48 = vpop.f32.mrf.mxu0  ;;  %v6125_v49 = vpop.f32.mrf.mxu1 }
 0x2db   : > { %1327 = vst [vmem:[#allocation3 + $0x21] sm:$0x1] %v1324_v46  ;;  %1330 = vst [vmem:[#allocation3 + $0x20] sm:$0x4] %v1324_v46  ;;  %v1348_v50 = vadd.f32 %v1342_v47, %v1184_v45 }
 0x2dc   : > { %1333 = vst [vmem:[#allocation3 + $0x1f] sm:$0x10] %v1324_v46  ;;  %1336 = vst [vmem:[#allocation3 + $0x1e] sm:$0x40] %v1324_v46 }
 0x2dd   : > { %v1351_v51 = vmax.f32 %v1348_v50, 0.0 }
 0x2df   : > { %v7384_v16 = vld [vmem:[#allocation3 + $0x11] sm:$0xff]  ;;  %1354 = vst [vmem:[#allocation3 + $0x25] sm:$0x1] %v1351_v51  ;;  %1357 = vst [vmem:[#allocation3 + $0x24] sm:$0x4] %v1351_v51 }
 0x2e0   : > { %v1368_v54 = vld [vmem:[#allocation3 + $0x10] sm:$0xff]  ;;  %1360 = vst [vmem:[#allocation3 + $0x23] sm:$0x10] %v1351_v51  ;;  %1363 = vst [vmem:[#allocation3 + $0x22] sm:$0x40] %v1351_v51  ;;  %v1389_v18 = vpack.c.bf16 %v7384_v16, %v7382_v52  ;;  %v6769_v51 = vld [vmem:[%s8199_s1 + $0x470] sm:$0xff]  }
 0x2e1   : > { %v1370_v55 = vpack.c.bf16 %v1368_v54, %v1367_v53  ;;  %v1601_v19 = vld [vmem:[#allocation3 + $0x12] sm:$0xff]  ;;  %v6770_v53 = vld [vmem:[%s8199_s1 + $0x468] sm:$0xff]  }
 0x2e2   : > { %6142 = vmatprep.mubr.bf16.mxu0 %v1389_v18  ;;  %v1603_v62 = vpack.c.bf16 %v1601_v19, %v1600_v60 }
 0x2e3   : > { %6162 = vmatprep.mubr.bf16.mxu1 %v1370_v55 }
 0x2e7   : > { %v1369_v56 = vld [vmem:[#allocation3 + $0x20] sm:$0xff] }
 0x2e8   : > { %v7388_v57 = vld [vmem:[#allocation3 + $0x21] sm:$0xff]  ;;  %v1371_v59 = vpack.c.bf16 %v1369_v56, %v1369_v56 }
 0x2e9   : > { %v1390_v58 = vpack.c.bf16 %v7388_v57, %v7388_v57 }
 0x2ea   : > { %6163 = vmatmul.mubr.bf16.vlgmr.msra.gmra.mxu1 %v1371_v59 }
 0x2eb   : > { %6143 = vmatmul.mubr.bf16.vlgmr.msra.gmra.mxu0 %v1390_v58  ;;  %6187 = vmatpush3.bf16.msra.mxu1 %v6752_v8  ;;  %v6779_v8 = vld [vmem:[%s8200_s2 + $0xf0] sm:$0xff]  }
 0x2ec   : > { %6167 = vmatpush3.bf16.msra.mxu0 %v7379_v6  ;;  %6182 = vmatprep.mubr.bf16.mxu0 %v1603_v62  ;;  %v1602_v6 = vld [vmem:[#allocation3 + $0x22] sm:$0xff]  ;;  %v6772_v62 = vld [vmem:[%s8199_s1 + $0x458] sm:$0xff]  }
 0x2ed   : > { %6168 = vmatprep.subr.bf16.mxu0 %v6745_v61  ;;  %v1604_v7 = vpack.c.bf16 %v1602_v6, %v1602_v6  ;;  %6188 = vmatprep.subr.bf16.mxu1 %v6754_v10  ;;  %v6777_v6 = vld [vmem:[%s8200_s2 + $0xf8] sm:$0xff]  }
 0x2ef   : > { %6189 = vmatpush3.bf16.msra.mxu1 %v6754_v10  ;;  %v6781_v10 = vld [vmem:[%s8200_s2 + $0xe8] sm:$0xff]  }
 0x2f0   : > { %6169 = vmatpush3.bf16.msra.mxu0 %v6745_v61  ;;  %6190 = vmatprep.subr.bf16.mxu1 %v6756_v14  ;;  %v6771_v61 = vld [vmem:[%s8199_s1 + $0x460] sm:$0xff]  }
 0x2f1   : > { %6170 = vmatprep.subr.bf16.mxu0 %v6746_v63 }
 0x2f3   : > { %6191 = vmatpush3.bf16.msra.mxu1 %v6756_v14  ;;  %v6783_v14 = vld [vmem:[%s8200_s2 + $0xe0] sm:$0xff]  }
 0x2f4   : > { %6171 = vmatpush3.bf16.msra.mxu0 %v6746_v63  ;;  %6192 = vmatprep.subr.bf16.mxu1 %v6758_v20  ;;  %v6773_v63 = vld [vmem:[%s8199_s1 + $0x450] sm:$0xff]  }
 0x2f5   : > { %6172 = vmatprep.subr.bf16.mxu0 %v6747_v1 }
 0x2f7   : > { %6193 = vmatpush3.bf16.msra.mxu1 %v6758_v20  ;;  %v6785_v20 = vld [vmem:[%s8200_s2 + $0xd8] sm:$0xff]  }
 0x2f8   : > { %6173 = vmatpush3.bf16.msra.mxu0 %v6747_v1  ;;  %6194 = vmatprep.subr.bf16.mxu1 %v6760_v21  ;;  %v6774_v1 = vld [vmem:[%s8199_s1 + $0x448] sm:$0xff]  }
 0x2f9   : > { %6174 = vmatprep.subr.bf16.mxu0 %v6748_v2 }
 0x2fb   : > { %6195 = vmatpush3.bf16.msra.mxu1 %v6760_v21  ;;  %v6786_v21 = vld [vmem:[%s8200_s2 + $0x90] sm:$0xff]  }
 0x2fc   : > { %6175 = vmatpush3.bf16.msra.mxu0 %v6748_v2  ;;  %6196 = vmatprep.subr.bf16.mxu1 %v6762_v22  ;;  %v6775_v2 = vld [vmem:[%s8199_s1 + $0x440] sm:$0xff]  }
 0x2fd   : > { %6176 = vmatprep.subr.bf16.mxu0 %v6749_v3 }
 0x2ff   : > { %6197 = vmatpush3.bf16.msra.mxu1 %v6762_v22  ;;  %v6787_v22 = vld [vmem:[%s8200_s2 + $0xd0] sm:$0xff]  }
 0x300   : > { %6177 = vmatpush3.bf16.msra.mxu0 %v6749_v3  ;;  %6198 = vmatprep.subr.bf16.mxu1 %v6764_v24 }
 0x301   : > { %6178 = vmatprep.subr.bf16.mxu0 %v6750_v4 }
 0x303   : > { %6199 = vmatpush3.bf16.msra.mxu1 %v6764_v24  ;;  %v6789_v24 = vld [vmem:[%s8200_s2 + $0xc8] sm:$0xff]  }
 0x304   : > { %6179 = vmatpush3.bf16.msra.mxu0 %v6750_v4  ;;  %6200 = vmatprep.subr.bf16.mxu1 %v6766_v26 }
 0x305   : > { %6180 = vmatprep.subr.bf16.mxu0 %v6751_v5 }
 0x307   : > { %6201 = vmatpush3.bf16.msra.mxu1 %v6766_v26  ;;  %v6791_v26 = vld [vmem:[%s8200_s2 + $0xc0] sm:$0xff]  }
 0x308   : > { %6181 = vmatpush3.bf16.msra.mxu0 %v6751_v5  ;;  %6226 = vmatprep.subr.bf16.mxu1 %v6768_v29  ;;  %v6776_v5 = vld [vmem:[%s8200_s2 + $0xb8] sm:$0xff]  }
 0x309   : > { %6206 = vmatprep.subr.bf16.mxu0 %v6753_v9 }
 0x30b   : > { %6183 = vmatmul.mubr.bf16.vlgmr.msra.gmra.mxu0 %v1604_v7  ;;  %v6778_v7 = vld [vmem:[%s8200_s2 + $0xb0] sm:$0xff]  }
 0x30c   : > { %6207 = vmatpush3.bf16.msra.mxu0 %v6753_v9  ;;  %v6780_v9 = vld [vmem:[%s8200_s2 + $0xa8] sm:$0xff]  }
 0x30d   : > { %6208 = vmatprep.subr.bf16.mxu0 %v6755_v13 }
 0x310   : > { %6209 = vmatpush3.bf16.msra.mxu0 %v6755_v13  ;;  %v6782_v13 = vld [vmem:[%s8200_s2 + $0xa0] sm:$0xff]  }
 0x311   : > { %6210 = vmatprep.subr.bf16.mxu0 %v6757_v17 }
 0x314   : > { %6211 = vmatpush3.bf16.msra.mxu0 %v6757_v17  ;;  %v6784_v17 = vld [vmem:[%s8200_s2 + $0x98] sm:$0xff]  }
 0x315   : > { %6212 = vmatprep.subr.bf16.mxu0 %v6759_v23 }
 0x318   : > { %6213 = vmatpush3.bf16.msra.mxu0 %v6759_v23  ;;  %v6788_v23 = vld [vmem:[%s8200_s2 + $0x88] sm:$0xff]  }
 0x319   : > { %6214 = vmatprep.subr.bf16.mxu0 %v6761_v25 }
 0x31c   : > { %6215 = vmatpush3.bf16.msra.mxu0 %v6761_v25  ;;  %v6790_v25 = vld [vmem:[%s8200_s2 + $0x80] sm:$0xff]  }
 0x31d   : > { %6216 = vmatprep.subr.bf16.mxu0 %v6763_v27 }
 0x320   : > { %6217 = vmatpush3.bf16.msra.mxu0 %v6763_v27  ;;  %v6792_v27 = vld [vmem:[%s8201_s3 + $0xb8] sm:$0xff]  }
 0x321   : > { %6218 = vmatprep.subr.bf16.mxu0 %v6765_v28 }
 0x324   : > { %6219 = vmatpush3.bf16.msra.mxu0 %v6765_v28  ;;  %v6793_v28 = vld [vmem:[%s8201_s3 + $0xf8] sm:$0xff]  }
 0x325   : > { %6220 = vmatprep.subr.bf16.mxu0 %v6767_v30 }
 0x328   : > { %6221 = vmatpush3.bf16.msra.mxu0 %v6767_v30 }
 0x329   : > { %6246 = vmatprep.subr.bf16.mxu0 %v6776_v5 }
 0x3aa   : > { %v6164_v32 = vpop.f32.mrf.mxu1 }
 0x3ab   : > { %v6144_v31 = vpop.f32.mrf.mxu0 }
 0x3ac   : > { %v1586_v34 = vpop.f32.mrf.mxu1  ;;  %v1595_v38 = vadd.f32 %v6164_v32, %v6144_v31 }
 0x3ad   : > { %v1490_v33 = vpop.f32.mrf.mxu0 }
 0x3ae   : > { %v6165_v36 = vpop.f32.mrf.mxu1  ;;  %v1587_v40 = vadd.f32 %v1586_v34, %v1490_v33 }
 0x3af   : > { %v6145_v35 = vpop.f32.mrf.mxu0 }
 0x3b0   : > { %v1589_v41 = vpop.f32.mrf.mxu1 }
 0x3b1   : > { %v1493_v37 = vpop.f32.mrf.mxu0 }
 0x3b2   : > { %v1590_v45 = vadd.f32 %v1589_v41, %v1493_v37 }
 0x3cb   : > { %v6184_v39 = vpop.f32.mrf.mxu0 }
 0x3cc   : > { %v1720_v11 = vadd.f32 %v6184_v39, %v1595_v38 }
 0x3cd   : > { %v1704_v12 = vpop.f32.mrf.mxu0 }
 0x3ce   : > { %v1723_v42 = vmax.f32 %v1720_v11, 0.0  ;;  %v1718_v43 = vadd.f32 %v1704_v12, %v1587_v40 }
 0x3cf   : > { %v6185_v44 = vpop.f32.mrf.mxu0 }
 0x3d0   : > { %1726 = vst [vmem:[#allocation3 + $0x21] sm:$0xff] %v1723_v42  ;;  %v1721_v15 = vmax.f32 %v1718_v43, 0.0  ;;  %v1753_v50 = vpack.c.bf16 %v1723_v42, %v1723_v42 }
 0x3d1   : > { %v1707_v46 = vpop.f32.mrf.mxu0 }
 0x3d2   : > { %1724 = vst [vmem:[#allocation3 + $0x1] sm:$0xff] %v1721_v15  ;;  %v1719_v47 = vadd.f32 %v1707_v46, %v1590_v45 }
 0x3d4   : > { %v1722_v48 = vmax.f32 %v1719_v47, 0.0 }
 0x3d6   : > { %1725 = vst [vmem:[#allocation3 + $0x11] sm:$0xff] %v1722_v48  ;;  %v1752_v49 = vpack.c.bf16 %v1722_v48, %v1721_v15 }
 0x3d7   : > { %v1729_v18 = vld [vmem:[#allocation3 + $0x20] sm:$0xff] }
 0x3d8   : > { %6202 = vmatprep.mubr.bf16.mxu1 %v1752_v49  ;;  %v1731_v60 = vpack.c.bf16 %v1729_v18, %v1729_v18  ;;  %v1965_v3 = vld [vmem:[#allocation3 + $0x22] sm:$0xff]  ;;  %v6799_v18 = vld [vmem:[%s8201_s3 + $0xe0] sm:$0xff]  }
 0x3d9   : > { %6203 = vmatmul.mubr.bf16.vlgmr.msra.gmra.mxu1 %v1753_v50  ;;  %v1727_v54 = vld [vmem:[#allocation3] sm:$0xff]  ;;  %v1967_v4 = vpack.c.bf16 %v1965_v3, %v1965_v3 }
 0x3da   : > { %6227 = vmatpush3.bf16.msra.mxu1 %v6768_v29  ;;  %v1963_v19 = vld [vmem:[#allocation3 + $0x2] sm:$0xff] }
 0x3db   : > { %6228 = vmatprep.subr.bf16.mxu1 %v6769_v51 }
 0x3dd   : > { %v1728_v55 = vld [vmem:[#allocation3 + $0x10] sm:$0xff] }
 0x3de   : > { %v1964_v56 = vld [vmem:[#allocation3 + $0x12] sm:$0xff]  ;;  %v1730_v58 = vpack.c.bf16 %v1728_v55, %v1727_v54  ;;  %6229 = vmatpush3.bf16.msra.mxu1 %v6769_v51 }
 0x3df   : > { %v1966_v59 = vpack.c.bf16 %v1964_v56, %v1963_v19  ;;  %6230 = vmatprep.subr.bf16.mxu1 %v6770_v53  ;;  %v6798_v54 = vld [vmem:[%s8201_s3 + $0xa0] sm:$0xff]   ;;  %v6800_v55 = vld [vmem:[%s8201_s3 + $0x98] sm:$0xff]   ;;  %v6802_v56 = vld [vmem:[%s8201_s3 + $0x90] sm:$0xff]  }
 0x3e0   : > { %6222 = vmatprep.mubr.bf16.mxu0 %v1730_v58  ;;  %v6801_v19 = vld [vmem:[%s8201_s3 + $0xd8] sm:$0xff]   ;;  %v6803_v58 = vld [vmem:[%s8201_s3 + $0xd0] sm:$0xff]  }
 0x3e1   : > { %6242 = vmatprep.mubr.bf16.mxu1 %v1966_v59  ;;  %6223 = vmatmul.mubr.bf16.vlgmr.msra.gmra.mxu0 %v1731_v60  ;;  %v6804_v59 = vld [vmem:[%s8201_s3 + $0x88] sm:$0xff]  }
 0x3e2   : > { %6231 = vmatpush3.bf16.msra.mxu1 %v6770_v53  ;;  %6247 = vmatpush3.bf16.msra.mxu0 %v6776_v5  ;;  %v6795_v53 = vld [vmem:[%s8201_s3 + $0xf0] sm:$0xff]   ;;  %v6805_v60 = vld [vmem:[%s8201_s3 + $0xc8] sm:$0xff]  }
 0x3e3   : > { %6232 = vmatprep.subr.bf16.mxu1 %v6771_v61  ;;  %6248 = vmatprep.subr.bf16.mxu0 %v6778_v7 }
 0x3e6   : > { %6233 = vmatpush3.bf16.msra.mxu1 %v6771_v61  ;;  %6249 = vmatpush3.bf16.msra.mxu0 %v6778_v7  ;;  %v6806_v61 = vld [vmem:[%s8201_s3 + $0x80] sm:$0xff]  }
 0x3e7   : > { %6234 = vmatprep.subr.bf16.mxu1 %v6772_v62  ;;  %6250 = vmatprep.subr.bf16.mxu0 %v6780_v9 }
 0x3ea   : > { %6235 = vmatpush3.bf16.msra.mxu1 %v6772_v62  ;;  %6251 = vmatpush3.bf16.msra.mxu0 %v6780_v9  ;;  %v6807_v62 = vld [vmem:[%s8201_s3 + $0xc0] sm:$0xff]  }
 0x3eb   : > { %6236 = vmatprep.subr.bf16.mxu1 %v6773_v63  ;;  %6252 = vmatprep.subr.bf16.mxu0 %v6782_v13 }
 0x3ee   : > { %6237 = vmatpush3.bf16.msra.mxu1 %v6773_v63  ;;  %6253 = vmatpush3.bf16.msra.mxu0 %v6782_v13  ;;  %v6808_v63 = vld [vmem:[%s8199_s1 + $0x4f8] sm:$0xff]  }
 0x3ef   : > { %6238 = vmatprep.subr.bf16.mxu1 %v6774_v1  ;;  %6254 = vmatprep.subr.bf16.mxu0 %v6784_v17 }
 0x3f2   : > { %6239 = vmatpush3.bf16.msra.mxu1 %v6774_v1  ;;  %6255 = vmatpush3.bf16.msra.mxu0 %v6784_v17  ;;  %v6809_v1 = vld [vmem:[%s8199_s1 + $0x4b8] sm:$0xff]  }
 0x3f3   : > { %6240 = vmatprep.subr.bf16.mxu1 %v6775_v2  ;;  %6256 = vmatprep.subr.bf16.mxu0 %v6786_v21 }
 0x3f6   : > { %6241 = vmatpush3.bf16.msra.mxu1 %v6775_v2  ;;  %6257 = vmatpush3.bf16.msra.mxu0 %v6786_v21 }
 0x3f7   : > { %6266 = vmatprep.subr.bf16.mxu1 %v6777_v6  ;;  %6258 = vmatprep.subr.bf16.mxu0 %v6788_v23 }
 0x3f9   : > { %6243 = vmatmul.mubr.bf16.vlgmr.msra.gmra.mxu1 %v1967_v4 }
 0x3fa   : > { %6267 = vmatpush3.bf16.msra.mxu1 %v6777_v6  ;;  %6259 = vmatpush3.bf16.msra.mxu0 %v6788_v23 }
 0x3fb   : > { %6268 = vmatprep.subr.bf16.mxu1 %v6779_v8  ;;  %6260 = vmatprep.subr.bf16.mxu0 %v6790_v25 }
 0x3fe   : > { %6269 = vmatpush3.bf16.msra.mxu1 %v6779_v8  ;;  %6261 = vmatpush3.bf16.msra.mxu0 %v6790_v25 }
 0x3ff   : > { %6270 = vmatprep.subr.bf16.mxu1 %v6781_v10  ;;  %6286 = vmatprep.subr.bf16.mxu0 %v6792_v27 }
 0x402   : > { %6271 = vmatpush3.bf16.msra.mxu1 %v6781_v10 }
 0x403   : > { %6272 = vmatprep.subr.bf16.mxu1 %v6783_v14 }
 0x406   : > { %6273 = vmatpush3.bf16.msra.mxu1 %v6783_v14 }
 0x407   : > { %6274 = vmatprep.subr.bf16.mxu1 %v6785_v20 }
 0x40a   : > { %6275 = vmatpush3.bf16.msra.mxu1 %v6785_v20 }
 0x40b   : > { %6276 = vmatprep.subr.bf16.mxu1 %v6787_v22 }
 0x40e   : > { %6277 = vmatpush3.bf16.msra.mxu1 %v6787_v22 }
 0x40f   : > { %6278 = vmatprep.subr.bf16.mxu1 %v6789_v24 }
 0x412   : > { %6279 = vmatpush3.bf16.msra.mxu1 %v6789_v24 }
 0x413   : > { %6280 = vmatprep.subr.bf16.mxu1 %v6791_v26 }
 0x416   : > { %6281 = vmatpush3.bf16.msra.mxu1 %v6791_v26 }
 0x417   : > { %6306 = vmatprep.subr.bf16.mxu1 %v6793_v28 }
 0x499   : > { %v6204_v29 = vpop.f32.mrf.mxu1 }
 0x49b   : > { %v1853_v30 = vpop.f32.mrf.mxu1 }
 0x49d   : > { %v6205_v31 = vpop.f32.mrf.mxu1 }
 0x49e   : > { %v6811_v31 = vld [vmem:[%s8199_s1 + $0x4b0] sm:$0xff]  }
 0x49f   : > { %v1856_v35 = vpop.f32.mrf.mxu1 }
 0x4a1   : > { %v6224_v32 = vpop.f32.mrf.mxu0 }
 0x4a2   : > { %v1958_v36 = vadd.f32 %v6224_v32, %v6204_v29  ;;  %v6812_v32 = vld [vmem:[%s8199_s1 + $0x4e8] sm:$0xff]  }
 0x4a3   : > { %v1949_v33 = vpop.f32.mrf.mxu0 }
 0x4a4   : > { %v1950_v38 = vadd.f32 %v1949_v33, %v1853_v30  ;;  %v6810_v30 = vld [vmem:[%s8199_s1 + $0x4f0] sm:$0xff]   ;;  %v6813_v33 = vld [vmem:[%s8199_s1 + $0x4a8] sm:$0xff]  }
 0x4a5   : > { %v6225_v34 = vpop.f32.mrf.mxu0 }
 0x4a6   : > { %v6814_v34 = vld [vmem:[%s8199_s1 + $0x4e0] sm:$0xff]  }
 0x4a7   : > { %v1952_v40 = vpop.f32.mrf.mxu0 }
 0x4a8   : > { %v1953_v43 = vadd.f32 %v1952_v40, %v1856_v35  ;;  %v6815_v35 = vld [vmem:[%s8199_s1 + $0x4a0] sm:$0xff]   ;;  %v6820_v40 = vld [vmem:[%s8199_s1 + $0x4c8] sm:$0xff]  }
 0x4b9   : > { %v6244_v37 = vpop.f32.mrf.mxu1 }
 0x4ba   : > { %v2083_v39 = vadd.f32 %v6244_v37, %v1958_v36  ;;  %v6816_v36 = vld [vmem:[%s8199_s1 + $0x4d8] sm:$0xff]  }
 0x4bb   : > { %v2067_v11 = vpop.f32.mrf.mxu1  ;;  %v6817_v37 = vld [vmem:[%s8199_s1 + $0x498] sm:$0xff]  }
 0x4bc   : > { %v2086_v41 = vadd.f32 %v2083_v39, %v7388_v57  ;;  %v2081_v12 = vadd.f32 %v2067_v11, %v1950_v38  ;;  %v6794_v57 = vld [vmem:[%s8201_s3 + $0xb0] sm:$0xff]   ;;  %v6821_v11 = vld [vmem:[%s8199_s1 + $0x488] sm:$0xff]  }
 0x4bd   : > { %v6245_v42 = vpop.f32.mrf.mxu1  ;;  %v6818_v38 = vld [vmem:[%s8199_s1 + $0x4d0] sm:$0xff]  }
 0x4be   : > { %v2089_v44 = vmax.f32 %v2086_v41, 0.0  ;;  %v2084_v45 = vadd.f32 %v2081_v12, %v7382_v52  ;;  %v6796_v52 = vld [vmem:[%s8201_s3 + $0xa8] sm:$0xff]   ;;  %v6819_v39 = vld [vmem:[%s8199_s1 + $0x490] sm:$0xff]   ;;  %v6822_v41 = vld [vmem:[%s8199_s1 + $0x4c0] sm:$0xff]  }
 0x4bf   : > { %v2070_v15 = vpop.f32.mrf.mxu1  ;;  %v6823_v12 = vld [vmem:[%s8199_s1 + $0x480] sm:$0xff]   ;;  %v7636_v42 = vld [vmem:[%s8199_s1 + $0x538] sm:$0xff]  }
 0x4c0   : > { %2092 = vst [vmem:[#allocation3 + $0x21] sm:$0xff] %v2089_v44  ;;  %v2087_v46 = vmax.f32 %v2084_v45, 0.0  ;;  %v2082_v47 = vadd.f32 %v2070_v15, %v1953_v43  ;;  %v2094_v51 = vpack.c.bf16 %v2089_v44, %v2089_v44 }
 0x4c2   : > { %2090 = vst [vmem:[#allocation3 + $0x1] sm:$0xff] %v2087_v46  ;;  %v2085_v48 = vadd.f32 %v2082_v47, %v7384_v16  ;;  %v6797_v16 = vld [vmem:[%s8201_s3 + $0xe8] sm:$0xff]  }
 0x4c4   : > { %v2088_v49 = vmax.f32 %v2085_v48, 0.0 }
 0x4c6   : > { %2091 = vst [vmem:[#allocation3 + $0x11] sm:$0xff] %v2088_v49  ;;  %v2093_v50 = vpack.c.bf16 %v2088_v49, %v2087_v46 }
 0x4c7   : > { %v2605_v43 = vld [vmem:[#allocation3 + $0x23] sm:$0x1]  ;;  %v2641_v44 = vld [vmem:[#allocation3 + $0x25] sm:$0x1]  ;;  %v2677_v45 = vld [vmem:[#allocation3 + $0x27] sm:$0x1] }
 0x4c8   : > { %6262 = vmatprep.mubr.bf16.mxu0 %v2093_v50  ;;  %6282 = vmatprep.mubr.bf16.mxu1 %v2093_v50  ;;  %v2608_v15 = vld [vmem:[#allocation3 + $0x24] sm:$0x1]  ;;  %v2644_v46 = vld [vmem:[#allocation3 + $0x26] sm:$0x1]  ;;  %v2680_v47 = vld [vmem:[#allocation3 + $0x28] sm:$0x1] }
 0x4c9   : > { %6263 = vmatmul.mubr.bf16.vlgmr.msra.gmra.mxu0 %v2094_v51  ;;  %6283 = vmatmul.mubr.bf16.vlgmr.msra.gmra.mxu1 %v2094_v51  ;;  %v2603_v48 = vld [vmem:[#allocation3 + $0x3] sm:$0x1]  ;;  %v2614_v49 = vrot.slane %v2605_v43, 7  ;;  %v2639_v50 = vld [vmem:[#allocation3 + $0x5] sm:$0x1] }
 0x4ca   : > { %6287 = vmatpush3.bf16.msra.mxu0 %v6792_v27  ;;  %6307 = vmatpush3.bf16.msra.mxu1 %v6793_v28  ;;  %v2675_v51 = vld [vmem:[#allocation3 + $0x7] sm:$0x1] }
 0x4cb   : > { %6288 = vmatprep.subr.bf16.mxu0 %v6794_v57  ;;  %6308 = vmatprep.subr.bf16.mxu1 %v6795_v53 }
 0x4ce   : > { %6289 = vmatpush3.bf16.msra.mxu0 %v6794_v57  ;;  %6309 = vmatpush3.bf16.msra.mxu1 %v6795_v53  ;;  %v2650_v53 = vrot.slane %v2641_v44, 6 }
 0x4cf   : > { %6290 = vmatprep.subr.bf16.mxu0 %v6796_v52  ;;  %6310 = vmatprep.subr.bf16.mxu1 %v6797_v16 }
 0x4d2   : > { %6291 = vmatpush3.bf16.msra.mxu0 %v6796_v52  ;;  %6311 = vmatpush3.bf16.msra.mxu1 %v6797_v16  ;;  %v2686_v52 = vrot.slane %v2677_v45, 5 }
 0x4d3   : > { %6292 = vmatprep.subr.bf16.mxu0 %v6798_v54  ;;  %6312 = vmatprep.subr.bf16.mxu1 %v6799_v18 }
 0x4d6   : > { %6293 = vmatpush3.bf16.msra.mxu0 %v6798_v54  ;;  %6313 = vmatpush3.bf16.msra.mxu1 %v6799_v18  ;;  %v2626_v54 = vrot.slane %v2608_v15, 7  ;;  %v2662_v18 = vrot.slane %v2644_v46, 6 }
 0x4d7   : > { %6294 = vmatprep.subr.bf16.mxu0 %v6800_v55  ;;  %6314 = vmatprep.subr.bf16.mxu1 %v6801_v19 }
 0x4da   : > { %6295 = vmatpush3.bf16.msra.mxu0 %v6800_v55  ;;  %6315 = vmatpush3.bf16.msra.mxu1 %v6801_v19  ;;  %v2581_v55 = vld [vmem:[#allocation3 + $0x21] sm:$0x1] }
 0x4db   : > { %6296 = vmatprep.subr.bf16.mxu0 %v6802_v56  ;;  %6316 = vmatprep.subr.bf16.mxu1 %v6803_v58 }
 0x4de   : > { %6297 = vmatpush3.bf16.msra.mxu0 %v6802_v56  ;;  %6317 = vmatpush3.bf16.msra.mxu1 %v6803_v58  ;;  %v2698_v58 = vrot.slane %v2680_v47, 5  ;;  %v2580_v47 = vld [vmem:[#allocation3 + $0x11] sm:$0x1] }
 0x4df   : > { %6298 = vmatprep.subr.bf16.mxu0 %v6804_v59  ;;  %6318 = vmatprep.subr.bf16.mxu1 %v6805_v60 }
 0x4e2   : > { %6299 = vmatpush3.bf16.msra.mxu0 %v6804_v59  ;;  %6319 = vmatpush3.bf16.msra.mxu1 %v6805_v60  ;;  %v2612_v59 = vrot.slane %v2603_v48, 7 }
 0x4e3   : > { %6300 = vmatprep.subr.bf16.mxu0 %v6806_v61  ;;  %6320 = vmatprep.subr.bf16.mxu1 %v6807_v62 }
 0x4e6   : > { %6301 = vmatpush3.bf16.msra.mxu0 %v6806_v61  ;;  %6321 = vmatpush3.bf16.msra.mxu1 %v6807_v62  ;;  %v2648_v61 = vrot.slane %v2639_v50, 6  ;;  %v2684_v62 = vrot.slane %v2675_v51, 5 }
 0x4e7   : > { %6326 = vmatprep.subr.bf16.mxu0 %v6808_v63  ;;  %6346 = vmatprep.subr.bf16.mxu1 %v6809_v1 }
 0x589   : > { %v6264_v2 = vpop.f32.mrf.mxu0  ;;  %v6284_v3 = vpop.f32.mrf.mxu1 }
 0x58a   : > { %v2326_v4 = vrot.slane %v6284_v3, 1 }
 0x58b   : > { %v2194_v5 = vpop.f32.mrf.mxu0  ;;  %v2307_v6 = vpop.f32.mrf.mxu1 }
 0x58c   : > { %v2332_v7 = vadd.f32 %v6264_v2, %v2326_v4  ;;  %v2324_v8 = vrot.slane %v2307_v6, 1  ;;  %v2642_v2 = vld [vmem:[#allocation3 + $0x6] sm:$0x1] }
 0x58d   : > { %v6265_v9 = vpop.f32.mrf.mxu0  ;;  %v6285_v10 = vpop.f32.mrf.mxu1 }
 0x58e   : > { %v2335_v13 = vmax.f32 %v2332_v7, 0.0  ;;  %v2330_v14 = vadd.f32 %v2324_v8, %v2194_v5  ;;  %v2584_v7 = vld [vmem:[#allocation3 + $0x22] sm:$0x1]  ;;  %v2678_v8 = vld [vmem:[#allocation3 + $0x8] sm:$0x1] }
 0x58f   : > { %v2310_v17 = vpop.f32.mrf.mxu1  ;;  %v2197_v22 = vpop.f32.mrf.mxu0  ;;  %v2604_v9 = vld [vmem:[#allocation3 + $0x13] sm:$0x1] }
 0x590   : > { %2338 = vst [vmem:[#allocation4 + $0x10] sm:$0x1] %v2335_v13  ;;  %2341 = vst [vmem:[#allocation4 + $0xf] sm:$0x4] %v2335_v13  ;;  %v2333_v20 = vmax.f32 %v2330_v14, 0.0  ;;  %v2325_v21 = vrot.slane %v2310_v17, 1 }
 0x591   : > { %2344 = vst [vmem:[#allocation4 + $0xe] sm:$0x10] %v2335_v13  ;;  %2347 = vst [vmem:[#allocation4 + $0xd] sm:$0x40] %v2335_v13 }
 0x592   : > { %2336 = vst [vmem:[#allocation4] sm:$0x1] %v2333_v20  ;;  %2339 = vst [vmem:[#allocation4 - $0x1] sm:$0x4] %v2333_v20  ;;  %v2331_v23 = vadd.f32 %v2325_v21, %v2197_v22 }
 0x593   : > { %2342 = vst [vmem:[#allocation4 - $0x2] sm:$0x10] %v2333_v20  ;;  %2345 = vst [vmem:[#allocation4 - $0x3] sm:$0x40] %v2333_v20  ;;  %v2579_v20 = vld [vmem:[#allocation3 + $0x1] sm:$0x1] }
 0x594   : > { %v2334_v24 = vmax.f32 %v2331_v23, 0.0 }
 0x596   : > { %2337 = vst [vmem:[#allocation4 + $0x8] sm:$0x1] %v2334_v24  ;;  %2340 = vst [vmem:[#allocation4 + $0x7] sm:$0x4] %v2334_v24 }
 0x597   : > { %2343 = vst [vmem:[#allocation4 + $0x6] sm:$0x10] %v2334_v24  ;;  %2346 = vst [vmem:[#allocation4 + $0x5] sm:$0x40] %v2334_v24  ;;  %v2582_v24 = vld [vmem:[#allocation3 + $0x2] sm:$0x1] }
 0x598   : > { %v2350_v25 = vld [vmem:[#allocation4 + $0x10] sm:$0xff] }
 0x599   : > { %v2352_v29 = vpack.c.bf16 %v2350_v25, %v2350_v25 }
 0x59a   : > { %v2348_v26 = vld [vmem:[#allocation4] sm:$0xff] }
 0x59e   : > { %v2349_v27 = vld [vmem:[#allocation4 + $0x8] sm:$0xff] }
 0x59f   : > { %v2351_v28 = vpack.c.bf16 %v2349_v27, %v2348_v26  ;;  %v2660_v27 = vrot.slane %v2642_v2, 6 }
 0x5a1   : > { %6302 = vmatprep.mubr.bf16.mxu0 %v2351_v28  ;;  %6322 = vmatprep.mubr.bf16.mxu1 %v2351_v28  ;;  %v2696_v28 = vrot.slane %v2678_v8, 5  ;;  %v6826_v8 = vld [vmem:[%s8199_s1 + $0x528] sm:$0xff]  }
 0x5a2   : > { %6303 = vmatmul.mubr.bf16.vlgmr.msra.gmra.mxu0 %v2352_v29  ;;  %6323 = vmatmul.mubr.bf16.vlgmr.msra.gmra.mxu1 %v2352_v29 }
 0x5a3   : > { %6327 = vmatpush3.bf16.msra.mxu0 %v6808_v63  ;;  %6347 = vmatpush3.bf16.msra.mxu1 %v6809_v1  ;;  %v2606_v1 = vld [vmem:[#allocation3 + $0x4] sm:$0x1] }
 0x5a4   : > { %6328 = vmatprep.subr.bf16.mxu0 %v6810_v30  ;;  %6348 = vmatprep.subr.bf16.mxu1 %v6811_v31  ;;  %v2624_v26 = vrot.slane %v2606_v1, 7 }
 0x5a7   : > { %6329 = vmatpush3.bf16.msra.mxu0 %v6810_v30  ;;  %6349 = vmatpush3.bf16.msra.mxu1 %v6811_v31  ;;  %v2613_v30 = vrot.slane %v2604_v9, 7  ;;  %v2640_v31 = vld [vmem:[#allocation3 + $0x15] sm:$0x1]  ;;  %v6827_v9 = vld [vmem:[%s8199_s1 + $0x520] sm:$0xff]  }
 0x5a8   : > { %6330 = vmatprep.subr.bf16.mxu0 %v6812_v32  ;;  %6350 = vmatprep.subr.bf16.mxu1 %v6813_v33  ;;  %v2649_v45 = vrot.slane %v2640_v31, 6  ;;  %v6844_v31 = vld [vmem:[%s8199_s1 + $0x588] sm:$0xff]  }
 0x5ab   : > { %6331 = vmatpush3.bf16.msra.mxu0 %v6812_v32  ;;  %6351 = vmatpush3.bf16.msra.mxu1 %v6813_v33  ;;  %v2676_v32 = vld [vmem:[#allocation3 + $0x17] sm:$0x1] }
 0x5ac   : > { %6332 = vmatprep.subr.bf16.mxu0 %v6814_v34  ;;  %6352 = vmatprep.subr.bf16.mxu1 %v6815_v35  ;;  %v2685_v15 = vrot.slane %v2676_v32, 5  ;;  %v6841_v32 = vld [vmem:[%s8199_s1 + $0x558] sm:$0xff]  }
 0x5af   : > { %6333 = vmatpush3.bf16.msra.mxu0 %v6814_v34  ;;  %6353 = vmatpush3.bf16.msra.mxu1 %v6815_v35 }
 0x5b0   : > { %6334 = vmatprep.subr.bf16.mxu0 %v6816_v36  ;;  %6354 = vmatprep.subr.bf16.mxu1 %v6817_v37 }
 0x5b3   : > { %6335 = vmatpush3.bf16.msra.mxu0 %v6816_v36  ;;  %6355 = vmatpush3.bf16.msra.mxu1 %v6817_v37 }
 0x5b4   : > { %6336 = vmatprep.subr.bf16.mxu0 %v6818_v38  ;;  %6356 = vmatprep.subr.bf16.mxu1 %v6819_v39 }
 0x5b7   : > { %6337 = vmatpush3.bf16.msra.mxu0 %v6818_v38  ;;  %6357 = vmatpush3.bf16.msra.mxu1 %v6819_v39  ;;  %v2607_v38 = vld [vmem:[#allocation3 + $0x14] sm:$0x1]  ;;  %v2643_v39 = vld [vmem:[#allocation3 + $0x16] sm:$0x1] }
 0x5b8   : > { %6338 = vmatprep.subr.bf16.mxu0 %v6820_v40  ;;  %6358 = vmatprep.subr.bf16.mxu1 %v6821_v11  ;;  %v2625_v48 = vrot.slane %v2607_v38, 7 }
 0x5bb   : > { %6339 = vmatpush3.bf16.msra.mxu0 %v6820_v40  ;;  %6359 = vmatpush3.bf16.msra.mxu1 %v6821_v11  ;;  %v2679_v40 = vld [vmem:[#allocation3 + $0x18] sm:$0x1] }
 0x5bc   : > { %6340 = vmatprep.subr.bf16.mxu0 %v6822_v41  ;;  %6360 = vmatprep.subr.bf16.mxu1 %v6823_v12  ;;  %v2697_v50 = vrot.slane %v2679_v40, 5 }
 0x5bf   : > { %6341 = vmatpush3.bf16.msra.mxu0 %v6822_v41  ;;  %6361 = vmatpush3.bf16.msra.mxu1 %v6823_v12 }
 0x5c0   : > { %6366 = vmatprep.subr.bf16.mxu0 %v7636_v42 }
 0x662   : > { %v6304_v57 = vpop.f32.mrf.mxu0  ;;  %v6324_v16 = vpop.f32.mrf.mxu1 }
 0x663   : > { %v2587_v19 = vmax.f32 %v6304_v57, 0.0  ;;  %v2593_v56 = vmax.f32 %v6324_v16, 0.0  ;;  %v2583_v16 = vld [vmem:[#allocation3 + $0x12] sm:$0x1] }
 0x664   : > { %v2452_v60 = vpop.f32.mrf.mxu0  ;;  %v2565_v63 = vpop.f32.mrf.mxu1 }
 0x665   : > { %v2590_v3 = vadd.f32 %v2587_v19, %v2581_v55  ;;  %v2620_v4 = vadd.f32 %v2614_v49, %v2587_v19  ;;  %v2656_v5 = vadd.f32 %v2650_v53, %v2587_v19  ;;  %v2692_v6 = vadd.f32 %v2686_v52, %v2587_v19 }
 0x666   : > { %v2596_v10 = vadd.f32 %v2593_v56, %v2584_v7  ;;  %v2632_v13 = vadd.f32 %v2626_v54, %v2593_v56  ;;  %v2668_v14 = vadd.f32 %v2662_v18, %v2593_v56  ;;  %v2704_v17 = vadd.f32 %v2698_v58, %v2593_v56  ;;  %v6305_v21 = vpop.f32.mrf.mxu0  ;;  %v6325_v22 = vpop.f32.mrf.mxu1 }
 0x667   : > { %2599 = vst [vmem:[#allocation3 + $0x21] sm:$0x1] %v2590_v3  ;;  %2635 = vst [vmem:[#allocation3 + $0x22] sm:$0x2] %v2620_v4  ;;  %v2585_v23 = vmax.f32 %v2452_v60, 0.0  ;;  %v2591_v25 = vmax.f32 %v2565_v63, 0.0 }
 0x668   : > { %2671 = vst [vmem:[#allocation3 + $0x23] sm:$0x4] %v2656_v5  ;;  %2707 = vst [vmem:[#allocation3 + $0x24] sm:$0x8] %v2692_v6  ;;  %v2455_v29 = vpop.f32.mrf.mxu0  ;;  %v2568_v33 = vpop.f32.mrf.mxu1  ;;  %v2661_v49 = vrot.slane %v2643_v39, 6  ;;  %v6825_v6 = vld [vmem:[%s8199_s1 + $0x530] sm:$0xff]  }
 0x669   : > { %2602 = vst [vmem:[#allocation3 + $0x22] sm:$0x1] %v2596_v10  ;;  %2638 = vst [vmem:[#allocation3 + $0x23] sm:$0x2] %v2632_v13  ;;  %v2588_v34 = vadd.f32 %v2585_v23, %v2579_v20  ;;  %v2618_v35 = vadd.f32 %v2612_v59, %v2585_v23  ;;  %v2654_v36 = vadd.f32 %v2648_v61, %v2585_v23  ;;  %v2586_v44 = vmax.f32 %v2455_v29, 0.0  ;;  %v6828_v10 = vld [vmem:[%s8199_s1 + $0x518] sm:$0xff]  }
 0x66a   : > { %2674 = vst [vmem:[#allocation3 + $0x24] sm:$0x4] %v2668_v14  ;;  %2710 = vst [vmem:[#allocation3 + $0x25] sm:$0x8] %v2704_v17  ;;  %v2690_v37 = vadd.f32 %v2684_v62, %v2585_v23  ;;  %v2594_v11 = vadd.f32 %v2591_v25, %v2582_v24  ;;  %v2630_v41 = vadd.f32 %v2624_v26, %v2591_v25  ;;  %v2592_v46 = vmax.f32 %v2568_v33, 0.0  ;;  %v6830_v13 = vld [vmem:[%s8199_s1 + $0x508] sm:$0xff]  }
 0x66b   : > { %v2666_v12 = vadd.f32 %v2660_v27, %v2591_v25  ;;  %v2702_v43 = vadd.f32 %v2696_v28, %v2591_v25  ;;  %2597 = vst [vmem:[#allocation3 + $0x1] sm:$0x1] %v2588_v34  ;;  %2633 = vst [vmem:[#allocation3 + $0x2] sm:$0x2] %v2618_v35  ;;  %v2589_v51 = vadd.f32 %v2586_v44, %v2580_v47  ;;  %v6831_v14 = vld [vmem:[%s8199_s1 + $0x500] sm:$0xff]   ;;  %v6832_v21 = vld [vmem:[%s8199_s1 + $0x5b8] sm:$0xff]  }
 0x66c   : > { %2669 = vst [vmem:[#allocation3 + $0x3] sm:$0x4] %v2654_v36  ;;  %2705 = vst [vmem:[#allocation3 + $0x4] sm:$0x8] %v2690_v37  ;;  %v2619_v57 = vadd.f32 %v2613_v30, %v2586_v44  ;;  %v2655_v53 = vadd.f32 %v2649_v45, %v2586_v44  ;;  %v2691_v52 = vadd.f32 %v2685_v15, %v2586_v44  ;;  %v6833_v22 = vld [vmem:[%s8199_s1 + $0x578] sm:$0xff]   ;;  %v6834_v23 = vld [vmem:[%s8199_s1 + $0x5b0] sm:$0xff]   ;;  %6386 = vmatprep.subr.bf16.mxu1 %v6832_v21 }
 0x66d   : > { %2600 = vst [vmem:[#allocation3 + $0x2] sm:$0x1] %v2594_v11  ;;  %2636 = vst [vmem:[#allocation3 + $0x3] sm:$0x2] %v2630_v41  ;;  %v2595_v54 = vadd.f32 %v2592_v46, %v2583_v16  ;;  %v2631_v18 = vadd.f32 %v2625_v48, %v2592_v46  ;;  %v2667_v55 = vadd.f32 %v2661_v49, %v2592_v46  ;;  %v6835_v24 = vld [vmem:[%s8199_s1 + $0x570] sm:$0xff]   ;;  %v6836_v25 = vld [vmem:[%s8199_s1 + $0x5a8] sm:$0xff]  }
 0x66e   : > { %2672 = vst [vmem:[#allocation3 + $0x4] sm:$0x4] %v2666_v12  ;;  %2708 = vst [vmem:[#allocation3 + $0x5] sm:$0x8] %v2702_v43  ;;  %v2703_v19 = vadd.f32 %v2697_v50, %v2592_v46  ;;  %v6837_v26 = vld [vmem:[%s8199_s1 + $0x568] sm:$0xff]   ;;  %v6838_v27 = vld [vmem:[%s8199_s1 + $0x5a0] sm:$0xff]  }
 0x66f   : > { %2598 = vst [vmem:[#allocation3 + $0x11] sm:$0x1] %v2589_v51  ;;  %2634 = vst [vmem:[#allocation3 + $0x12] sm:$0x2] %v2619_v57  ;;  %v6840_v28 = vld [vmem:[%s8199_s1 + $0x598] sm:$0xff]   ;;  %v6842_v29 = vld [vmem:[%s8199_s1 + $0x590] sm:$0xff]  }
 0x670   : > { %2670 = vst [vmem:[#allocation3 + $0x13] sm:$0x4] %v2655_v53  ;;  %2706 = vst [vmem:[#allocation3 + $0x14] sm:$0x8] %v2691_v52  ;;  %v6839_v30 = vld [vmem:[%s8199_s1 + $0x560] sm:$0xff]   ;;  %v6843_v34 = vld [vmem:[%s8199_s1 + $0x550] sm:$0xff]  }
 0x671   : > { %2601 = vst [vmem:[#allocation3 + $0x12] sm:$0x1] %v2595_v54  ;;  %2637 = vst [vmem:[#allocation3 + $0x13] sm:$0x2] %v2631_v18  ;;  %v7639_v56 = vld [vmem:[#allocation3 + $0x21] sm:$0xff]  ;;  %v6846_v33 = vld [vmem:[%s8199_s1 + $0x580] sm:$0xff]  }
 0x672   : > { %2673 = vst [vmem:[#allocation3 + $0x14] sm:$0x4] %v2667_v55  ;;  %2709 = vst [vmem:[#allocation3 + $0x15] sm:$0x8] %v2703_v19  ;;  %v2716_v60 = vld [vmem:[#allocation3 + $0x20] sm:$0xff]  ;;  %v2737_v3 = vpack.c.bf16 %v7639_v56, %v7639_v56  ;;  %v6848_v36 = vld [vmem:[%s8199_s1 + $0x5f8] sm:$0xff]  }
 0x673   : > { %v2718_v4 = vpack.c.bf16 %v2716_v60, %v2716_v60  ;;  %v2949_v17 = vld [vmem:[#allocation3 + $0x22] sm:$0xff]  ;;  %v6847_v37 = vld [vmem:[%s8199_s1 + $0x540] sm:$0xff]  }
 0x674   : > { %v2951_v20 = vpack.c.bf16 %v2949_v17, %v2949_v17  ;;  %v6845_v35 = vld [vmem:[%s8199_s1 + $0x548] sm:$0xff]   ;;  %v6849_v19 = vld [vmem:[%s8199_s1 + $0x5f0] sm:$0xff]   ;;  %v6857_v17 = vld [vmem:[%s8201_s3 + $0x78] sm:$0xff]  }
 0x675   : > { %v7641_v58 = vld [vmem:[#allocation3 + $0x1] sm:$0xff] }
 0x676   : > { %v2714_v59 = vld [vmem:[#allocation3] sm:$0xff] }
 0x677   : > { %v2947_v5 = vld [vmem:[#allocation3 + $0x2] sm:$0xff] }
 0x679   : > { %v7643_v61 = vld [vmem:[#allocation3 + $0x11] sm:$0xff] }
 0x67a   : > { %v2715_v62 = vld [vmem:[#allocation3 + $0x10] sm:$0xff]  ;;  %v2736_v1 = vpack.c.bf16 %v7643_v61, %v7641_v58 }
 0x67b   : > { %v2948_v63 = vld [vmem:[#allocation3 + $0x12] sm:$0xff]  ;;  %v2717_v2 = vpack.c.bf16 %v2715_v62, %v2714_v59  ;;  %v6850_v59 = vld [vmem:[%s8199_s1 + $0x5e8] sm:$0xff]  }
 0x67c   : > { %6342 = vmatprep.mubr.bf16.mxu0 %v2736_v1  ;;  %v2950_v7 = vpack.c.bf16 %v2948_v63, %v2947_v5 }
 0x67d   : > { %6362 = vmatprep.mubr.bf16.mxu1 %v2717_v2  ;;  %6343 = vmatmul.mubr.bf16.vlgmr.msra.gmra.mxu0 %v2737_v3 }
 0x67e   : > { %6363 = vmatmul.mubr.bf16.vlgmr.msra.gmra.mxu1 %v2718_v4  ;;  %6367 = vmatpush3.bf16.msra.mxu0 %v7636_v42  ;;  %v6829_v42 = vld [vmem:[%s8199_s1 + $0x510] sm:$0xff]  }
 0x67f   : > { %6382 = vmatprep.mubr.bf16.mxu0 %v2950_v7  ;;  %6368 = vmatprep.subr.bf16.mxu0 %v6825_v6  ;;  %v6852_v7 = vld [vmem:[%s8199_s1 + $0x5d8] sm:$0xff]  }
 0x680   : > { %6387 = vmatpush3.bf16.msra.mxu1 %v6832_v21  ;;  %v6859_v21 = vld [vmem:[%s8201_s3 + $0x70] sm:$0xff]  }
 0x681   : > { %6388 = vmatprep.subr.bf16.mxu1 %v6834_v23 }
 0x682   : > { %6369 = vmatpush3.bf16.msra.mxu0 %v6825_v6  ;;  %v6851_v6 = vld [vmem:[%s8199_s1 + $0x5e0] sm:$0xff]  }
 0x683   : > { %6370 = vmatprep.subr.bf16.mxu0 %v6826_v8 }
 0x684   : > { %6389 = vmatpush3.bf16.msra.mxu1 %v6834_v23  ;;  %v6861_v23 = vld [vmem:[%s8201_s3 + $0x68] sm:$0xff]  }
 0x685   : > { %6390 = vmatprep.subr.bf16.mxu1 %v6836_v25 }
 0x686   : > { %6371 = vmatpush3.bf16.msra.mxu0 %v6826_v8  ;;  %v6853_v8 = vld [vmem:[%s8199_s1 + $0x5d0] sm:$0xff]  }
 0x687   : > { %6372 = vmatprep.subr.bf16.mxu0 %v6827_v9 }
 0x688   : > { %6391 = vmatpush3.bf16.msra.mxu1 %v6836_v25  ;;  %v6863_v25 = vld [vmem:[%s8201_s3 + $0x60] sm:$0xff]  }
 0x689   : > { %6392 = vmatprep.subr.bf16.mxu1 %v6838_v27 }
 0x68a   : > { %6373 = vmatpush3.bf16.msra.mxu0 %v6827_v9  ;;  %v6854_v9 = vld [vmem:[%s8199_s1 + $0x5c8] sm:$0xff]  }
 0x68b   : > { %6374 = vmatprep.subr.bf16.mxu0 %v6828_v10 }
 0x68c   : > { %6393 = vmatpush3.bf16.msra.mxu1 %v6838_v27  ;;  %v6865_v27 = vld [vmem:[%s8201_s3 + $0x58] sm:$0xff]  }
 0x68d   : > { %6394 = vmatprep.subr.bf16.mxu1 %v6840_v28 }
 0x68e   : > { %6375 = vmatpush3.bf16.msra.mxu0 %v6828_v10  ;;  %v6855_v10 = vld [vmem:[%s8199_s1 + $0x5c0] sm:$0xff]  }
 0x68f   : > { %6376 = vmatprep.subr.bf16.mxu0 %v6829_v42 }
 0x690   : > { %6395 = vmatpush3.bf16.msra.mxu1 %v6840_v28  ;;  %v6866_v28 = vld [vmem:[%s8201_s3 + $0x10] sm:$0xff]  }
 0x691   : > { %6396 = vmatprep.subr.bf16.mxu1 %v6842_v29 }
 0x692   : > { %6377 = vmatpush3.bf16.msra.mxu0 %v6829_v42 }
 0x693   : > { %6378 = vmatprep.subr.bf16.mxu0 %v6830_v13 }
 0x694   : > { %6397 = vmatpush3.bf16.msra.mxu1 %v6842_v29  ;;  %v6867_v29 = vld [vmem:[%s8201_s3 + $0x50] sm:$0xff]  }
 0x695   : > { %6398 = vmatprep.subr.bf16.mxu1 %v6844_v31 }
 0x696   : > { %6379 = vmatpush3.bf16.msra.mxu0 %v6830_v13 }
 0x697   : > { %6380 = vmatprep.subr.bf16.mxu0 %v6831_v14 }
 0x698   : > { %6399 = vmatpush3.bf16.msra.mxu1 %v6844_v31  ;;  %v6869_v31 = vld [vmem:[%s8201_s3 + $0x48] sm:$0xff]  }
 0x699   : > { %6400 = vmatprep.subr.bf16.mxu1 %v6846_v33 }
 0x69a   : > { %6381 = vmatpush3.bf16.msra.mxu0 %v6831_v14  ;;  %v6856_v14 = vld [vmem:[%s8201_s3 + $0x38] sm:$0xff]  }
 0x69b   : > { %6406 = vmatprep.subr.bf16.mxu0 %v6833_v22 }
 0x69c   : > { %6401 = vmatpush3.bf16.msra.mxu1 %v6846_v33  ;;  %v6871_v33 = vld [vmem:[%s8201_s3 + $0x40] sm:$0xff]  }
 0x69d   : > { %6383 = vmatmul.mubr.bf16.vlgmr.msra.gmra.mxu0 %v2951_v20  ;;  %6426 = vmatprep.subr.bf16.mxu1 %v6848_v36  ;;  %v6858_v20 = vld [vmem:[%s8201_s3 + $0x30] sm:$0xff]  }
 0x69e   : > { %6407 = vmatpush3.bf16.msra.mxu0 %v6833_v22  ;;  %v6860_v22 = vld [vmem:[%s8201_s3 + $0x28] sm:$0xff]  }
 0x69f   : > { %6408 = vmatprep.subr.bf16.mxu0 %v6835_v24 }
 0x6a2   : > { %6409 = vmatpush3.bf16.msra.mxu0 %v6835_v24  ;;  %v6862_v24 = vld [vmem:[%s8201_s3 + $0x20] sm:$0xff]  }
 0x6a3   : > { %6410 = vmatprep.subr.bf16.mxu0 %v6837_v26 }
 0x6a6   : > { %6411 = vmatpush3.bf16.msra.mxu0 %v6837_v26  ;;  %v6864_v26 = vld [vmem:[%s8201_s3 + $0x18] sm:$0xff]  }
 0x6a7   : > { %6412 = vmatprep.subr.bf16.mxu0 %v6839_v30 }
 0x6aa   : > { %6413 = vmatpush3.bf16.msra.mxu0 %v6839_v30  ;;  %v6868_v30 = vld [vmem:[%s8201_s3 + $0x8] sm:$0xff]  }
 0x6ab   : > { %6414 = vmatprep.subr.bf16.mxu0 %v6841_v32 }
 0x6ae   : > { %6415 = vmatpush3.bf16.msra.mxu0 %v6841_v32  ;;  %v6870_v32 = vld [vmem:[%s8201_s3] sm:$0xff]  }
 0x6af   : > { %6416 = vmatprep.subr.bf16.mxu0 %v6843_v34 }
 0x6b2   : > { %6417 = vmatpush3.bf16.msra.mxu0 %v6843_v34 }
 0x6b3   : > { %6418 = vmatprep.subr.bf16.mxu0 %v6845_v35 }
 0x6b6   : > { %6419 = vmatpush3.bf16.msra.mxu0 %v6845_v35 }
 0x6b7   : > { %6420 = vmatprep.subr.bf16.mxu0 %v6847_v37 }
 0x6ba   : > { %6421 = vmatpush3.bf16.msra.mxu0 %v6847_v37 }
 0x6bb   : > { %6446 = vmatprep.subr.bf16.mxu0 %v6856_v14 }
 0x73d   : > { %v6344_v38 = vpop.f32.mrf.mxu0 }
 0x73e   : > { %v6364_v39 = vpop.f32.mrf.mxu1 }
 0x73f   : > { %v2837_v40 = vpop.f32.mrf.mxu0  ;;  %v2942_v44 = vadd.f32 %v6364_v39, %v6344_v38 }
 0x740   : > { %v2933_v11 = vpop.f32.mrf.mxu1 }
 0x741   : > { %v6345_v41 = vpop.f32.mrf.mxu0  ;;  %v2934_v15 = vadd.f32 %v2933_v11, %v2837_v40 }
 0x742   : > { %v6365_v12 = vpop.f32.mrf.mxu1 }
 0x743   : > { %v2840_v43 = vpop.f32.mrf.mxu0 }
 0x744   : > { %v2936_v47 = vpop.f32.mrf.mxu1 }
 0x745   : > { %v2937_v57 = vadd.f32 %v2936_v47, %v2840_v43 }
 0x75d   : > { %v6384_v45 = vpop.f32.mrf.mxu0 }
 0x75e   : > { %v3067_v46 = vadd.f32 %v6384_v45, %v2942_v44 }
 0x75f   : > { %v3051_v48 = vpop.f32.mrf.mxu0 }
 0x760   : > { %v3070_v49 = vmax.f32 %v3067_v46, 0.0  ;;  %v3065_v50 = vadd.f32 %v3051_v48, %v2934_v15 }
 0x761   : > { %v6385_v51 = vpop.f32.mrf.mxu0 }
 0x762   : > { %3073 = vst [vmem:[#allocation3 + $0x21] sm:$0xff] %v3070_v49  ;;  %v3068_v53 = vmax.f32 %v3065_v50, 0.0  ;;  %v3100_v55 = vpack.c.bf16 %v3070_v49, %v3070_v49 }
 0x763   : > { %v3054_v52 = vpop.f32.mrf.mxu0 }
 0x764   : > { %3071 = vst [vmem:[#allocation3 + $0x1] sm:$0xff] %v3068_v53  ;;  %v3066_v16 = vadd.f32 %v3054_v52, %v2937_v57 }
 0x766   : > { %v3069_v54 = vmax.f32 %v3066_v16, 0.0 }
 0x768   : > { %3072 = vst [vmem:[#allocation3 + $0x11] sm:$0xff] %v3069_v54  ;;  %v3099_v18 = vpack.c.bf16 %v3069_v54, %v3068_v53 }
 0x769   : > { %v3076_v62 = vld [vmem:[#allocation3 + $0x20] sm:$0xff] }
 0x76a   : > { %6402 = vmatprep.mubr.bf16.mxu1 %v3099_v18  ;;  %v3078_v5 = vpack.c.bf16 %v3076_v62, %v3076_v62  ;;  %v3312_v42 = vld [vmem:[#allocation3 + $0x22] sm:$0xff]  ;;  %v6873_v18 = vld [vmem:[%s8199_s1 + $0x1b8] sm:$0xff]   ;;  %v6879_v62 = vld [vmem:[%s8199_s1 + $0x1a0] sm:$0xff]  }
 0x76b   : > { %6403 = vmatmul.mubr.bf16.vlgmr.msra.gmra.mxu1 %v3100_v55  ;;  %v3074_v60 = vld [vmem:[#allocation3] sm:$0xff]  ;;  %v3314_v13 = vpack.c.bf16 %v3312_v42, %v3312_v42  ;;  %v7870_v42 = vld [vmem:[#allocation2 + $0x4] sm:$0x1] }
 0x76c   : > { %6427 = vmatpush3.bf16.msra.mxu1 %v6848_v36  ;;  %v3310_v1 = vld [vmem:[#allocation3 + $0x2] sm:$0xff] }
 0x76d   : > { %6428 = vmatprep.subr.bf16.mxu1 %v6849_v19 }
 0x76f   : > { %v3075_v63 = vld [vmem:[#allocation3 + $0x10] sm:$0xff] }
 0x770   : > { %v3311_v2 = vld [vmem:[#allocation3 + $0x12] sm:$0xff]  ;;  %v3077_v3 = vpack.c.bf16 %v3075_v63, %v3074_v60  ;;  %6429 = vmatpush3.bf16.msra.mxu1 %v6849_v19  ;;  %v6876_v19 = vld [vmem:[%s8199_s1 + $0x1e8] sm:$0xff]  }
 0x771   : > { %v3313_v4 = vpack.c.bf16 %v3311_v2, %v3310_v1  ;;  %6430 = vmatprep.subr.bf16.mxu1 %v6850_v59  ;;  %v6878_v60 = vld [vmem:[%s8199_s1 + $0x1e0] sm:$0xff]   ;;  %v6880_v63 = vld [vmem:[%s8199_s1 + $0x1d8] sm:$0xff]   ;;  %v6882_v2 = vld [vmem:[%s8199_s1 + $0x1d0] sm:$0xff]  }
 0x772   : > { %6422 = vmatprep.mubr.bf16.mxu0 %v3077_v3  ;;  %v6881_v1 = vld [vmem:[%s8199_s1 + $0x198] sm:$0xff]   ;;  %v6883_v3 = vld [vmem:[%s8199_s1 + $0x190] sm:$0xff]  }
 0x773   : > { %6442 = vmatprep.mubr.bf16.mxu1 %v3313_v4  ;;  %6423 = vmatmul.mubr.bf16.vlgmr.msra.gmra.mxu0 %v3078_v5  ;;  %v6884_v4 = vld [vmem:[%s8199_s1 + $0x1c8] sm:$0xff]  }
 0x774   : > { %6431 = vmatpush3.bf16.msra.mxu1 %v6850_v59  ;;  %6447 = vmatpush3.bf16.msra.mxu0 %v6856_v14  ;;  %v6877_v59 = vld [vmem:[%s8199_s1 + $0x1a8] sm:$0xff]  }
 0x775   : > { %6432 = vmatprep.subr.bf16.mxu1 %v6851_v6  ;;  %6448 = vmatprep.subr.bf16.mxu0 %v6858_v20  ;;  %v6885_v5 = vld [vmem:[%s8199_s1 + $0x188] sm:$0xff]  }
 0x778   : > { %6433 = vmatpush3.bf16.msra.mxu1 %v6851_v6  ;;  %6449 = vmatpush3.bf16.msra.mxu0 %v6858_v20  ;;  %v6886_v6 = vld [vmem:[%s8199_s1 + $0x1c0] sm:$0xff]  }
 0x779   : > { %6434 = vmatprep.subr.bf16.mxu1 %v6852_v7  ;;  %6450 = vmatprep.subr.bf16.mxu0 %v6860_v22 }
 0x77c   : > { %6435 = vmatpush3.bf16.msra.mxu1 %v6852_v7  ;;  %6451 = vmatpush3.bf16.msra.mxu0 %v6860_v22  ;;  %v6887_v7 = vld [vmem:[%s8199_s1 + $0x180] sm:$0xff]   ;;  %v7878_v22 = vld [vmem:[#allocation2 + $0x9] sm:$0x1] }
 0x77d   : > { %6436 = vmatprep.subr.bf16.mxu1 %v6853_v8  ;;  %6452 = vmatprep.subr.bf16.mxu0 %v6862_v24 }
 0x780   : > { %6437 = vmatpush3.bf16.msra.mxu1 %v6853_v8  ;;  %6453 = vmatpush3.bf16.msra.mxu0 %v6862_v24  ;;  %v7864_v8 = vld [vmem:[#allocation2 + $0x3] sm:$0x1]  ;;  %v7882_v24 = vld [vmem:[#allocation2 + $0x8] sm:$0x1] }
 0x781   : > { %6438 = vmatprep.subr.bf16.mxu1 %v6854_v9  ;;  %6454 = vmatprep.subr.bf16.mxu0 %v6864_v26 }
 0x784   : > { %6439 = vmatpush3.bf16.msra.mxu1 %v6854_v9  ;;  %6455 = vmatpush3.bf16.msra.mxu0 %v6864_v26  ;;  %v7866_v9 = vld [vmem:[#allocation2 + $0x5] sm:$0x1]  ;;  %v7886_v26 = vld [vmem:[#allocation2 + $0xf] sm:$0x1] }
 0x785   : > { %6440 = vmatprep.subr.bf16.mxu1 %v6855_v10  ;;  %6456 = vmatprep.subr.bf16.mxu0 %v6866_v28  ;;  %v3736_v14 = vrot.slane %v7866_v9, 6 }
 0x788   : > { %6441 = vmatpush3.bf16.msra.mxu1 %v6855_v10  ;;  %6457 = vmatpush3.bf16.msra.mxu0 %v6866_v28  ;;  %v7868_v10 = vld [vmem:[#allocation2 + $0x7] sm:$0x1]  ;;  %v7890_v28 = vld [vmem:[#allocation2 + $0xc] sm:$0x1] }
 0x789   : > { %6466 = vmatprep.subr.bf16.mxu1 %v6857_v17  ;;  %6458 = vmatprep.subr.bf16.mxu0 %v6868_v30 }
 0x78b   : > { %6443 = vmatmul.mubr.bf16.vlgmr.msra.gmra.mxu1 %v3314_v13  ;;  %v3700_v13 = vrot.slane %v7864_v8, 7  ;;  %v3670_v8 = vld [vmem:[#allocation2 + $0x2] sm:$0x1] }
 0x78c   : > { %6467 = vmatpush3.bf16.msra.mxu1 %v6857_v17  ;;  %6459 = vmatpush3.bf16.msra.mxu0 %v6868_v30  ;;  %v3772_v17 = vrot.slane %v7868_v10, 5  ;;  %v7894_v30 = vld [vmem:[#allocation2 + $0x10] sm:$0x1]  ;;  %v8207_v10 = vrot.slane %v7870_v42, 7 }
 0x78d   : > { %6468 = vmatprep.subr.bf16.mxu1 %v6859_v21  ;;  %6460 = vmatprep.subr.bf16.mxu0 %v6870_v32 }
 0x790   : > { %6469 = vmatpush3.bf16.msra.mxu1 %v6859_v21  ;;  %6461 = vmatpush3.bf16.msra.mxu0 %v6870_v32  ;;  %v7876_v21 = vld [vmem:[#allocation2 + $0x6] sm:$0x1] }
 0x791   : > { %6470 = vmatprep.subr.bf16.mxu1 %v6861_v23  ;;  %6486 = vmatprep.subr.bf16.mxu0 %v7182_v0 }
 0x794   : > { %6471 = vmatpush3.bf16.msra.mxu1 %v6861_v23  ;;  %v7880_v23 = vld [vmem:[#allocation2 + $0xb] sm:$0x1] }
 0x795   : > { %6472 = vmatprep.subr.bf16.mxu1 %v6863_v25 }
 0x798   : > { %6473 = vmatpush3.bf16.msra.mxu1 %v6863_v25  ;;  %v7884_v25 = vld [vmem:[#allocation2 + $0xd] sm:$0x1] }
 0x799   : > { %6474 = vmatprep.subr.bf16.mxu1 %v6865_v27 }
 0x79c   : > { %6475 = vmatpush3.bf16.msra.mxu1 %v6865_v27  ;;  %v7888_v27 = vld [vmem:[#allocation2 + $0xa] sm:$0x1] }
 0x79d   : > { %6476 = vmatprep.subr.bf16.mxu1 %v6867_v29 }
 0x7a0   : > { %6477 = vmatpush3.bf16.msra.mxu1 %v6867_v29  ;;  %v7892_v29 = vld [vmem:[#allocation2 + $0xe] sm:$0x1] }
 0x7a1   : > { %6478 = vmatprep.subr.bf16.mxu1 %v6869_v31 }
 0x7a4   : > { %6479 = vmatpush3.bf16.msra.mxu1 %v6869_v31 }
 0x7a5   : > { %6480 = vmatprep.subr.bf16.mxu1 %v6871_v33 }
 0x7a8   : > { %6481 = vmatpush3.bf16.msra.mxu1 %v6871_v33  ;;  %v7898_v33 = vld [vmem:[#allocation2 + $0x1b] sm:$0x1] }
 0x7a9   : > { %6514 = vmatprep.subr.bf16.mxu1 %v7182_v0 }
 0x82b   : > { %v6404_v34 = vpop.f32.mrf.mxu1 }
 0x82d   : > { %v3200_v35 = vpop.f32.mrf.mxu1 }
 0x82f   : > { %v6405_v36 = vpop.f32.mrf.mxu1 }
 0x831   : > { %v3203_v40 = vpop.f32.mrf.mxu1 }
 0x833   : > { %v6424_v37 = vpop.f32.mrf.mxu0 }
 0x834   : > { %v3305_v11 = vadd.f32 %v6424_v37, %v6404_v34  ;;  %v7900_v34 = vld [vmem:[#allocation2 + $0x1d] sm:$0x1] }
 0x835   : > { %v3296_v38 = vpop.f32.mrf.mxu0 }
 0x836   : > { %v3297_v12 = vadd.f32 %v3296_v38, %v3200_v35 }
 0x837   : > { %v6425_v39 = vpop.f32.mrf.mxu0 }
 0x839   : > { %v3299_v44 = vpop.f32.mrf.mxu0 }
 0x83a   : > { %v3300_v48 = vadd.f32 %v3299_v44, %v3203_v40 }
 0x84b   : > { %v6444_v41 = vpop.f32.mrf.mxu1 }
 0x84c   : > { %v3430_v43 = vadd.f32 %v6444_v41, %v3305_v11 }
 0x84d   : > { %v3414_v45 = vpop.f32.mrf.mxu1 }
 0x84e   : > { %v3433_v15 = vadd.f32 %v3430_v43, %v7639_v56  ;;  %v3428_v46 = vadd.f32 %v3414_v45, %v3297_v12  ;;  %v6872_v56 = vld [vmem:[%s8199_s1 + $0x1f8] sm:$0xff]   ;;  %v3669_v43 = vld [vmem:[#allocation2 + $0x31] sm:$0x1] }
 0x84f   : > { %v6445_v47 = vpop.f32.mrf.mxu1  ;;  %v7910_v12 = vld [vmem:[#allocation2 + $0x1f] sm:$0x1]  ;;  %v7914_v45 = vld [vmem:[#allocation2 + $0x1c] sm:$0x1] }
 0x850   : > { %v3436_v49 = vmax.f32 %v3433_v15, 0.0  ;;  %v3431_v50 = vadd.f32 %v3428_v46, %v7641_v58  ;;  %v6874_v58 = vld [vmem:[%s8199_s1 + $0x1f0] sm:$0xff]   ;;  %v7916_v15 = vld [vmem:[#allocation2 + $0x1e] sm:$0x1]  ;;  %v7918_v46 = vld [vmem:[#allocation2 + $0x21] sm:$0x1] }
 0x851   : > { %v3417_v51 = vpop.f32.mrf.mxu1  ;;  %v7920_v47 = vld [vmem:[#allocation2 + $0x23] sm:$0x1] }
 0x852   : > { %3439 = vst [vmem:[#allocation3 + $0x21] sm:$0xff] %v3436_v49  ;;  %v3434_v57 = vmax.f32 %v3431_v50, 0.0  ;;  %v3429_v53 = vadd.f32 %v3417_v51, %v3300_v48  ;;  %v3441_v55 = vpack.c.bf16 %v3436_v49, %v3436_v49  ;;  %v7922_v48 = vld [vmem:[#allocation2 + $0x20] sm:$0x1]  ;;  %v3693_v49 = vld [vmem:[#allocation2 + $0x33] sm:$0x1] }
 0x853   : > { %v7924_v50 = vld [vmem:[#allocation2 + $0x25] sm:$0x1]  ;;  %v7926_v51 = vld [vmem:[#allocation2 + $0x27] sm:$0x1] }
 0x854   : > { %3437 = vst [vmem:[#allocation3 + $0x1] sm:$0xff] %v3434_v57  ;;  %v3432_v52 = vadd.f32 %v3429_v53, %v7643_v61  ;;  %v6875_v61 = vld [vmem:[%s8199_s1 + $0x1b0] sm:$0xff]  }
 0x855   : > { %v3765_v53 = vld [vmem:[#allocation2 + $0x37] sm:$0x1] }
 0x856   : > { %v3435_v16 = vmax.f32 %v3432_v52, 0.0  ;;  %v3696_v52 = vld [vmem:[#allocation2 + $0x34] sm:$0x1] }
 0x858   : > { %3438 = vst [vmem:[#allocation3 + $0x11] sm:$0xff] %v3435_v16  ;;  %v3440_v54 = vpack.c.bf16 %v3435_v16, %v3434_v57  ;;  %v3729_v57 = vld [vmem:[#allocation2 + $0x35] sm:$0x1] }
 0x85a   : > { %6462 = vmatprep.mubr.bf16.mxu0 %v3440_v54  ;;  %6482 = vmatprep.mubr.bf16.mxu1 %v3440_v54 }
 0x85b   : > { %6463 = vmatmul.mubr.bf16.vlgmr.msra.gmra.mxu0 %v3441_v55  ;;  %6483 = vmatmul.mubr.bf16.vlgmr.msra.gmra.mxu1 %v3441_v55  ;;  %v3912_v55 = vld [vmem:[#allocation2 + $0x40] sm:$0x1] }
 0x85c   : > { %6487 = vmatpush3.bf16.msra.mxu0 %v6872_v56  ;;  %6515 = vmatpush3.bf16.msra.mxu1 %v6873_v18  ;;  %v3840_v18 = vld [vmem:[#allocation2 + $0x3c] sm:$0x1]  ;;  %v3876_v56 = vld [vmem:[#allocation2 + $0x3e] sm:$0x1]  ;;  %v3930_v39 = vrot.slane %v3912_v55, 1 }
 0x85d   : > { %6488 = vmatprep.subr.bf16.mxu0 %v7182_v0  ;;  %6516 = vmatprep.subr.bf16.mxu1 %v7182_v0  ;;  %v3858_v11 = vrot.slane %v3840_v18, 3  ;;  %v3894_v40 = vrot.slane %v3876_v56, 2 }
 0x85e   : > { %6502 = vmatprep.mubr.msk.bf16.mxu0 %vm6930_vm0, %v7182_v0  ;;  %6530 = vmatprep.mubr.msk.bf16.mxu1 %vm6930_vm0, %v7182_v0 }
 0x860   : > { %6489 = vmatpush3.bf16.msra.mxu0 %v6874_v58  ;;  %6517 = vmatpush3.bf16.msra.mxu1 %v6875_v61 }
 0x861   : > { %6490 = vmatprep.subr.bf16.mxu0 %v7182_v0  ;;  %6518 = vmatprep.subr.bf16.mxu1 %v7182_v0 }
 0x864   : > { %6491 = vmatpush3.bf16.msra.mxu0 %v6876_v19  ;;  %6519 = vmatpush3.bf16.msra.mxu1 %v6877_v59  ;;  %v3702_v59 = vrot.slane %v3693_v49, 7 }
 0x865   : > { %6492 = vmatprep.subr.bf16.mxu0 %v7182_v0  ;;  %6520 = vmatprep.subr.bf16.mxu1 %v7182_v0 }
 0x868   : > { %6493 = vmatpush3.bf16.msra.mxu0 %v6878_v60  ;;  %6521 = vmatpush3.bf16.msra.mxu1 %v6879_v62  ;;  %v3738_v60 = vrot.slane %v3729_v57, 6  ;;  %v3774_v62 = vrot.slane %v3765_v53, 5 }
 0x869   : > { %6494 = vmatprep.subr.bf16.mxu0 %v7182_v0  ;;  %6522 = vmatprep.subr.bf16.mxu1 %v7182_v0 }
 0x86c   : > { %6495 = vmatpush3.bf16.msra.mxu0 %v6880_v63  ;;  %6523 = vmatpush3.bf16.msra.mxu1 %v6881_v1  ;;  %v3714_v63 = vrot.slane %v3696_v52, 7  ;;  %v3732_v1 = vld [vmem:[#allocation2 + $0x36] sm:$0x1] }
 0x86d   : > { %6496 = vmatprep.subr.bf16.mxu0 %v7182_v0  ;;  %6524 = vmatprep.subr.bf16.mxu1 %v7182_v0  ;;  %v3750_v19 = vrot.slane %v3732_v1, 6  ;;  %v3672_v1 = vld [vmem:[#allocation2 + $0x32] sm:$0x1] }
 0x870   : > { %6497 = vmatpush3.bf16.msra.mxu0 %v6882_v2  ;;  %6525 = vmatpush3.bf16.msra.mxu1 %v6883_v3  ;;  %v3801_v2 = vld [vmem:[#allocation2 + $0x39] sm:$0x1]  ;;  %v3837_v3 = vld [vmem:[#allocation2 + $0x3b] sm:$0x1] }
 0x871   : > { %6498 = vmatprep.subr.bf16.mxu0 %v7182_v0  ;;  %6526 = vmatprep.subr.bf16.mxu1 %v7182_v0  ;;  %v3810_v58 = vrot.slane %v3801_v2, 4  ;;  %v3846_v16 = vrot.slane %v3837_v3, 3 }
 0x874   : > { %6499 = vmatpush3.bf16.msra.mxu0 %v6884_v4  ;;  %6527 = vmatpush3.bf16.msra.mxu1 %v6885_v5  ;;  %v3873_v4 = vld [vmem:[#allocation2 + $0x3d] sm:$0x1]  ;;  %v3909_v5 = vld [vmem:[#allocation2 + $0x3f] sm:$0x1] }
 0x875   : > { %6500 = vmatprep.subr.bf16.mxu0 %v7182_v0  ;;  %6528 = vmatprep.subr.bf16.mxu1 %v7182_v0  ;;  %v3882_v61 = vrot.slane %v3873_v4, 2  ;;  %v3918_v57 = vrot.slane %v3909_v5, 1 }
 0x878   : > { %6501 = vmatpush3.bf16.msra.mxu0 %v6886_v6  ;;  %6529 = vmatpush3.bf16.msra.mxu1 %v6887_v7  ;;  %v3768_v6 = vld [vmem:[#allocation2 + $0x38] sm:$0x1]  ;;  %v3804_v7 = vld [vmem:[#allocation2 + $0x3a] sm:$0x1] }
 0x879   : > { %6542 = vmatprep.subr.bf16.mxu0 %v7182_v0  ;;  %6570 = vmatprep.subr.bf16.mxu1 %v7182_v0  ;;  %v3786_v52 = vrot.slane %v3768_v6, 5  ;;  %v3822_v41 = vrot.slane %v3804_v7, 4  ;;  %v7938_v6 = vld [vmem:[#allocation2 + $0x24] sm:$0x1] }
 0x91b   : > { %v6464_v54 = vpop.f32.mrf.mxu0  ;;  %v6484_v44 = vpop.f32.mrf.mxu1 }
 0x91c   : > { %v3675_v49 = vmax.f32 %v6464_v54, 0.0  ;;  %v3681_v53 = vmax.f32 %v6484_v44, 0.0  ;;  %v7936_v44 = vld [vmem:[#allocation2 + $0x22] sm:$0x1] }
 0x91d   : > { %v3540_v38 = vpop.f32.mrf.mxu0  ;;  %v3653_v32 = vpop.f32.mrf.mxu1 }
 0x91e   : > { %v3678_v20 = vadd.f32 %v3675_v49, %v3669_v43  ;;  %v3708_v37 = vadd.f32 %v3702_v59, %v3675_v49  ;;  %v3744_v36 = vadd.f32 %v3738_v60, %v3675_v49  ;;  %v3780_v35 = vadd.f32 %v3774_v62, %v3675_v49  ;;  %v7940_v59 = vld [vmem:[#allocation2 + $0x26] sm:$0x1] }
 0x91f   : > { %v3816_v2 = vadd.f32 %v3810_v58, %v3675_v49  ;;  %v3852_v3 = vadd.f32 %v3846_v16, %v3675_v49  ;;  %v3888_v4 = vadd.f32 %v3882_v61, %v3675_v49  ;;  %v3924_v31 = vadd.f32 %v3918_v57, %v3675_v49  ;;  %v6465_v54 = vpop.f32.mrf.mxu0  ;;  %v6485_v5 = vpop.f32.mrf.mxu1  ;;  %v7942_v16 = vld [vmem:[#allocation2 + $0x28] sm:$0x1] }
 0x920   : > { %3687 = vst [vmem:[#allocation2 + $0x31] sm:$0x1] %v3678_v20  ;;  %3723 = vst [vmem:[#allocation2 + $0x32] sm:$0x2] %v3708_v37  ;;  %v3684_v56 = vadd.f32 %v3681_v53, %v3672_v1  ;;  %v3720_v43 = vadd.f32 %v3714_v63, %v3681_v53  ;;  %v3756_v18 = vadd.f32 %v3750_v19, %v3681_v53  ;;  %v3821_v19 = vrot.slane %v7936_v44, 4 }
 0x921   : > { %3759 = vst [vmem:[#allocation2 + $0x33] sm:$0x4] %v3744_v36  ;;  %3795 = vst [vmem:[#allocation2 + $0x34] sm:$0x8] %v3780_v35  ;;  %v3792_v55 = vadd.f32 %v3786_v52, %v3681_v53  ;;  %v3828_v58 = vadd.f32 %v3822_v41, %v3681_v53  ;;  %v3864_v61 = vadd.f32 %v3858_v11, %v3681_v53  ;;  %v3543_v20 = vpop.f32.mrf.mxu0  ;;  %v3656_v37 = vpop.f32.mrf.mxu1  ;;  %v3673_v35 = vmax.f32 %v3540_v38, 0.0 }
 0x922   : > { %3831 = vst [vmem:[#allocation2 + $0x35] sm:$0x10] %v3816_v2  ;;  %3867 = vst [vmem:[#allocation2 + $0x36] sm:$0x20] %v3852_v3  ;;  %v3900_v60 = vadd.f32 %v3894_v40, %v3681_v53  ;;  %v3936_v62 = vadd.f32 %v3930_v39, %v3681_v53  ;;  %v3679_v36 = vmax.f32 %v3653_v32, 0.0  ;;  %v3857_v63 = vrot.slane %v7938_v6, 3 }
 0x923   : > { %3903 = vst [vmem:[#allocation2 + $0x37] sm:$0x40] %v3888_v4  ;;  %3939 = vst [vmem:[#allocation2 + $0x38] sm:$0x80] %v3924_v31  ;;  %v3667_v31 = vld [vmem:[#allocation2 + $0x1] sm:$0x1]  ;;  %v3706_v38 = vadd.f32 %v3700_v13, %v3673_v35  ;;  %v3742_v32 = vadd.f32 %v3736_v14, %v3673_v35  ;;  %v3778_v49 = vadd.f32 %v3772_v17, %v3673_v35 }
 0x924   : > { %3690 = vst [vmem:[#allocation2 + $0x32] sm:$0x1] %v3684_v56  ;;  %3726 = vst [vmem:[#allocation2 + $0x33] sm:$0x2] %v3720_v43  ;;  %v3674_v11 = vmax.f32 %v3543_v20, 0.0  ;;  %v3680_v40 = vmax.f32 %v3656_v37, 0.0  ;;  %v3676_v7 = vadd.f32 %v3673_v35, %v3667_v31  ;;  %v3682_v9 = vadd.f32 %v3679_v36, %v3670_v8 }
 0x925   : > { %3762 = vst [vmem:[#allocation2 + $0x34] sm:$0x4] %v3756_v18  ;;  %3798 = vst [vmem:[#allocation2 + $0x35] sm:$0x8] %v3792_v55  ;;  %v3893_v39 = vrot.slane %v7940_v59, 2  ;;  %v3929_v41 = vrot.slane %v7942_v16, 1  ;;  %v3718_v13 = vadd.f32 %v8207_v10, %v3679_v36 }
 0x926   : > { %3834 = vst [vmem:[#allocation2 + $0x36] sm:$0x10] %v3828_v58  ;;  %3870 = vst [vmem:[#allocation2 + $0x37] sm:$0x20] %v3864_v61  ;;  %v8203_v57 = vrot.slane %v7878_v22, 4  ;;  %v8204_v52 = vrot.slane %v7880_v23, 3 }
 0x927   : > { %3906 = vst [vmem:[#allocation2 + $0x38] sm:$0x40] %v3900_v60  ;;  %3942 = vst [vmem:[#allocation2 + $0x39] sm:$0x80] %v3936_v62  ;;  %v8205_v3 = vrot.slane %v7884_v25, 2  ;;  %v8206_v1 = vrot.slane %v7886_v26, 1 }
 0x928   : > { %v3814_v53 = vadd.f32 %v8203_v57, %v3673_v35  ;;  %v3850_v2 = vadd.f32 %v8204_v52, %v3673_v35  ;;  %3685 = vst [vmem:[#allocation2 + $0x1] sm:$0x1] %v3676_v7  ;;  %3721 = vst [vmem:[#allocation2 + $0x2] sm:$0x2] %v3706_v38  ;;  %v8208_v14 = vrot.slane %v7876_v21, 6  ;;  %v8209_v22 = vrot.slane %v7882_v24, 5 }
 0x929   : > { %v3886_v4 = vadd.f32 %v8205_v3, %v3673_v35  ;;  %v3922_v54 = vadd.f32 %v8206_v1, %v3673_v35  ;;  %3757 = vst [vmem:[#allocation2 + $0x3] sm:$0x4] %v3742_v32  ;;  %3793 = vst [vmem:[#allocation2 + $0x4] sm:$0x8] %v3778_v49  ;;  %v8210_v25 = vrot.slane %v7888_v27, 4  ;;  %v8211_v5 = vrot.slane %v7890_v28, 3 }
 0x92a   : > { %v3754_v17 = vadd.f32 %v8208_v14, %v3679_v36  ;;  %v3790_v23 = vadd.f32 %v8209_v22, %v3679_v36  ;;  %3829 = vst [vmem:[#allocation2 + $0x5] sm:$0x10] %v3814_v53  ;;  %3865 = vst [vmem:[#allocation2 + $0x6] sm:$0x20] %v3850_v2  ;;  %v8212_v43 = vrot.slane %v7892_v29, 2  ;;  %v8213_v18 = vrot.slane %v7894_v30, 1 }
 0x92b   : > { %3901 = vst [vmem:[#allocation2 + $0x7] sm:$0x40] %v3886_v4  ;;  %3937 = vst [vmem:[#allocation2 + $0x8] sm:$0x80] %v3922_v54  ;;  %v3826_v26 = vadd.f32 %v8210_v25, %v3679_v36  ;;  %v3862_v56 = vadd.f32 %v8211_v5, %v3679_v36  ;;  %v3668_v55 = vld [vmem:[#allocation2 + $0x19] sm:$0x1]  ;;  %v3935_v32 = vadd.f32 %v3929_v41, %v3680_v40 }
 0x92c   : > { %v3898_v42 = vadd.f32 %v8212_v43, %v3679_v36  ;;  %v3934_v21 = vadd.f32 %v8213_v18, %v3679_v36  ;;  %3688 = vst [vmem:[#allocation2 + $0x2] sm:$0x1] %v3682_v9  ;;  %3724 = vst [vmem:[#allocation2 + $0x3] sm:$0x2] %v3718_v13  ;;  %v3677_v24 = vadd.f32 %v3674_v11, %v3668_v55  ;;  %v8214_v59 = vrot.slane %v7898_v33, 7  ;;  %v6888_v6 = vld [vmem:[%s8199_s1 + $0x238] sm:$0xff]  }
 0x92d   : > { %3760 = vst [vmem:[#allocation2 + $0x4] sm:$0x4] %v3754_v17  ;;  %3796 = vst [vmem:[#allocation2 + $0x5] sm:$0x8] %v3790_v23  ;;  %v8215_v27 = vrot.slane %v7900_v34, 6  ;;  %v8216_v28 = vrot.slane %v7910_v12, 5 }
 0x92e   : > { %v3707_v16 = vadd.f32 %v8214_v59, %v3674_v11  ;;  %3832 = vst [vmem:[#allocation2 + $0x6] sm:$0x10] %v3826_v26  ;;  %3868 = vst [vmem:[#allocation2 + $0x7] sm:$0x20] %v3862_v56  ;;  %v8217_v29 = vrot.slane %v7918_v46, 4  ;;  %v8218_v60 = vrot.slane %v7920_v47, 3 }
 0x92f   : > { %v3743_v58 = vadd.f32 %v8215_v27, %v3674_v11  ;;  %v3779_v61 = vadd.f32 %v8216_v28, %v3674_v11  ;;  %3904 = vst [vmem:[#allocation2 + $0x8] sm:$0x40] %v3898_v42  ;;  %3940 = vst [vmem:[#allocation2 + $0x9] sm:$0x80] %v3934_v21  ;;  %v8219_v20 = vrot.slane %v7924_v50, 2  ;;  %v8220_v37 = vrot.slane %v7926_v51, 1 }
 0x930   : > { %v3815_v30 = vadd.f32 %v8217_v29, %v3674_v11  ;;  %v3851_v62 = vadd.f32 %v8218_v60, %v3674_v11  ;;  %v3671_v35 = vld [vmem:[#allocation2 + $0x1a] sm:$0x1]  ;;  %3686 = vst [vmem:[#allocation2 + $0x19] sm:$0x1] %v3677_v24  ;;  %3722 = vst [vmem:[#allocation2 + $0x1a] sm:$0x2] %v3707_v16  ;;  %v3827_v50 = vadd.f32 %v3821_v19, %v3680_v40 }
 0x931   : > { %v3887_v33 = vadd.f32 %v8219_v20, %v3674_v11  ;;  %v3923_v34 = vadd.f32 %v8220_v37, %v3674_v11  ;;  %3758 = vst [vmem:[#allocation2 + $0x1b] sm:$0x4] %v3743_v58  ;;  %3794 = vst [vmem:[#allocation2 + $0x1c] sm:$0x8] %v3779_v61  ;;  %v3683_v12 = vadd.f32 %v3680_v40, %v3671_v35  ;;  %v8221_v36 = vrot.slane %v7914_v45, 7  ;;  %v6890_v53 = vld [vmem:[%s8199_s1 + $0x228] sm:$0xff]  }
 0x932   : > { %v8222_v46 = vrot.slane %v7916_v15, 6  ;;  %v8223_v47 = vrot.slane %v7922_v48, 5  ;;  %3830 = vst [vmem:[#allocation2 + $0x1d] sm:$0x10] %v3815_v30  ;;  %3866 = vst [vmem:[#allocation2 + $0x1e] sm:$0x20] %v3851_v62  ;;  %v3863_v51 = vadd.f32 %v3857_v63, %v3680_v40  ;;  %v3899_v11 = vadd.f32 %v3893_v39, %v3680_v40 }
 0x933   : > { %v3719_v31 = vadd.f32 %v8221_v36, %v3680_v40  ;;  %3902 = vst [vmem:[#allocation2 + $0x1f] sm:$0x40] %v3887_v33  ;;  %3938 = vst [vmem:[#allocation2 + $0x20] sm:$0x80] %v3923_v34  ;;  %v6891_v3 = vld [vmem:[%s8199_s1 + $0x220] sm:$0xff]   ;;  %v8035_v4 = vld [vmem:[#allocation2 + $0x31] sm:$0xff] }
 0x934   : > { %v3755_v7 = vadd.f32 %v8222_v46, %v3680_v40  ;;  %v3791_v38 = vadd.f32 %v8223_v47, %v3680_v40  ;;  %3689 = vst [vmem:[#allocation2 + $0x1a] sm:$0x1] %v3683_v12  ;;  %3833 = vst [vmem:[#allocation2 + $0x1e] sm:$0x10] %v3827_v50  ;;  %v8000_v45 = vld [vmem:[#allocation2 + $0x1] sm:$0xff]  ;;  %v6889_v40 = vld [vmem:[%s8199_s1 + $0x230] sm:$0xff]  }
 0x935   : > { %3725 = vst [vmem:[#allocation2 + $0x1b] sm:$0x2] %v3719_v31  ;;  %3869 = vst [vmem:[#allocation2 + $0x1f] sm:$0x20] %v3863_v51  ;;  %v3949_v15 = vld [vmem:[#allocation2] sm:$0xff]  ;;  %v3953_v54 = vld [vmem:[#allocation2 + $0x30] sm:$0xff] }
 0x936   : > { %3761 = vst [vmem:[#allocation2 + $0x1c] sm:$0x4] %v3755_v7  ;;  %3797 = vst [vmem:[#allocation2 + $0x1d] sm:$0x8] %v3791_v38  ;;  %v8002_v48 = vld [vmem:[#allocation2 + $0x9] sm:$0xff]  ;;  %v8037_v1 = vld [vmem:[#allocation2 + $0x39] sm:$0xff] }
 0x937   : > { %3905 = vst [vmem:[#allocation2 + $0x20] sm:$0x40] %v3899_v11  ;;  %3941 = vst [vmem:[#allocation2 + $0x21] sm:$0x80] %v3935_v32  ;;  %v3950_v44 = vld [vmem:[#allocation2 + $0x8] sm:$0xff]  ;;  %v3975_v19 = vpack.c.bf16 %v8002_v48, %v8000_v45  ;;  %v3954_v8 = vld [vmem:[#allocation2 + $0x38] sm:$0xff]  ;;  %v3977_v10 = vpack.c.bf16 %v8037_v1, %v8035_v4 }
 0x938   : > { %v3955_v63 = vpack.c.bf16 %v3950_v44, %v3949_v15  ;;  %v6892_v9 = vld [vmem:[%s8199_s1 + $0x218] sm:$0xff]   ;;  %v3957_v13 = vpack.c.bf16 %v3954_v8, %v3953_v54  ;;  %v6893_v14 = vld [vmem:[%s8199_s1 + $0x210] sm:$0xff]   ;;  %v6894_v17 = vld [vmem:[%s8199_s1 + $0x208] sm:$0xff]  }
 0x939   : > { %6503 = vmatmul.mubr.bf16.vlgmr.msra.gmra.mxu0 %v3975_v19  ;;  %v6895_v22 = vld [vmem:[%s8199_s1 + $0x200] sm:$0xff]   ;;  %v4206_v25 = vld [vmem:[#allocation2 + $0xa] sm:$0xff]  ;;  %v4209_v42 = vld [vmem:[#allocation2 + $0x32] sm:$0xff] }
 0x93a   : > { %6531 = vmatmul.mubr.bf16.vlgmr.msra.gmra.mxu1 %v3955_v63  ;;  %6543 = vmatpush3.bf16.msra.mxu0 %v6888_v6  ;;  %v4205_v23 = vld [vmem:[#allocation2 + $0x2] sm:$0xff]  ;;  %v4210_v18 = vld [vmem:[#allocation2 + $0x3a] sm:$0xff]  ;;  %v6898_v24 = vld [vmem:[%s8199_s1 + $0x2b0] sm:$0xff]  }
 0x93b   : > { %6506 = vmatprep.mubr.msk.bf16.mxu0 %vm6930_vm0, %v7182_v0  ;;  %6544 = vmatprep.subr.bf16.mxu0 %v7182_v0  ;;  %v4211_v26 = vpack.c.bf16 %v4206_v25, %v4205_v23  ;;  %v4213_v21 = vpack.c.bf16 %v4210_v18, %v4209_v42  ;;  %v6896_v55 = vld [vmem:[%s8199_s1 + $0x2b8] sm:$0xff]   ;;  %v6900_v59 = vld [vmem:[%s8199_s1 + $0x2a8] sm:$0xff]   ;;  %v6902_v27 = vld [vmem:[%s8199_s1 + $0x2a0] sm:$0xff]  }
 0x93c   : > { %6534 = vmatprep.mubr.msk.bf16.mxu1 %vm6930_vm0, %v7182_v0  ;;  %6571 = vmatpush3.bf16.msra.mxu1 %v6896_v55  ;;  %v6897_v16 = vld [vmem:[%s8199_s1 + $0x278] sm:$0xff]   ;;  %v6899_v58 = vld [vmem:[%s8199_s1 + $0x270] sm:$0xff]   ;;  %v6901_v28 = vld [vmem:[%s8199_s1 + $0x268] sm:$0xff]  }
 0x93d   : > { %v8017_v39 = vld [vmem:[#allocation2 + $0x19] sm:$0xff]  ;;  %6572 = vmatprep.subr.bf16.mxu1 %v7182_v0  ;;  %v6906_v29 = vld [vmem:[%s8199_s1 + $0x290] sm:$0xff]   ;;  %v6908_v60 = vld [vmem:[%s8199_s1 + $0x288] sm:$0xff]  }
 0x93e   : > { %v8019_v41 = vld [vmem:[#allocation2 + $0x21] sm:$0xff]  ;;  %v3951_v49 = vld [vmem:[#allocation2 + $0x18] sm:$0xff]  ;;  %6545 = vmatpush3.bf16.msra.mxu0 %v6889_v40  ;;  %v6907_v33 = vld [vmem:[%s8199_s1 + $0x250] sm:$0xff]  }
 0x93f   : > { %v3952_v57 = vld [vmem:[#allocation2 + $0x20] sm:$0xff]  ;;  %6546 = vmatprep.subr.bf16.mxu0 %v7182_v0  ;;  %v3976_v52 = vpack.c.bf16 %v8019_v41, %v8017_v39  ;;  %v6904_v61 = vld [vmem:[%s8199_s1 + $0x298] sm:$0xff]   ;;  %v6909_v37 = vld [vmem:[%s8199_s1 + $0x248] sm:$0xff]  }
 0x940   : > { %v3956_v2 = vpack.c.bf16 %v3952_v57, %v3951_v49  ;;  %v4207_v5 = vld [vmem:[#allocation2 + $0x1a] sm:$0xff]  ;;  %v4208_v56 = vld [vmem:[#allocation2 + $0x22] sm:$0xff]  ;;  %6573 = vmatpush3.bf16.msra.mxu1 %v6898_v24 }
 0x941   : > { %6507 = vmatmul.mubr.bf16.gmra.mxu0 %v3976_v52  ;;  %v4212_v43 = vpack.c.bf16 %v4208_v56, %v4207_v5  ;;  %6574 = vmatprep.subr.bf16.mxu1 %v7182_v0  ;;  %v6903_v30 = vld [vmem:[%s8199_s1 + $0x260] sm:$0xff]   ;;  %v6905_v62 = vld [vmem:[%s8199_s1 + $0x258] sm:$0xff]  }
 0x942   : > { %6535 = vmatmul.mubr.bf16.gmra.mxu1 %v3956_v2  ;;  %6547 = vmatpush3.bf16.msra.mxu0 %v6890_v53  ;;  %v6910_v20 = vld [vmem:[%s8199_s1 + $0x280] sm:$0xff]   ;;  %v6912_v56 = vld [vmem:[%s8199_s1 + $0x2f8] sm:$0xff]  }
 0x943   : > { %6510 = vmatprep.mubr.msk.bf16.mxu0 %vm6930_vm0, %v7182_v0  ;;  %6548 = vmatprep.subr.bf16.mxu0 %v7182_v0  ;;  %v6911_v34 = vld [vmem:[%s8199_s1 + $0x240] sm:$0xff]  }
 0x944   : > { %6538 = vmatprep.mubr.msk.bf16.mxu1 %vm6930_vm0, %v7182_v0  ;;  %6575 = vmatpush3.bf16.msra.mxu1 %v6900_v59  ;;  %v6913_v59 = vld [vmem:[%s8199_s1 + $0x2f0] sm:$0xff]  }
 0x945   : > { %6576 = vmatprep.subr.bf16.mxu1 %v7182_v0 }
 0x946   : > { %6549 = vmatpush3.bf16.msra.mxu0 %v6891_v3 }
 0x947   : > { %6550 = vmatprep.subr.bf16.mxu0 %v7182_v0 }
 0x948   : > { %6577 = vmatpush3.bf16.msra.mxu1 %v6902_v27 }
 0x949   : > { %6511 = vmatmul.mubr.bf16.gmra.mxu0 %v3977_v10  ;;  %6578 = vmatprep.subr.bf16.mxu1 %v7182_v0 }
 0x94a   : > { %6539 = vmatmul.mubr.bf16.gmra.mxu1 %v3957_v13  ;;  %6551 = vmatpush3.bf16.msra.mxu0 %v6892_v9 }
 0x94b   : > { %6558 = vmatprep.mubr.msk.bf16.mxu0 %vm6930_vm0, %v7182_v0  ;;  %6552 = vmatprep.subr.bf16.mxu0 %v7182_v0 }
 0x94c   : > { %6586 = vmatprep.mubr.msk.bf16.mxu1 %vm6930_vm0, %v7182_v0  ;;  %6579 = vmatpush3.bf16.msra.mxu1 %v6904_v61 }
 0x94d   : > { %6580 = vmatprep.subr.bf16.mxu1 %v7182_v0 }
 0x94e   : > { %6553 = vmatpush3.bf16.msra.mxu0 %v6893_v14 }
 0x94f   : > { %6554 = vmatprep.subr.bf16.mxu0 %v7182_v0 }
 0x950   : > { %6581 = vmatpush3.bf16.msra.mxu1 %v6906_v29 }
 0x951   : > { %6582 = vmatprep.subr.bf16.mxu1 %v7182_v0 }
 0x952   : > { %6555 = vmatpush3.bf16.msra.mxu0 %v6894_v17 }
 0x953   : > { %6556 = vmatprep.subr.bf16.mxu0 %v7182_v0 }
 0x954   : > { %6583 = vmatpush3.bf16.msra.mxu1 %v6908_v60  ;;  %v6914_v60 = vld [vmem:[%s8199_s1 + $0x2e8] sm:$0xff]  }
 0x955   : > { %6584 = vmatprep.subr.bf16.mxu1 %v7182_v0 }
 0x956   : > { %6557 = vmatpush3.bf16.msra.mxu0 %v6895_v22 }
 0x957   : > { %6598 = vmatprep.subr.bf16.mxu0 %v7182_v0 }
 0x958   : > { %6585 = vmatpush3.bf16.msra.mxu1 %v6910_v20 }
 0x959   : > { %6559 = vmatmul.mubr.bf16.vlgmr.msra.gmra.mxu0 %v4211_v26  ;;  %6626 = vmatprep.subr.bf16.mxu1 %v7182_v0 }
 0x95a   : > { %6562 = vmatprep.mubr.msk.bf16.mxu0 %vm6930_vm0, %v7182_v0  ;;  %6599 = vmatpush3.bf16.msra.mxu0 %v6897_v16 }
 0x95b   : > { %6600 = vmatprep.subr.bf16.mxu0 %v7182_v0 }
 0x95e   : > { %6601 = vmatpush3.bf16.msra.mxu0 %v6899_v58 }
 0x95f   : > { %6602 = vmatprep.subr.bf16.mxu0 %v7182_v0 }
 0x961   : > { %6563 = vmatmul.mubr.bf16.gmra.mxu0 %v4212_v43 }
 0x962   : > { %6566 = vmatprep.mubr.msk.bf16.mxu0 %vm6930_vm0, %v7182_v0  ;;  %6603 = vmatpush3.bf16.msra.mxu0 %v6901_v28 }
 0x963   : > { %6604 = vmatprep.subr.bf16.mxu0 %v7182_v0 }
 0x966   : > { %6605 = vmatpush3.bf16.msra.mxu0 %v6903_v30 }
 0x967   : > { %6606 = vmatprep.subr.bf16.mxu0 %v7182_v0 }
 0x969   : > { %6567 = vmatmul.mubr.bf16.gmra.mxu0 %v4213_v21 }
 0x96a   : > { %6614 = vmatprep.mubr.msk.bf16.mxu0 %vm6930_vm0, %v7182_v0  ;;  %6607 = vmatpush3.bf16.msra.mxu0 %v6905_v62 }
 0x96b   : > { %6608 = vmatprep.subr.bf16.mxu0 %v7182_v0 }
 0x96e   : > { %6609 = vmatpush3.bf16.msra.mxu0 %v6907_v33 }
 0x96f   : > { %6610 = vmatprep.subr.bf16.mxu0 %v7182_v0 }
 0x972   : > { %6611 = vmatpush3.bf16.msra.mxu0 %v6909_v37 }
 0x973   : > { %6612 = vmatprep.subr.bf16.mxu0 %v7182_v0 }
 0x976   : > { %6613 = vmatpush3.bf16.msra.mxu0 %v6911_v34 }
 0x9f9   : > { %v4077_v35 = vpop.f32.mrf.mxu0 }
 0x9fa   : > { %v4182_v12 = vpop.f32.mrf.mxu1 }
 0x9fb   : > { %v6504_v36 = vpop.f32.mrf.mxu0  ;;  %v4183_v54 = vadd.f32 %v4182_v12, %v4077_v35 }
 0x9fc   : > { %v6532_v31 = vpop.f32.mrf.mxu1  ;;  %v6915_v36 = vld [vmem:[%s8199_s1 + $0x2e0] sm:$0xff]  }
 0x9fd   : > { %v4080_v46 = vpop.f32.mrf.mxu0 }
 0x9fe   : > { %v4185_v7 = vpop.f32.mrf.mxu1 }
 0x9ff   : > { %v6505_v47 = vpop.f32.mrf.mxu0  ;;  %v4186_v13 = vadd.f32 %v4185_v7, %v4080_v46 }
 0xa00   : > { %v6533_v38 = vpop.f32.mrf.mxu1 }
 0xa01   : > { %v4085_v50 = vpop.f32.mrf.mxu0 }
 0xa02   : > { %v4190_v51 = vpop.f32.mrf.mxu1 }
 0xa03   : > { %v6508_v11 = vpop.f32.mrf.mxu0  ;;  %v4191_v25 = vadd.f32 %v4190_v51, %v4085_v50  ;;  %v6916_v50 = vld [vmem:[%s8199_s1 + $0x2d8] sm:$0xff]  }
 0xa04   : > { %v6536_v32 = vpop.f32.mrf.mxu1 }
 0xa05   : > { %v4088_v15 = vpop.f32.mrf.mxu0  ;;  %v6917_v32 = vld [vmem:[%s8199_s1 + $0x2d0] sm:$0xff]  }
 0xa06   : > { %v4193_v44 = vpop.f32.mrf.mxu1 }
 0xa07   : > { %v6509_v6 = vpop.f32.mrf.mxu0  ;;  %v4194_v21 = vadd.f32 %v4193_v44, %v4088_v15 }
 0xa08   : > { %v6537_v19 = vpop.f32.mrf.mxu1  ;;  %v6918_v6 = vld [vmem:[%s8199_s1 + $0x2c8] sm:$0xff]  }
 0xa09   : > { %v4093_v63 = vpop.f32.mrf.mxu0 }
 0xa0a   : > { %v4198_v40 = vpop.f32.mrf.mxu1 }
 0xa0b   : > { %v6512_v49 = vpop.f32.mrf.mxu0  ;;  %v4199_v58 = vadd.f32 %v4198_v40, %v4093_v63  ;;  %v6919_v63 = vld [vmem:[%s8199_s1 + $0x2c0] sm:$0xff]  }
 0xa0c   : > { %v6540_v57 = vpop.f32.mrf.mxu1 }
 0xa0d   : > { %v4096_v53 = vpop.f32.mrf.mxu0 }
 0xa0e   : > { %v4201_v52 = vpop.f32.mrf.mxu1 }
 0xa0f   : > { %v6513_v2 = vpop.f32.mrf.mxu0  ;;  %v4202_v34 = vadd.f32 %v4201_v52, %v4096_v53 }
 0xa10   : > { %v6541_v3 = vpop.f32.mrf.mxu1 }
 0xa19   : > { %v4313_v8 = vpop.f32.mrf.mxu0 }
 0xa1a   : > { %v4336_v9 = vadd.f32 %v4313_v8, %v4183_v54 }
 0xa1b   : > { %v6560_v10 = vpop.f32.mrf.mxu0 }
 0xa1c   : > { %v4342_v14 = vmax.f32 %v4336_v9, 0.0 }
 0xa1d   : > { %v4316_v17 = vpop.f32.mrf.mxu0 }
 0xa1e   : > { %4348 = vst [vmem:[#allocation2 + $0x1] sm:$0xff] %v4342_v14  ;;  %v4337_v22 = vadd.f32 %v4316_v17, %v4186_v13 }
 0xa1f   : > { %v6561_v23 = vpop.f32.mrf.mxu0 }
 0xa20   : > { %v4343_v26 = vmax.f32 %v4337_v22, 0.0 }
 0xa21   : > { %v4321_v5 = vpop.f32.mrf.mxu0 }
 0xa22   : > { %4349 = vst [vmem:[#allocation2 + $0x9] sm:$0xff] %v4343_v26  ;;  %v4338_v43 = vadd.f32 %v4321_v5, %v4191_v25  ;;  %v4386_v42 = vpack.c.bf16 %v4343_v26, %v4342_v14 }
 0xa23   : > { %v6564_v18 = vpop.f32.mrf.mxu0 }
 0xa24   : > { %v4344_v55 = vmax.f32 %v4338_v43, 0.0  ;;  %6587 = vmatmul.mubr.bf16.vlgmr.msra.gmra.mxu1 %v4386_v42 }
 0xa25   : > { %v4324_v24 = vpop.f32.mrf.mxu0  ;;  %6627 = vmatpush3.bf16.msra.mxu1 %v6912_v56  ;;  %6590 = vmatprep.mubr.msk.bf16.mxu1 %vm6930_vm0, %v7182_v0  ;;  %v4354_v29 = vld [vmem:[#allocation2] sm:$0xff] }
 0xa26   : > { %4350 = vst [vmem:[#allocation2 + $0x19] sm:$0xff] %v4344_v55  ;;  %v4339_v16 = vadd.f32 %v4324_v24, %v4194_v21  ;;  %6628 = vmatprep.subr.bf16.mxu1 %v7182_v0 }
 0xa27   : > { %v6565_v27 = vpop.f32.mrf.mxu0 }
 0xa28   : > { %v4345_v28 = vmax.f32 %v4339_v16, 0.0 }
 0xa29   : > { %v4329_v61 = vpop.f32.mrf.mxu0  ;;  %v4355_v30 = vld [vmem:[#allocation2 + $0x8] sm:$0xff]  ;;  %6629 = vmatpush3.bf16.msra.mxu1 %v6913_v59 }
 0xa2a   : > { %4351 = vst [vmem:[#allocation2 + $0x21] sm:$0xff] %v4345_v28  ;;  %v4340_v62 = vadd.f32 %v4329_v61, %v4199_v58  ;;  %v4360_v20 = vpack.c.bf16 %v4355_v30, %v4354_v29  ;;  %6630 = vmatprep.subr.bf16.mxu1 %v7182_v0  ;;  %v4387_v33 = vpack.c.bf16 %v4345_v28, %v4344_v55  ;;  %v4616_v40 = vld [vmem:[#allocation2 + $0x2] sm:$0xff]  ;;  %v4617_v49 = vld [vmem:[#allocation2 + $0xa] sm:$0xff] }
 0xa2b   : > { %v6568_v37 = vpop.f32.mrf.mxu0  ;;  %v4622_v57 = vpack.c.bf16 %v4617_v49, %v4616_v40 }
 0xa2c   : > { %v4346_v35 = vmax.f32 %v4340_v62, 0.0  ;;  %6615 = vmatmul.mubr.bf16.vlgmr.msra.gmra.mxu0 %v4360_v20  ;;  %6591 = vmatmul.mubr.bf16.gmra.mxu1 %v4387_v33 }
 0xa2d   : > { %v4332_v12 = vpop.f32.mrf.mxu0  ;;  %6618 = vmatprep.mubr.msk.bf16.mxu0 %vm6930_vm0, %v7182_v0  ;;  %6631 = vmatpush3.bf16.msra.mxu1 %v6914_v60  ;;  %v4356_v47 = vld [vmem:[#allocation2 + $0x18] sm:$0xff] }
 0xa2e   : > { %4352 = vst [vmem:[#allocation2 + $0x31] sm:$0xff] %v4346_v35  ;;  %v4341_v31 = vadd.f32 %v4332_v12, %v4202_v34  ;;  %6632 = vmatprep.subr.bf16.mxu1 %v7182_v0  ;;  %6594 = vmatprep.mubr.msk.bf16.mxu1 %vm6930_vm0, %v7182_v0 }
 0xa2f   : > { %v6569_v46 = vpop.f32.mrf.mxu0 }
 0xa30   : > { %v4347_v7 = vmax.f32 %v4341_v31, 0.0 }
 0xa31   : > { %v4357_v38 = vld [vmem:[#allocation2 + $0x20] sm:$0xff]  ;;  %6633 = vmatpush3.bf16.msra.mxu1 %v6915_v36 }
 0xa32   : > { %4353 = vst [vmem:[#allocation2 + $0x39] sm:$0xff] %v4347_v7  ;;  %v4361_v51 = vpack.c.bf16 %v4357_v38, %v4356_v47  ;;  %6634 = vmatprep.subr.bf16.mxu1 %v7182_v0  ;;  %v4388_v11 = vpack.c.bf16 %v4347_v7, %v4346_v35  ;;  %v4618_v53 = vld [vmem:[#allocation2 + $0x1a] sm:$0xff]  ;;  %v4619_v52 = vld [vmem:[#allocation2 + $0x22] sm:$0xff] }
 0xa33   : > { %v4623_v2 = vpack.c.bf16 %v4619_v52, %v4618_v53 }
 0xa34   : > { %6619 = vmatmul.mubr.bf16.gmra.mxu0 %v4361_v51  ;;  %6595 = vmatmul.mubr.bf16.gmra.mxu1 %v4388_v11 }
 0xa35   : > { %6622 = vmatprep.mubr.msk.bf16.mxu0 %vm6930_vm0, %v7182_v0  ;;  %6635 = vmatpush3.bf16.msra.mxu1 %v6916_v50  ;;  %v4358_v15 = vld [vmem:[#allocation2 + $0x30] sm:$0xff] }
 0xa36   : > { %6636 = vmatprep.subr.bf16.mxu1 %v7182_v0  ;;  %6642 = vmatprep.mubr.msk.bf16.mxu1 %vm6930_vm0, %v7182_v0 }
 0xa39   : > { %v4359_v44 = vld [vmem:[#allocation2 + $0x38] sm:$0xff]  ;;  %6637 = vmatpush3.bf16.msra.mxu1 %v6917_v32 }
 0xa3a   : > { %v4362_v19 = vpack.c.bf16 %v4359_v44, %v4358_v15  ;;  %6638 = vmatprep.subr.bf16.mxu1 %v7182_v0  ;;  %v4620_v3 = vld [vmem:[#allocation2 + $0x32] sm:$0xff]  ;;  %v4621_v54 = vld [vmem:[#allocation2 + $0x3a] sm:$0xff] }
 0xa3b   : > { %v4624_v8 = vpack.c.bf16 %v4621_v54, %v4620_v3 }
 0xa3c   : > { %6623 = vmatmul.mubr.bf16.gmra.mxu0 %v4362_v19 }
 0xa3d   : > { %6639 = vmatpush3.bf16.msra.mxu1 %v6918_v6 }
 0xa3e   : > { %6640 = vmatprep.subr.bf16.mxu1 %v7182_v0 }
 0xa41   : > { %6641 = vmatpush3.bf16.msra.mxu1 %v6919_v63 }
 0xa44   : > { %6643 = vmatmul.mubr.bf16.vlgmr.msra.gmra.mxu1 %v4622_v57 }
 0xa45   : > { %6646 = vmatprep.mubr.msk.bf16.mxu1 %vm6930_vm0, %v7182_v0 }
 0xa4c   : > { %6647 = vmatmul.mubr.bf16.gmra.mxu1 %v4623_v2 }
 0xa4d   : > { %6650 = vmatprep.mubr.msk.bf16.mxu1 %vm6930_vm0, %v7182_v0 }
 0xa54   : > { %6651 = vmatmul.mubr.bf16.gmra.mxu1 %v4624_v8 }
 0xae4   : > { %v4488_v9 = vpop.f32.mrf.mxu1 }
 0xae6   : > { %v6588_v10 = vpop.f32.mrf.mxu1 }
 0xae8   : > { %v4491_v13 = vpop.f32.mrf.mxu1 }
 0xaea   : > { %v6589_v14 = vpop.f32.mrf.mxu1 }
 0xaec   : > { %v4593_v17 = vpop.f32.mrf.mxu0  ;;  %v4496_v22 = vpop.f32.mrf.mxu1 }
 0xaed   : > { %v4594_v29 = vadd.f32 %v4593_v17, %v4488_v9 }
 0xaee   : > { %v6616_v23 = vpop.f32.mrf.mxu0  ;;  %v6592_v25 = vpop.f32.mrf.mxu1 }
 0xaf0   : > { %v4596_v26 = vpop.f32.mrf.mxu0  ;;  %v4499_v5 = vpop.f32.mrf.mxu1 }
 0xaf1   : > { %v4597_v20 = vadd.f32 %v4596_v26, %v4491_v13 }
 0xaf2   : > { %v6617_v56 = vpop.f32.mrf.mxu0  ;;  %v6593_v43 = vpop.f32.mrf.mxu1 }
 0xaf4   : > { %v4601_v42 = vpop.f32.mrf.mxu0  ;;  %v4504_v18 = vpop.f32.mrf.mxu1 }
 0xaf5   : > { %v4602_v36 = vadd.f32 %v4601_v42, %v4496_v22 }
 0xaf6   : > { %v6620_v21 = vpop.f32.mrf.mxu0  ;;  %v6596_v0 = vpop.f32.mrf.mxu1 }
 0xaf8   : > { %v4604_v55 = vpop.f32.mrf.mxu0  ;;  %v4507_v24 = vpop.f32.mrf.mxu1 }
 0xaf9   : > { %v4605_v38 = vadd.f32 %v4604_v55, %v4499_v5 }
 0xafa   : > { %v6621_v59 = vpop.f32.mrf.mxu0  ;;  %v6597_v16 = vpop.f32.mrf.mxu1 }
 0xafc   : > { %v4609_v27 = vpop.f32.mrf.mxu0 }
 0xafd   : > { %v4610_v44 = vadd.f32 %v4609_v27, %v4504_v18 }
 0xafe   : > { %v6624_v58 = vpop.f32.mrf.mxu0 }
 0xb00   : > { %v4612_v28 = vpop.f32.mrf.mxu0 }
 0xb01   : > { %v4613_v49 = vadd.f32 %v4612_v28, %v4507_v24 }
 0xb02   : > { %v6625_v61 = vpop.f32.mrf.mxu0 }
 0xb04   : > { %v4724_v30 = vpop.f32.mrf.mxu1 }
 0xb05   : > { %v4747_v60 = vadd.f32 %v4724_v30, %v4594_v29 }
 0xb06   : > { %v6644_v62 = vpop.f32.mrf.mxu1 }
 0xb07   : > { %v4753_v33 = vadd.f32 %v4747_v60, %v8000_v45 }
 0xb08   : > { %v4727_v37 = vpop.f32.mrf.mxu1 }
 0xb09   : > { %v4759_v34 = vmax.f32 %v4753_v33, 0.0  ;;  %v4748_v35 = vadd.f32 %v4727_v37, %v4597_v20 }
 0xb0a   : > { %v6645_v12 = vpop.f32.mrf.mxu1 }
 0xb0b   : > { %4765 = vst [vmem:[#allocation2 + $0x1] sm:$0xff] %v4759_v34  ;;  %4771 = vst [vmem:[%s8182_s29] sm:$0xff] %v4759_v34  ;;  %v4754_v31 = vadd.f32 %v4748_v35, %v8002_v48 }
 0xb0c   : > { %v4732_v46 = vpop.f32.mrf.mxu1 }
 0xb0d   : > { %v4760_v45 = vmax.f32 %v4754_v31, 0.0  ;;  %v4749_v7 = vadd.f32 %v4732_v46, %v4602_v36 }
 0xb0e   : > { %v6648_v47 = vpop.f32.mrf.mxu1 }
 0xb0f   : > { %4766 = vst [vmem:[#allocation2 + $0x9] sm:$0xff] %v4760_v45  ;;  %4772 = vst [vmem:[%s8182_s29 + $0x8] sm:$0xff] %v4760_v45  ;;  %v4755_v50 = vadd.f32 %v4749_v7, %v8017_v39 }
 0xb10   : > { %v4735_v51 = vpop.f32.mrf.mxu1 }
 0xb11   : > { %v4761_v11 = vmax.f32 %v4755_v50, 0.0  ;;  %v4750_v32 = vadd.f32 %v4735_v51, %v4605_v38 }
 0xb12   : > { %v6649_v15 = vpop.f32.mrf.mxu1 }
 0xb13   : > { %4767 = vst [vmem:[#allocation2 + $0x19] sm:$0xff] %v4761_v11  ;;  %4773 = vst [vmem:[%s8182_s29 + $0x10] sm:$0xff] %v4761_v11  ;;  %v4756_v48 = vadd.f32 %v4750_v32, %v8019_v41 }
 0xb14   : > { %v4740_v6 = vpop.f32.mrf.mxu1 }
 0xb15   : > { %v4762_v19 = vmax.f32 %v4756_v48, 0.0  ;;  %v4751_v63 = vadd.f32 %v4740_v6, %v4610_v44 }
 0xb16   : > { %v6652_v40 = vpop.f32.mrf.mxu1 }
 0xb17   : > { %4768 = vst [vmem:[#allocation2 + $0x21] sm:$0xff] %v4762_v19  ;;  %4774 = vst [vmem:[%s8182_s29 + $0x18] sm:$0xff] %v4762_v19  ;;  %v4757_v39 = vadd.f32 %v4751_v63, %v8035_v4 }
 0xb18   : > { %v4743_v57 = vpop.f32.mrf.mxu1 }
 0xb19   : > { %v4763_v53 = vmax.f32 %v4757_v39, 0.0  ;;  %v4752_v52 = vadd.f32 %v4743_v57, %v4613_v49 }
 0xb1a   : > { %v6653_v2 = vpop.f32.mrf.mxu1 }
 0xb1b   : > { %4769 = vst [vmem:[#allocation2 + $0x31] sm:$0xff] %v4763_v53  ;;  %4775 = vst [vmem:[%s8182_s29 + $0x20] sm:$0xff] %v4763_v53  ;;  %v4758_v3 = vadd.f32 %v4752_v52, %v8037_v1 }
 0xb1d   : > { %v4764_v54 = vmax.f32 %v4758_v3, 0.0 }
 0xb1f   : > { %4770 = vst [vmem:[#allocation2 + $0x39] sm:$0xff] %v4764_v54  ;;  %4776 = vst [vmem:[%s8182_s29 + $0x28] sm:$0xff] %v4764_v54 }
 0xb20 PF: > { %s14_s15 = sadd.s32 1, %s6927_s15  }
 0xb21   : > { %p11_p4 = scmp.ge.s32.totalorder %s14_s15, 4  }
 0xb23   :  { %13 = sbr.rel (!%p11_p4) target bundleno = 1 (0x1), region = 95 }

</bundles_post_ra>
